<compile_context>
chip_gen: v7x
topology: tpu7x:2x2x1
jax: 0.10.0
libtpu: 0.0.40
codegen_flags: <defaults>
</compile_context>

<pallas_src>
import functools

import jax
import jax.numpy as jnp
import numpy as np
from jax import lax
from jax.experimental import pallas as pl
from jax.experimental.pallas import tpu as pltpu


# Network constants (CNNNet.__init__, input 3x32x32):
#   conv1: 3->16, k=5 : 32 -> 28 -> pool2x2 -> 14
#   conv2: 16->36, k=3: 14 -> 12 -> pool2x2 -> 6
#   fc1: 36*6*6 = 1296 -> 128, fc2: 128 -> 10
C1_IN, C1_OUT, C1_K = 3, 16, 75        # conv1 contraction = 3*5*5
C2_IN, C2_OUT, C2_K = 16, 36, 144      # conv2 contraction = 16*3*3 (packed (kh,kw,c))
P1 = 14                                # spatial after conv1+pool1 (14x14)
SP1 = P1 * P1                          # 196 lanes per sample inside the kernel
P2 = 6                                 # spatial after conv2+pool2 (6x6)
SP2 = P2 * P2                          # 36
FC1_IN = C2_OUT * SP2                  # 1296 (PyTorch flatten size, unpadded)
FC_OUT_PAD = 128                       # fc2 out 10 -> 128 (lane-dense store)

_VMEM = pl.BlockSpec(memory_space=pltpu.MemorySpace.VMEM)
_HBM = pl.BlockSpec(memory_space=pl.ANY)      # fc1 weight stays in HBM, manual DMA


# ----------------------------------------------------------------------------
# The single fused kernel
# ----------------------------------------------------------------------------
def _cnn_kernel(p1_ref, w1_ref, b1_ref, w2_ref, b2_ref, sel_ref,
                fw1_hbm, fb1_ref, fw2_ref, fb2_ref,
                out_ref,
                p2_ref, flat_ref, fw1_vmem, dma_sem, *, batch):
    # Prefetch the fc1 weight (largest HBM transfer, ~0.66 MiB) so its DMA
    # overlaps all the conv/pool compute; wait only right before the fc1 dot.
    fw1_copy = pltpu.make_async_copy(fw1_hbm, fw1_vmem, dma_sem)
    fw1_copy.start()

    n1 = batch * SP1                                     # columns per pool quadrant

    def rot_left(v, s):
        # dest lane d <- source lane (d + s) (mod width). Valid output lanes
        # never consume wrapped values (checked against the 14x14 grid).
        if s == 0:
            return v
        return jnp.concatenate([v[:, s:], v[:, :s]], axis=1)

    # ---- conv1 + bias + maxpool(2,2) + relu : one wide MXU matmul ----------
    # p1 columns are (pool-quadrant, batch, 14x14 pooled grid); pooling is a
    # VPU max over the 4 quadrant column blocks (relu/max/bias commute).
    r1 = jnp.dot(w1_ref[...], p1_ref[...], preferred_element_type=jnp.float32)
    m1 = jnp.maximum(jnp.maximum(r1[:, 0:n1], r1[:, n1:2 * n1]),
                     jnp.maximum(r1[:, 2 * n1:3 * n1], r1[:, 3 * n1:4 * n1]))
    h1 = jnp.maximum(m1 + b1_ref[...], 0.0)              # (16, B*196)

    # ---- conv2: im2col built in-kernel with 9 lane rotations of h1 ---------
    # Row block (kh,kw) of the patch matrix holds h1 shifted by kh*14+kw lanes;
    # w2 was pre-packed outside in the matching (kh, kw, c) order.
    for kh in range(3):
        for kw in range(3):
            idx = kh * 3 + kw
            p2_ref[idx * C2_IN:(idx + 1) * C2_IN, :] = rot_left(h1, kh * P1 + kw)
    r2 = jnp.dot(w2_ref[...], p2_ref[...], preferred_element_type=jnp.float32)

    # ---- maxpool(2,2) of the 12x12 valid conv2 outputs via shifted maxes ---
    # Pooled value for (py, px) lands at lane 28*py + 2*px of each sample.
    m2 = jnp.maximum(r2, rot_left(r2, 1))
    m2 = jnp.maximum(m2, rot_left(m2, P1))
    h2 = jnp.maximum(m2 + b2_ref[...], 0.0)              # (36, B*196), sparse

    # ---- compact + flatten: (c, 6x6) features per sample in PyTorch order --
    # A tiny 0/1 selection matmul gathers the 36 pooled lanes per sample; the
    # rows are then laid out contiguously in a VMEM scratch (= x.view(-1,1296)).
    for b in range(batch):
        dense = jnp.dot(h2[:, b * SP1:(b + 1) * SP1], sel_ref[...],
                        preferred_element_type=jnp.float32)        # (36, 36)
        for c in range(C2_OUT):
            flat_ref[b:b + 1, c * SP2:(c + 1) * SP2] = dense[c:c + 1, :]

    # ---- fc1 -> relu -> fc2 -> relu ----------------------------------------
    fw1_copy.wait()                                      # weight DMA already hidden
    h = jnp.dot(flat_ref[...], fw1_vmem[...], preferred_element_type=jnp.float32)
    h = jnp.maximum(h + fb1_ref[...], 0.0)
    o = jnp.dot(h, fw2_ref[...], preferred_element_type=jnp.float32)
    out_ref[...] = jnp.maximum(o + fb2_ref[...], 0.0)    # (B, 128) lane-dense


# ----------------------------------------------------------------------------
# One-time parameter prep (outside jit: no per-call transposes)
# ----------------------------------------------------------------------------
def _make_pool2_select():
    # dense slot (6*py+px)  <-  sparse pooled lane (2*py)*14 + 2*px
    sel = np.zeros((SP1, SP2), np.float32)
    for py in range(P2):
        for px in range(P2):
            sel[(2 * py) * P1 + 2 * px, py * P2 + px] = 1.0
    return sel


def prepare_params(params):
    w1, b1, w2, b2, fw1, fb1, fw2, fb2 = params
    w1p = w1.reshape(C1_OUT, C1_K)                            # (16, 75)  (c,kh,kw)
    b1c = b1.reshape(C1_OUT, 1)
    w2p = w2.transpose(0, 2, 3, 1).reshape(C2_OUT, C2_K)      # (36, 144) (kh,kw,c)
    b2c = b2.reshape(C2_OUT, 1)
    sel = jnp.asarray(_make_pool2_select())                   # (196, 36)
    fw1p = fw1.T                                              # (1296, 128) PyTorch order
    fb1r = fb1.reshape(1, 128)
    fw2p = jnp.pad(fw2.T, ((0, 0), (0, FC_OUT_PAD - 10)))     # (128, 128)
    fb2r = jnp.pad(fb2, (0, FC_OUT_PAD - 10)).reshape(1, FC_OUT_PAD)
    return (w1p, b1c, w2p, b2c, sel, fw1p, fb1r, fw2p, fb2r)


# ----------------------------------------------------------------------------
# Forward pass: one XLA patches op + one transpose fusion, then ONE pallas_call
# ----------------------------------------------------------------------------
@jax.jit
def cnn_forward(x, prepped):
    w1p, b1c, w2p, b2c, sel, fw1p, fb1r, fw2p, fb2r = prepped
    b = x.shape[0]

    # conv1 quadrant im2col (the only remaining XLA glue). Columns ordered
    # (quadrant, batch, pooled 14x14 grid); no padding -> single transpose.
    pat = lax.conv_general_dilated_patches(
        x, (5, 5), (1, 1), "VALID",
        dimension_numbers=("NCHW", "OIHW", "CNHW"),
        precision=lax.Precision.HIGHEST)                       # (75, B, 28, 28)
    p1 = pat.reshape(C1_K, b, P1, 2, P1, 2).transpose(0, 3, 5, 1, 2, 4)
    p1 = p1.reshape(C1_K, 4 * b * SP1)

    out = pl.pallas_call(
        functools.partial(_cnn_kernel, batch=b),
        out_shape=jax.ShapeDtypeStruct((b, FC_OUT_PAD), jnp.float32),
        in_specs=[_VMEM, _VMEM, _VMEM, _VMEM, _VMEM, _VMEM,
                  _HBM,                         # fc1 weight: HBM, manual prefetch
                  _VMEM, _VMEM, _VMEM],
        out_specs=_VMEM,
        scratch_shapes=[
            pltpu.VMEM((C2_K, b * SP1), jnp.float32),   # in-kernel conv2 im2col
            pltpu.VMEM((b, FC1_IN), jnp.float32),       # flattened activations
            pltpu.VMEM((FC1_IN, 128), jnp.float32),     # prefetched fc1 weight
            pltpu.SemaphoreType.DMA,
        ],
    )(p1, w1p, b1c, w2p, b2c, sel, fw1p, fb1r, fw2p, fb2r)
    return out[:, :10]


# ----------------------------------------------------------------------------
# Pure-JAX reference (for correctness check)
# ----------------------------------------------------------------------------
def reference_forward(x, params):
    w1, b1, w2, b2, fw1, fb1, fw2, fb2 = params

    def conv(h, w, b):
        y = lax.conv_general_dilated(
            h, w, (1, 1), "VALID", dimension_numbers=("NCHW", "OIHW", "NCHW"),
            precision=lax.Precision.HIGHEST)
        return y + b[None, :, None, None]

    def pool(h):
        return lax.reduce_window(
            h, -jnp.inf, lax.max, (1, 1, 2, 2), (1, 1, 2, 2), "VALID")

    h = pool(jax.nn.relu(conv(x, w1, b1)))
    h = pool(jax.nn.relu(conv(h, w2, b2)))
    h = h.reshape(h.shape[0], -1)
    h = jax.nn.relu(jnp.dot(h, fw1.T, precision=lax.Precision.HIGHEST) + fb1)
    h = jax.nn.relu(jnp.dot(h, fw2.T, precision=lax.Precision.HIGHEST) + fb2)
    return h


# ----------------------------------------------------------------------------
if __name__ == "__main__":
    key = jax.random.PRNGKey(0)
    ks = jax.random.split(key, 9)

    # Deterministic synthetic parameters (shapes from CNNNet.__init__).
    w1 = jax.random.normal(ks[0], (16, 3, 5, 5), jnp.float32) * 0.1
    b1 = jax.random.normal(ks[1], (16,), jnp.float32) * 0.1
    w2 = jax.random.normal(ks[2], (36, 16, 3, 3), jnp.float32) * 0.1
    b2 = jax.random.normal(ks[3], (36,), jnp.float32) * 0.1
    fw1 = jax.random.normal(ks[4], (128, 1296), jnp.float32) * 0.03
    fb1 = jax.random.normal(ks[5], (128,), jnp.float32) * 0.1
    fw2 = jax.random.normal(ks[6], (10, 128), jnp.float32) * 0.1
    fb2 = jax.random.normal(ks[7], (10,), jnp.float32) * 0.1
    params = (w1, b1, w2, b2, fw1, fb1, fw2, fb2)

    # Input: batch=2, CIFAR-like 3x32x32 (required so flatten == 1296).
    x = jax.random.normal(ks[8], (2, 3, 32, 32), jnp.float32)

    prepped = prepare_params(params)
    out = jax.block_until_ready(cnn_forward(x, prepped))

    ref = reference_forward(x, params)
    np.testing.assert_allclose(np.asarray(out), np.asarray(ref), rtol=1e-4, atol=1e-4)

    assert out.shape == (2, 10) and out.dtype == jnp.float32
    print("KERNEL_OK")
</pallas_src>

<mosaic_0001>
module attributes {stable_mosaic.version = 11 : i64} {
  func.func @_cnn_kernel(%arg0: memref<75x1568xf32, #tpu.memory_space<vmem>>, %arg1: memref<16x75xf32, #tpu.memory_space<vmem>>, %arg2: memref<16x1xf32, #tpu.memory_space<vmem>>, %arg3: memref<36x144xf32, #tpu.memory_space<vmem>>, %arg4: memref<36x1xf32, #tpu.memory_space<vmem>>, %arg5: memref<196x36xf32, #tpu.memory_space<vmem>>, %arg6: memref<1296x128xf32, #tpu.memory_space<any>>, %arg7: memref<1x128xf32, #tpu.memory_space<vmem>>, %arg8: memref<128x128xf32, #tpu.memory_space<vmem>>, %arg9: memref<1x128xf32, #tpu.memory_space<vmem>>, %arg10: memref<2x128xf32, #tpu.memory_space<vmem>>, %arg11: memref<144x392xf32, #tpu.memory_space<vmem>>, %arg12: memref<2x1296xf32, #tpu.memory_space<vmem>>, %arg13: memref<1296x128xf32, #tpu.memory_space<vmem>>, %arg14: memref<!tpu.dma_semaphore, #tpu.memory_space<semaphore_mem>>) attributes {dimension_semantics = [], scalar_prefetch = 0 : i64, scratch_operands = 4 : i64, tpu.core_type = #tpu.core_type<tc>} {
    tpu.enqueue_dma source(%arg6 : memref<1296x128xf32, #tpu.memory_space<any>>) target(%arg13 : memref<1296x128xf32, #tpu.memory_space<vmem>>) target_semaphore(%arg14 : memref<!tpu.dma_semaphore, #tpu.memory_space<semaphore_mem>>)
    %c0 = arith.constant 0 : index
    %c0_0 = arith.constant 0 : index
    %0 = vector.load %arg1[%c0, %c0_0] : memref<16x75xf32, #tpu.memory_space<vmem>>, vector<16x75xf32>
    %c0_1 = arith.constant 0 : index
    %c0_2 = arith.constant 0 : index
    %1 = vector.load %arg0[%c0_1, %c0_2] : memref<75x1568xf32, #tpu.memory_space<vmem>>, vector<75x1568xf32>
    %cst = arith.constant dense<0.000000e+00> : vector<16x1568xf32>
    %2 = tpu.matmul %0, %1, %cst {dimension_numbers = #tpu.dot_dimension_numbers<[1], [0], [0], [1], [0, 0, 1, 1], [], []>} : vector<16x75xf32>, vector<75x1568xf32>, vector<16x1568xf32> -> vector<16x1568xf32>
    %3 = vector.extract_strided_slice %2 {offsets = [0, 0], sizes = [16, 392], strides = [1, 1]} : vector<16x1568xf32> to vector<16x392xf32>
    %4 = vector.extract_strided_slice %2 {offsets = [0, 392], sizes = [16, 392], strides = [1, 1]} : vector<16x1568xf32> to vector<16x392xf32>
    %5 = arith.maximumf %3, %4 : vector<16x392xf32>
    %6 = vector.extract_strided_slice %2 {offsets = [0, 784], sizes = [16, 392], strides = [1, 1]} : vector<16x1568xf32> to vector<16x392xf32>
    %7 = vector.extract_strided_slice %2 {offsets = [0, 1176], sizes = [16, 392], strides = [1, 1]} : vector<16x1568xf32> to vector<16x392xf32>
    %8 = arith.maximumf %6, %7 : vector<16x392xf32>
    %9 = arith.maximumf %5, %8 : vector<16x392xf32>
    %c0_3 = arith.constant 0 : index
    %c0_4 = arith.constant 0 : index
    %10 = vector.load %arg2[%c0_3, %c0_4] : memref<16x1xf32, #tpu.memory_space<vmem>>, vector<16x1xf32>
    %11 = vector.broadcast %10 : vector<16x1xf32> to vector<16x392xf32>
    %12 = arith.addf %9, %11 : vector<16x392xf32>
    %cst_5 = arith.constant 0.000000e+00 : f32
    %13 = vector.broadcast %cst_5 : f32 to vector<16x392xf32>
    %14 = arith.maximumf %12, %13 : vector<16x392xf32>
    %c0_6 = arith.constant 0 : index
    %c0_7 = arith.constant 0 : index
    %15 = vector.load %arg11[%c0_6, %c0_7] : memref<144x392xf32, #tpu.memory_space<vmem>>, vector<16x392xf32>
    tpu.vector_store %arg11[%c0_6, %c0_7], %14 {strides = array<i32>} : memref<144x392xf32, #tpu.memory_space<vmem>>, vector<16x392xf32>,
    %16 = vector.extract_strided_slice %14 {offsets = [0, 1], sizes = [16, 391], strides = [1, 1]} : vector<16x392xf32> to vector<16x391xf32>
    %17 = vector.extract_strided_slice %14 {offsets = [0, 0], sizes = [16, 1], strides = [1, 1]} : vector<16x392xf32> to vector<16x1xf32>
    %18 = tpu.concatenate %16, %17 in 1 : vector<16x391xf32>, vector<16x1xf32> -> vector<16x392xf32>
    %c16 = arith.constant 16 : index
    %c0_8 = arith.constant 0 : index
    %19 = vector.load %arg11[%c16, %c0_8] : memref<144x392xf32, #tpu.memory_space<vmem>>, vector<16x392xf32>
    tpu.vector_store %arg11[%c16, %c0_8], %18 {strides = array<i32>} : memref<144x392xf32, #tpu.memory_space<vmem>>, vector<16x392xf32>,
    %20 = vector.extract_strided_slice %14 {offsets = [0, 2], sizes = [16, 390], strides = [1, 1]} : vector<16x392xf32> to vector<16x390xf32>
    %21 = vector.extract_strided_slice %14 {offsets = [0, 0], sizes = [16, 2], strides = [1, 1]} : vector<16x392xf32> to vector<16x2xf32>
    %22 = tpu.concatenate %20, %21 in 1 : vector<16x390xf32>, vector<16x2xf32> -> vector<16x392xf32>
    %c32 = arith.constant 32 : index
    %c0_9 = arith.constant 0 : index
    %23 = vector.load %arg11[%c32, %c0_9] : memref<144x392xf32, #tpu.memory_space<vmem>>, vector<16x392xf32>
    tpu.vector_store %arg11[%c32, %c0_9], %22 {strides = array<i32>} : memref<144x392xf32, #tpu.memory_space<vmem>>, vector<16x392xf32>,
    %24 = vector.extract_strided_slice %14 {offsets = [0, 14], sizes = [16, 378], strides = [1, 1]} : vector<16x392xf32> to vector<16x378xf32>
    %25 = vector.extract_strided_slice %14 {offsets = [0, 0], sizes = [16, 14], strides = [1, 1]} : vector<16x392xf32> to vector<16x14xf32>
    %26 = tpu.concatenate %24, %25 in 1 : vector<16x378xf32>, vector<16x14xf32> -> vector<16x392xf32>
    %c48 = arith.constant 48 : index
    %c0_10 = arith.constant 0 : index
    %27 = vector.load %arg11[%c48, %c0_10] : memref<144x392xf32, #tpu.memory_space<vmem>>, vector<16x392xf32>
    tpu.vector_store %arg11[%c48, %c0_10], %26 {strides = array<i32>} : memref<144x392xf32, #tpu.memory_space<vmem>>, vector<16x392xf32>,
    %28 = vector.extract_strided_slice %14 {offsets = [0, 15], sizes = [16, 377], strides = [1, 1]} : vector<16x392xf32> to vector<16x377xf32>
    %29 = vector.extract_strided_slice %14 {offsets = [0, 0], sizes = [16, 15], strides = [1, 1]} : vector<16x392xf32> to vector<16x15xf32>
    %30 = tpu.concatenate %28, %29 in 1 : vector<16x377xf32>, vector<16x15xf32> -> vector<16x392xf32>
    %c64 = arith.constant 64 : index
    %c0_11 = arith.constant 0 : index
    %31 = vector.load %arg11[%c64, %c0_11] : memref<144x392xf32, #tpu.memory_space<vmem>>, vector<16x392xf32>
    tpu.vector_store %arg11[%c64, %c0_11], %30 {strides = array<i32>} : memref<144x392xf32, #tpu.memory_space<vmem>>, vector<16x392xf32>,
    %32 = vector.extract_strided_slice %14 {offsets = [0, 16], sizes = [16, 376], strides = [1, 1]} : vector<16x392xf32> to vector<16x376xf32>
    %33 = vector.extract_strided_slice %14 {offsets = [0, 0], sizes = [16, 16], strides = [1, 1]} : vector<16x392xf32> to vector<16x16xf32>
    %34 = tpu.concatenate %32, %33 in 1 : vector<16x376xf32>, vector<16x16xf32> -> vector<16x392xf32>
    %c80 = arith.constant 80 : index
    %c0_12 = arith.constant 0 : index
    %35 = vector.load %arg11[%c80, %c0_12] : memref<144x392xf32, #tpu.memory_space<vmem>>, vector<16x392xf32>
    tpu.vector_store %arg11[%c80, %c0_12], %34 {strides = array<i32>} : memref<144x392xf32, #tpu.memory_space<vmem>>, vector<16x392xf32>,
    %36 = vector.extract_strided_slice %14 {offsets = [0, 28], sizes = [16, 364], strides = [1, 1]} : vector<16x392xf32> to vector<16x364xf32>
    %37 = vector.extract_strided_slice %14 {offsets = [0, 0], sizes = [16, 28], strides = [1, 1]} : vector<16x392xf32> to vector<16x28xf32>
    %38 = tpu.concatenate %36, %37 in 1 : vector<16x364xf32>, vector<16x28xf32> -> vector<16x392xf32>
    %c96 = arith.constant 96 : index
    %c0_13 = arith.constant 0 : index
    %39 = vector.load %arg11[%c96, %c0_13] : memref<144x392xf32, #tpu.memory_space<vmem>>, vector<16x392xf32>
    tpu.vector_store %arg11[%c96, %c0_13], %38 {strides = array<i32>} : memref<144x392xf32, #tpu.memory_space<vmem>>, vector<16x392xf32>,
    %40 = vector.extract_strided_slice %14 {offsets = [0, 29], sizes = [16, 363], strides = [1, 1]} : vector<16x392xf32> to vector<16x363xf32>
    %41 = vector.extract_strided_slice %14 {offsets = [0, 0], sizes = [16, 29], strides = [1, 1]} : vector<16x392xf32> to vector<16x29xf32>
    %42 = tpu.concatenate %40, %41 in 1 : vector<16x363xf32>, vector<16x29xf32> -> vector<16x392xf32>
    %c112 = arith.constant 112 : index
    %c0_14 = arith.constant 0 : index
    %43 = vector.load %arg11[%c112, %c0_14] : memref<144x392xf32, #tpu.memory_space<vmem>>, vector<16x392xf32>
    tpu.vector_store %arg11[%c112, %c0_14], %42 {strides = array<i32>} : memref<144x392xf32, #tpu.memory_space<vmem>>, vector<16x392xf32>,
    %44 = vector.extract_strided_slice %14 {offsets = [0, 30], sizes = [16, 362], strides = [1, 1]} : vector<16x392xf32> to vector<16x362xf32>
    %45 = vector.extract_strided_slice %14 {offsets = [0, 0], sizes = [16, 30], strides = [1, 1]} : vector<16x392xf32> to vector<16x30xf32>
    %46 = tpu.concatenate %44, %45 in 1 : vector<16x362xf32>, vector<16x30xf32> -> vector<16x392xf32>
    %c128 = arith.constant 128 : index
    %c0_15 = arith.constant 0 : index
    %47 = vector.load %arg11[%c128, %c0_15] : memref<144x392xf32, #tpu.memory_space<vmem>>, vector<16x392xf32>
    tpu.vector_store %arg11[%c128, %c0_15], %46 {strides = array<i32>} : memref<144x392xf32, #tpu.memory_space<vmem>>, vector<16x392xf32>,
    %c0_16 = arith.constant 0 : index
    %c0_17 = arith.constant 0 : index
    %48 = vector.load %arg3[%c0_16, %c0_17] : memref<36x144xf32, #tpu.memory_space<vmem>>, vector<36x144xf32>
    %c0_18 = arith.constant 0 : index
    %c0_19 = arith.constant 0 : index
    %49 = vector.load %arg11[%c0_18, %c0_19] : memref<144x392xf32, #tpu.memory_space<vmem>>, vector<144x392xf32>
    %cst_20 = arith.constant dense<0.000000e+00> : vector<36x392xf32>
    %50 = tpu.matmul %48, %49, %cst_20 {dimension_numbers = #tpu.dot_dimension_numbers<[1], [0], [0], [1], [0, 0, 1, 1], [], []>} : vector<36x144xf32>, vector<144x392xf32>, vector<36x392xf32> -> vector<36x392xf32>
    %51 = vector.extract_strided_slice %50 {offsets = [0, 1], sizes = [36, 391], strides = [1, 1]} : vector<36x392xf32> to vector<36x391xf32>
    %52 = vector.extract_strided_slice %50 {offsets = [0, 0], sizes = [36, 1], strides = [1, 1]} : vector<36x392xf32> to vector<36x1xf32>
    %53 = tpu.concatenate %51, %52 in 1 : vector<36x391xf32>, vector<36x1xf32> -> vector<36x392xf32>
    %54 = arith.maximumf %50, %53 : vector<36x392xf32>
    %55 = vector.extract_strided_slice %54 {offsets = [0, 14], sizes = [36, 378], strides = [1, 1]} : vector<36x392xf32> to vector<36x378xf32>
    %56 = vector.extract_strided_slice %54 {offsets = [0, 0], sizes = [36, 14], strides = [1, 1]} : vector<36x392xf32> to vector<36x14xf32>
    %57 = tpu.concatenate %55, %56 in 1 : vector<36x378xf32>, vector<36x14xf32> -> vector<36x392xf32>
    %58 = arith.maximumf %54, %57 : vector<36x392xf32>
    %c0_21 = arith.constant 0 : index
    %c0_22 = arith.constant 0 : index
    %59 = vector.load %arg4[%c0_21, %c0_22] : memref<36x1xf32, #tpu.memory_space<vmem>>, vector<36x1xf32>
    %60 = vector.broadcast %59 : vector<36x1xf32> to vector<36x392xf32>
    %61 = arith.addf %58, %60 : vector<36x392xf32>
    %cst_23 = arith.constant 0.000000e+00 : f32
    %62 = vector.broadcast %cst_23 : f32 to vector<36x392xf32>
    %63 = arith.maximumf %61, %62 : vector<36x392xf32>
    %64 = vector.extract_strided_slice %63 {offsets = [0, 0], sizes = [36, 196], strides = [1, 1]} : vector<36x392xf32> to vector<36x196xf32>
    %c0_24 = arith.constant 0 : index
    %c0_25 = arith.constant 0 : index
    %65 = vector.load %arg5[%c0_24, %c0_25] : memref<196x36xf32, #tpu.memory_space<vmem>>, vector<196x36xf32>
    %cst_26 = arith.constant dense<0.000000e+00> : vector<36x36xf32>
    %66 = tpu.matmul %64, %65, %cst_26 {dimension_numbers = #tpu.dot_dimension_numbers<[1], [0], [0], [1], [0, 0, 1, 1], [], []>} : vector<36x196xf32>, vector<196x36xf32>, vector<36x36xf32> -> vector<36x36xf32>
    %67 = vector.extract_strided_slice %66 {offsets = [0, 0], sizes = [1, 36], strides = [1, 1]} : vector<36x36xf32> to vector<1x36xf32>
    %c0_27 = arith.constant 0 : index
    %c0_28 = arith.constant 0 : index
    %68 = vector.load %arg12[%c0_27, %c0_28] : memref<2x1296xf32, #tpu.memory_space<vmem>>, vector<1x36xf32>
    tpu.vector_store %arg12[%c0_27, %c0_28], %67 {strides = array<i32>} : memref<2x1296xf32, #tpu.memory_space<vmem>>, vector<1x36xf32>,
    %69 = vector.extract_strided_slice %66 {offsets = [1, 0], sizes = [1, 36], strides = [1, 1]} : vector<36x36xf32> to vector<1x36xf32>
    %c0_29 = arith.constant 0 : index
    %c36 = arith.constant 36 : index
    %70 = vector.load %arg12[%c0_29, %c36] : memref<2x1296xf32, #tpu.memory_space<vmem>>, vector<1x36xf32>
    tpu.vector_store %arg12[%c0_29, %c36], %69 {strides = array<i32>} : memref<2x1296xf32, #tpu.memory_space<vmem>>, vector<1x36xf32>,
    %71 = vector.extract_strided_slice %66 {offsets = [2, 0], sizes = [1, 36], strides = [1, 1]} : vector<36x36xf32> to vector<1x36xf32>
    %c0_30 = arith.constant 0 : index
    %c72 = arith.constant 72 : index
    %72 = vector.load %arg12[%c0_30, %c72] : memref<2x1296xf32, #tpu.memory_space<vmem>>, vector<1x36xf32>
    tpu.vector_store %arg12[%c0_30, %c72], %71 {strides = array<i32>} : memref<2x1296xf32, #tpu.memory_space<vmem>>, vector<1x36xf32>,
    %73 = vector.extract_strided_slice %66 {offsets = [3, 0], sizes = [1, 36], strides = [1, 1]} : vector<36x36xf32> to vector<1x36xf32>
    %c0_31 = arith.constant 0 : index
    %c108 = arith.constant 108 : index
    %74 = vector.load %arg12[%c0_31, %c108] : memref<2x1296xf32, #tpu.memory_space<vmem>>, vector<1x36xf32>
    tpu.vector_store %arg12[%c0_31, %c108], %73 {strides = array<i32>} : memref<2x1296xf32, #tpu.memory_space<vmem>>, vector<1x36xf32>,
    %75 = vector.extract_strided_slice %66 {offsets = [4, 0], sizes = [1, 36], strides = [1, 1]} : vector<36x36xf32> to vector<1x36xf32>
    %c0_32 = arith.constant 0 : index
    %c144 = arith.constant 144 : index
    %76 = vector.load %arg12[%c0_32, %c144] : memref<2x1296xf32, #tpu.memory_space<vmem>>, vector<1x36xf32>
    tpu.vector_store %arg12[%c0_32, %c144], %75 {strides = array<i32>} : memref<2x1296xf32, #tpu.memory_space<vmem>>, vector<1x36xf32>,
    %77 = vector.extract_strided_slice %66 {offsets = [5, 0], sizes = [1, 36], strides = [1, 1]} : vector<36x36xf32> to vector<1x36xf32>
    %c0_33 = arith.constant 0 : index
    %c180 = arith.constant 180 : index
    %78 = vector.load %arg12[%c0_33, %c180] : memref<2x1296xf32, #tpu.memory_space<vmem>>, vector<1x36xf32>
    tpu.vector_store %arg12[%c0_33, %c180], %77 {strides = array<i32>} : memref<2x1296xf32, #tpu.memory_space<vmem>>, vector<1x36xf32>,
    %79 = vector.extract_strided_slice %66 {offsets = [6, 0], sizes = [1, 36], strides = [1, 1]} : vector<36x36xf32> to vector<1x36xf32>
    %c0_34 = arith.constant 0 : index
    %c216 = arith.constant 216 : index
    %80 = vector.load %arg12[%c0_34, %c216] : memref<2x1296xf32, #tpu.memory_space<vmem>>, vector<1x36xf32>
    tpu.vector_store %arg12[%c0_34, %c216], %79 {strides = array<i32>} : memref<2x1296xf32, #tpu.memory_space<vmem>>, vector<1x36xf32>,
    %81 = vector.extract_strided_slice %66 {offsets = [7, 0], sizes = [1, 36], strides = [1, 1]} : vector<36x36xf32> to vector<1x36xf32>
    %c0_35 = arith.constant 0 : index
    %c252 = arith.constant 252 : index
    %82 = vector.load %arg12[%c0_35, %c252] : memref<2x1296xf32, #tpu.memory_space<vmem>>, vector<1x36xf32>
    tpu.vector_store %arg12[%c0_35, %c252], %81 {strides = array<i32>} : memref<2x1296xf32, #tpu.memory_space<vmem>>, vector<1x36xf32>,
    %83 = vector.extract_strided_slice %66 {offsets = [8, 0], sizes = [1, 36], strides = [1, 1]} : vector<36x36xf32> to vector<1x36xf32>
    %c0_36 = arith.constant 0 : index
    %c288 = arith.constant 288 : index
    %84 = vector.load %arg12[%c0_36, %c288] : memref<2x1296xf32, #tpu.memory_space<vmem>>, vector<1x36xf32>
    tpu.vector_store %arg12[%c0_36, %c288], %83 {strides = array<i32>} : memref<2x1296xf32, #tpu.memory_space<vmem>>, vector<1x36xf32>,
    %85 = vector.extract_strided_slice %66 {offsets = [9, 0], sizes = [1, 36], strides = [1, 1]} : vector<36x36xf32> to vector<1x36xf32>
    %c0_37 = arith.constant 0 : index
    %c324 = arith.constant 324 : index
    %86 = vector.load %arg12[%c0_37, %c324] : memref<2x1296xf32, #tpu.memory_space<vmem>>, vector<1x36xf32>
    tpu.vector_store %arg12[%c0_37, %c324], %85 {strides = array<i32>} : memref<2x1296xf32, #tpu.memory_space<vmem>>, vector<1x36xf32>,
    %87 = vector.extract_strided_slice %66 {offsets = [10, 0], sizes = [1, 36], strides = [1, 1]} : vector<36x36xf32> to vector<1x36xf32>
    %c0_38 = arith.constant 0 : index
    %c360 = arith.constant 360 : index
    %88 = vector.load %arg12[%c0_38, %c360] : memref<2x1296xf32, #tpu.memory_space<vmem>>, vector<1x36xf32>
    tpu.vector_store %arg12[%c0_38, %c360], %87 {strides = array<i32>} : memref<2x1296xf32, #tpu.memory_space<vmem>>, vector<1x36xf32>,
    %89 = vector.extract_strided_slice %66 {offsets = [11, 0], sizes = [1, 36], strides = [1, 1]} : vector<36x36xf32> to vector<1x36xf32>
    %c0_39 = arith.constant 0 : index
    %c396 = arith.constant 396 : index
    %90 = vector.load %arg12[%c0_39, %c396] : memref<2x1296xf32, #tpu.memory_space<vmem>>, vector<1x36xf32>
    tpu.vector_store %arg12[%c0_39, %c396], %89 {strides = array<i32>} : memref<2x1296xf32, #tpu.memory_space<vmem>>, vector<1x36xf32>,
    %91 = vector.extract_strided_slice %66 {offsets = [12, 0], sizes = [1, 36], strides = [1, 1]} : vector<36x36xf32> to vector<1x36xf32>
    %c0_40 = arith.constant 0 : index
    %c432 = arith.constant 432 : index
    %92 = vector.load %arg12[%c0_40, %c432] : memref<2x1296xf32, #tpu.memory_space<vmem>>, vector<1x36xf32>
    tpu.vector_store %arg12[%c0_40, %c432], %91 {strides = array<i32>} : memref<2x1296xf32, #tpu.memory_space<vmem>>, vector<1x36xf32>,
    %93 = vector.extract_strided_slice %66 {offsets = [13, 0], sizes = [1, 36], strides = [1, 1]} : vector<36x36xf32> to vector<1x36xf32>
    %c0_41 = arith.constant 0 : index
    %c468 = arith.constant 468 : index
    %94 = vector.load %arg12[%c0_41, %c468] : memref<2x1296xf32, #tpu.memory_space<vmem>>, vector<1x36xf32>
    tpu.vector_store %arg12[%c0_41, %c468], %93 {strides = array<i32>} : memref<2x1296xf32, #tpu.memory_space<vmem>>, vector<1x36xf32>,
    %95 = vector.extract_strided_slice %66 {offsets = [14, 0], sizes = [1, 36], strides = [1, 1]} : vector<36x36xf32> to vector<1x36xf32>
    %c0_42 = arith.constant 0 : index
    %c504 = arith.constant 504 : index
    %96 = vector.load %arg12[%c0_42, %c504] : memref<2x1296xf32, #tpu.memory_space<vmem>>, vector<1x36xf32>
    tpu.vector_store %arg12[%c0_42, %c504], %95 {strides = array<i32>} : memref<2x1296xf32, #tpu.memory_space<vmem>>, vector<1x36xf32>,
    %97 = vector.extract_strided_slice %66 {offsets = [15, 0], sizes = [1, 36], strides = [1, 1]} : vector<36x36xf32> to vector<1x36xf32>
    %c0_43 = arith.constant 0 : index
    %c540 = arith.constant 540 : index
    %98 = vector.load %arg12[%c0_43, %c540] : memref<2x1296xf32, #tpu.memory_space<vmem>>, vector<1x36xf32>
    tpu.vector_store %arg12[%c0_43, %c540], %97 {strides = array<i32>} : memref<2x1296xf32, #tpu.memory_space<vmem>>, vector<1x36xf32>,
    %99 = vector.extract_strided_slice %66 {offsets = [16, 0], sizes = [1, 36], strides = [1, 1]} : vector<36x36xf32> to vector<1x36xf32>
    %c0_44 = arith.constant 0 : index
    %c576 = arith.constant 576 : index
    %100 = vector.load %arg12[%c0_44, %c576] : memref<2x1296xf32, #tpu.memory_space<vmem>>, vector<1x36xf32>
    tpu.vector_store %arg12[%c0_44, %c576], %99 {strides = array<i32>} : memref<2x1296xf32, #tpu.memory_space<vmem>>, vector<1x36xf32>,
    %101 = vector.extract_strided_slice %66 {offsets = [17, 0], sizes = [1, 36], strides = [1, 1]} : vector<36x36xf32> to vector<1x36xf32>
    %c0_45 = arith.constant 0 : index
    %c612 = arith.constant 612 : index
    %102 = vector.load %arg12[%c0_45, %c612] : memref<2x1296xf32, #tpu.memory_space<vmem>>, vector<1x36xf32>
    tpu.vector_store %arg12[%c0_45, %c612], %101 {strides = array<i32>} : memref<2x1296xf32, #tpu.memory_space<vmem>>, vector<1x36xf32>,
    %103 = vector.extract_strided_slice %66 {offsets = [18, 0], sizes = [1, 36], strides = [1, 1]} : vector<36x36xf32> to vector<1x36xf32>
    %c0_46 = arith.constant 0 : index
    %c648 = arith.constant 648 : index
    %104 = vector.load %arg12[%c0_46, %c648] : memref<2x1296xf32, #tpu.memory_space<vmem>>, vector<1x36xf32>
    tpu.vector_store %arg12[%c0_46, %c648], %103 {strides = array<i32>} : memref<2x1296xf32, #tpu.memory_space<vmem>>, vector<1x36xf32>,
    %105 = vector.extract_strided_slice %66 {offsets = [19, 0], sizes = [1, 36], strides = [1, 1]} : vector<36x36xf32> to vector<1x36xf32>
    %c0_47 = arith.constant 0 : index
    %c684 = arith.constant 684 : index
    %106 = vector.load %arg12[%c0_47, %c684] : memref<2x1296xf32, #tpu.memory_space<vmem>>, vector<1x36xf32>
    tpu.vector_store %arg12[%c0_47, %c684], %105 {strides = array<i32>} : memref<2x1296xf32, #tpu.memory_space<vmem>>, vector<1x36xf32>,
    %107 = vector.extract_strided_slice %66 {offsets = [20, 0], sizes = [1, 36], strides = [1, 1]} : vector<36x36xf32> to vector<1x36xf32>
    %c0_48 = arith.constant 0 : index
    %c720 = arith.constant 720 : index
    %108 = vector.load %arg12[%c0_48, %c720] : memref<2x1296xf32, #tpu.memory_space<vmem>>, vector<1x36xf32>
    tpu.vector_store %arg12[%c0_48, %c720], %107 {strides = array<i32>} : memref<2x1296xf32, #tpu.memory_space<vmem>>, vector<1x36xf32>,
    %109 = vector.extract_strided_slice %66 {offsets = [21, 0], sizes = [1, 36], strides = [1, 1]} : vector<36x36xf32> to vector<1x36xf32>
    %c0_49 = arith.constant 0 : index
    %c756 = arith.constant 756 : index
    %110 = vector.load %arg12[%c0_49, %c756] : memref<2x1296xf32, #tpu.memory_space<vmem>>, vector<1x36xf32>
    tpu.vector_store %arg12[%c0_49, %c756], %109 {strides = array<i32>} : memref<2x1296xf32, #tpu.memory_space<vmem>>, vector<1x36xf32>,
    %111 = vector.extract_strided_slice %66 {offsets = [22, 0], sizes = [1, 36], strides = [1, 1]} : vector<36x36xf32> to vector<1x36xf32>
    %c0_50 = arith.constant 0 : index
    %c792 = arith.constant 792 : index
    %112 = vector.load %arg12[%c0_50, %c792] : memref<2x1296xf32, #tpu.memory_space<vmem>>, vector<1x36xf32>
    tpu.vector_store %arg12[%c0_50, %c792], %111 {strides = array<i32>} : memref<2x1296xf32, #tpu.memory_space<vmem>>, vector<1x36xf32>,
    %113 = vector.extract_strided_slice %66 {offsets = [23, 0], sizes = [1, 36], strides = [1, 1]} : vector<36x36xf32> to vector<1x36xf32>
    %c0_51 = arith.constant 0 : index
    %c828 = arith.constant 828 : index
    %114 = vector.load %arg12[%c0_51, %c828] : memref<2x1296xf32, #tpu.memory_space<vmem>>, vector<1x36xf32>
    tpu.vector_store %arg12[%c0_51, %c828], %113 {strides = array<i32>} : memref<2x1296xf32, #tpu.memory_space<vmem>>, vector<1x36xf32>,
    %115 = vector.extract_strided_slice %66 {offsets = [24, 0], sizes = [1, 36], strides = [1, 1]} : vector<36x36xf32> to vector<1x36xf32>
    %c0_52 = arith.constant 0 : index
    %c864 = arith.constant 864 : index
    %116 = vector.load %arg12[%c0_52, %c864] : memref<2x1296xf32, #tpu.memory_space<vmem>>, vector<1x36xf32>
    tpu.vector_store %arg12[%c0_52, %c864], %115 {strides = array<i32>} : memref<2x1296xf32, #tpu.memory_space<vmem>>, vector<1x36xf32>,
    %117 = vector.extract_strided_slice %66 {offsets = [25, 0], sizes = [1, 36], strides = [1, 1]} : vector<36x36xf32> to vector<1x36xf32>
    %c0_53 = arith.constant 0 : index
    %c900 = arith.constant 900 : index
    %118 = vector.load %arg12[%c0_53, %c900] : memref<2x1296xf32, #tpu.memory_space<vmem>>, vector<1x36xf32>
    tpu.vector_store %arg12[%c0_53, %c900], %117 {strides = array<i32>} : memref<2x1296xf32, #tpu.memory_space<vmem>>, vector<1x36xf32>,
    %119 = vector.extract_strided_slice %66 {offsets = [26, 0], sizes = [1, 36], strides = [1, 1]} : vector<36x36xf32> to vector<1x36xf32>
    %c0_54 = arith.constant 0 : index
    %c936 = arith.constant 936 : index
    %120 = vector.load %arg12[%c0_54, %c936] : memref<2x1296xf32, #tpu.memory_space<vmem>>, vector<1x36xf32>
    tpu.vector_store %arg12[%c0_54, %c936], %119 {strides = array<i32>} : memref<2x1296xf32, #tpu.memory_space<vmem>>, vector<1x36xf32>,
    %121 = vector.extract_strided_slice %66 {offsets = [27, 0], sizes = [1, 36], strides = [1, 1]} : vector<36x36xf32> to vector<1x36xf32>
    %c0_55 = arith.constant 0 : index
    %c972 = arith.constant 972 : index
    %122 = vector.load %arg12[%c0_55, %c972] : memref<2x1296xf32, #tpu.memory_space<vmem>>, vector<1x36xf32>
    tpu.vector_store %arg12[%c0_55, %c972], %121 {strides = array<i32>} : memref<2x1296xf32, #tpu.memory_space<vmem>>, vector<1x36xf32>,
    %123 = vector.extract_strided_slice %66 {offsets = [28, 0], sizes = [1, 36], strides = [1, 1]} : vector<36x36xf32> to vector<1x36xf32>
    %c0_56 = arith.constant 0 : index
    %c1008 = arith.constant 1008 : index
    %124 = vector.load %arg12[%c0_56, %c1008] : memref<2x1296xf32, #tpu.memory_space<vmem>>, vector<1x36xf32>
    tpu.vector_store %arg12[%c0_56, %c1008], %123 {strides = array<i32>} : memref<2x1296xf32, #tpu.memory_space<vmem>>, vector<1x36xf32>,
    %125 = vector.extract_strided_slice %66 {offsets = [29, 0], sizes = [1, 36], strides = [1, 1]} : vector<36x36xf32> to vector<1x36xf32>
    %c0_57 = arith.constant 0 : index
    %c1044 = arith.constant 1044 : index
    %126 = vector.load %arg12[%c0_57, %c1044] : memref<2x1296xf32, #tpu.memory_space<vmem>>, vector<1x36xf32>
    tpu.vector_store %arg12[%c0_57, %c1044], %125 {strides = array<i32>} : memref<2x1296xf32, #tpu.memory_space<vmem>>, vector<1x36xf32>,
    %127 = vector.extract_strided_slice %66 {offsets = [30, 0], sizes = [1, 36], strides = [1, 1]} : vector<36x36xf32> to vector<1x36xf32>
    %c0_58 = arith.constant 0 : index
    %c1080 = arith.constant 1080 : index
    %128 = vector.load %arg12[%c0_58, %c1080] : memref<2x1296xf32, #tpu.memory_space<vmem>>, vector<1x36xf32>
    tpu.vector_store %arg12[%c0_58, %c1080], %127 {strides = array<i32>} : memref<2x1296xf32, #tpu.memory_space<vmem>>, vector<1x36xf32>,
    %129 = vector.extract_strided_slice %66 {offsets = [31, 0], sizes = [1, 36], strides = [1, 1]} : vector<36x36xf32> to vector<1x36xf32>
    %c0_59 = arith.constant 0 : index
    %c1116 = arith.constant 1116 : index
    %130 = vector.load %arg12[%c0_59, %c1116] : memref<2x1296xf32, #tpu.memory_space<vmem>>, vector<1x36xf32>
    tpu.vector_store %arg12[%c0_59, %c1116], %129 {strides = array<i32>} : memref<2x1296xf32, #tpu.memory_space<vmem>>, vector<1x36xf32>,
    %131 = vector.extract_strided_slice %66 {offsets = [32, 0], sizes = [1, 36], strides = [1, 1]} : vector<36x36xf32> to vector<1x36xf32>
    %c0_60 = arith.constant 0 : index
    %c1152 = arith.constant 1152 : index
    %132 = vector.load %arg12[%c0_60, %c1152] : memref<2x1296xf32, #tpu.memory_space<vmem>>, vector<1x36xf32>
    tpu.vector_store %arg12[%c0_60, %c1152], %131 {strides = array<i32>} : memref<2x1296xf32, #tpu.memory_space<vmem>>, vector<1x36xf32>,
    %133 = vector.extract_strided_slice %66 {offsets = [33, 0], sizes = [1, 36], strides = [1, 1]} : vector<36x36xf32> to vector<1x36xf32>
    %c0_61 = arith.constant 0 : index
    %c1188 = arith.constant 1188 : index
    %134 = vector.load %arg12[%c0_61, %c1188] : memref<2x1296xf32, #tpu.memory_space<vmem>>, vector<1x36xf32>
    tpu.vector_store %arg12[%c0_61, %c1188], %133 {strides = array<i32>} : memref<2x1296xf32, #tpu.memory_space<vmem>>, vector<1x36xf32>,
    %135 = vector.extract_strided_slice %66 {offsets = [34, 0], sizes = [1, 36], strides = [1, 1]} : vector<36x36xf32> to vector<1x36xf32>
    %c0_62 = arith.constant 0 : index
    %c1224 = arith.constant 1224 : index
    %136 = vector.load %arg12[%c0_62, %c1224] : memref<2x1296xf32, #tpu.memory_space<vmem>>, vector<1x36xf32>
    tpu.vector_store %arg12[%c0_62, %c1224], %135 {strides = array<i32>} : memref<2x1296xf32, #tpu.memory_space<vmem>>, vector<1x36xf32>,
    %137 = vector.extract_strided_slice %66 {offsets = [35, 0], sizes = [1, 36], strides = [1, 1]} : vector<36x36xf32> to vector<1x36xf32>
    %c0_63 = arith.constant 0 : index
    %c1260 = arith.constant 1260 : index
    %138 = vector.load %arg12[%c0_63, %c1260] : memref<2x1296xf32, #tpu.memory_space<vmem>>, vector<1x36xf32>
    tpu.vector_store %arg12[%c0_63, %c1260], %137 {strides = array<i32>} : memref<2x1296xf32, #tpu.memory_space<vmem>>, vector<1x36xf32>,
    %139 = vector.extract_strided_slice %63 {offsets = [0, 196], sizes = [36, 196], strides = [1, 1]} : vector<36x392xf32> to vector<36x196xf32>
    %c0_64 = arith.constant 0 : index
    %c0_65 = arith.constant 0 : index
    %140 = vector.load %arg5[%c0_64, %c0_65] : memref<196x36xf32, #tpu.memory_space<vmem>>, vector<196x36xf32>
    %cst_66 = arith.constant dense<0.000000e+00> : vector<36x36xf32>
    %141 = tpu.matmul %139, %140, %cst_66 {dimension_numbers = #tpu.dot_dimension_numbers<[1], [0], [0], [1], [0, 0, 1, 1], [], []>} : vector<36x196xf32>, vector<196x36xf32>, vector<36x36xf32> -> vector<36x36xf32>
    %142 = vector.extract_strided_slice %141 {offsets = [0, 0], sizes = [1, 36], strides = [1, 1]} : vector<36x36xf32> to vector<1x36xf32>
    %c1 = arith.constant 1 : index
    %c0_67 = arith.constant 0 : index
    %143 = vector.load %arg12[%c1, %c0_67] : memref<2x1296xf32, #tpu.memory_space<vmem>>, vector<1x36xf32>
    tpu.vector_store %arg12[%c1, %c0_67], %142 {strides = array<i32>} : memref<2x1296xf32, #tpu.memory_space<vmem>>, vector<1x36xf32>,
    %144 = vector.extract_strided_slice %141 {offsets = [1, 0], sizes = [1, 36], strides = [1, 1]} : vector<36x36xf32> to vector<1x36xf32>
    %c1_68 = arith.constant 1 : index
    %c36_69 = arith.constant 36 : index
    %145 = vector.load %arg12[%c1_68, %c36_69] : memref<2x1296xf32, #tpu.memory_space<vmem>>, vector<1x36xf32>
    tpu.vector_store %arg12[%c1_68, %c36_69], %144 {strides = array<i32>} : memref<2x1296xf32, #tpu.memory_space<vmem>>, vector<1x36xf32>,
    %146 = vector.extract_strided_slice %141 {offsets = [2, 0], sizes = [1, 36], strides = [1, 1]} : vector<36x36xf32> to vector<1x36xf32>
    %c1_70 = arith.constant 1 : index
    %c72_71 = arith.constant 72 : index
    %147 = vector.load %arg12[%c1_70, %c72_71] : memref<2x1296xf32, #tpu.memory_space<vmem>>, vector<1x36xf32>
    tpu.vector_store %arg12[%c1_70, %c72_71], %146 {strides = array<i32>} : memref<2x1296xf32, #tpu.memory_space<vmem>>, vector<1x36xf32>,
    %148 = vector.extract_strided_slice %141 {offsets = [3, 0], sizes = [1, 36], strides = [1, 1]} : vector<36x36xf32> to vector<1x36xf32>
    %c1_72 = arith.constant 1 : index
    %c108_73 = arith.constant 108 : index
    %149 = vector.load %arg12[%c1_72, %c108_73] : memref<2x1296xf32, #tpu.memory_space<vmem>>, vector<1x36xf32>
    tpu.vector_store %arg12[%c1_72, %c108_73], %148 {strides = array<i32>} : memref<2x1296xf32, #tpu.memory_space<vmem>>, vector<1x36xf32>,
    %150 = vector.extract_strided_slice %141 {offsets = [4, 0], sizes = [1, 36], strides = [1, 1]} : vector<36x36xf32> to vector<1x36xf32>
    %c1_74 = arith.constant 1 : index
    %c144_75 = arith.constant 144 : index
    %151 = vector.load %arg12[%c1_74, %c144_75] : memref<2x1296xf32, #tpu.memory_space<vmem>>, vector<1x36xf32>
    tpu.vector_store %arg12[%c1_74, %c144_75], %150 {strides = array<i32>} : memref<2x1296xf32, #tpu.memory_space<vmem>>, vector<1x36xf32>,
    %152 = vector.extract_strided_slice %141 {offsets = [5, 0], sizes = [1, 36], strides = [1, 1]} : vector<36x36xf32> to vector<1x36xf32>
    %c1_76 = arith.constant 1 : index
    %c180_77 = arith.constant 180 : index
    %153 = vector.load %arg12[%c1_76, %c180_77] : memref<2x1296xf32, #tpu.memory_space<vmem>>, vector<1x36xf32>
    tpu.vector_store %arg12[%c1_76, %c180_77], %152 {strides = array<i32>} : memref<2x1296xf32, #tpu.memory_space<vmem>>, vector<1x36xf32>,
    %154 = vector.extract_strided_slice %141 {offsets = [6, 0], sizes = [1, 36], strides = [1, 1]} : vector<36x36xf32> to vector<1x36xf32>
    %c1_78 = arith.constant 1 : index
    %c216_79 = arith.constant 216 : index
    %155 = vector.load %arg12[%c1_78, %c216_79] : memref<2x1296xf32, #tpu.memory_space<vmem>>, vector<1x36xf32>
    tpu.vector_store %arg12[%c1_78, %c216_79], %154 {strides = array<i32>} : memref<2x1296xf32, #tpu.memory_space<vmem>>, vector<1x36xf32>,
    %156 = vector.extract_strided_slice %141 {offsets = [7, 0], sizes = [1, 36], strides = [1, 1]} : vector<36x36xf32> to vector<1x36xf32>
    %c1_80 = arith.constant 1 : index
    %c252_81 = arith.constant 252 : index
    %157 = vector.load %arg12[%c1_80, %c252_81] : memref<2x1296xf32, #tpu.memory_space<vmem>>, vector<1x36xf32>
    tpu.vector_store %arg12[%c1_80, %c252_81], %156 {strides = array<i32>} : memref<2x1296xf32, #tpu.memory_space<vmem>>, vector<1x36xf32>,
    %158 = vector.extract_strided_slice %141 {offsets = [8, 0], sizes = [1, 36], strides = [1, 1]} : vector<36x36xf32> to vector<1x36xf32>
    %c1_82 = arith.constant 1 : index
    %c288_83 = arith.constant 288 : index
    %159 = vector.load %arg12[%c1_82, %c288_83] : memref<2x1296xf32, #tpu.memory_space<vmem>>, vector<1x36xf32>
    tpu.vector_store %arg12[%c1_82, %c288_83], %158 {strides = array<i32>} : memref<2x1296xf32, #tpu.memory_space<vmem>>, vector<1x36xf32>,
    %160 = vector.extract_strided_slice %141 {offsets = [9, 0], sizes = [1, 36], strides = [1, 1]} : vector<36x36xf32> to vector<1x36xf32>
    %c1_84 = arith.constant 1 : index
    %c324_85 = arith.constant 324 : index
    %161 = vector.load %arg12[%c1_84, %c324_85] : memref<2x1296xf32, #tpu.memory_space<vmem>>, vector<1x36xf32>
    tpu.vector_store %arg12[%c1_84, %c324_85], %160 {strides = array<i32>} : memref<2x1296xf32, #tpu.memory_space<vmem>>, vector<1x36xf32>,
    %162 = vector.extract_strided_slice %141 {offsets = [10, 0], sizes = [1, 36], strides = [1, 1]} : vector<36x36xf32> to vector<1x36xf32>
    %c1_86 = arith.constant 1 : index
    %c360_87 = arith.constant 360 : index
    %163 = vector.load %arg12[%c1_86, %c360_87] : memref<2x1296xf32, #tpu.memory_space<vmem>>, vector<1x36xf32>
    tpu.vector_store %arg12[%c1_86, %c360_87], %162 {strides = array<i32>} : memref<2x1296xf32, #tpu.memory_space<vmem>>, vector<1x36xf32>,
    %164 = vector.extract_strided_slice %141 {offsets = [11, 0], sizes = [1, 36], strides = [1, 1]} : vector<36x36xf32> to vector<1x36xf32>
    %c1_88 = arith.constant 1 : index
    %c396_89 = arith.constant 396 : index
    %165 = vector.load %arg12[%c1_88, %c396_89] : memref<2x1296xf32, #tpu.memory_space<vmem>>, vector<1x36xf32>
    tpu.vector_store %arg12[%c1_88, %c396_89], %164 {strides = array<i32>} : memref<2x1296xf32, #tpu.memory_space<vmem>>, vector<1x36xf32>,
    %166 = vector.extract_strided_slice %141 {offsets = [12, 0], sizes = [1, 36], strides = [1, 1]} : vector<36x36xf32> to vector<1x36xf32>
    %c1_90 = arith.constant 1 : index
    %c432_91 = arith.constant 432 : index
    %167 = vector.load %arg12[%c1_90, %c432_91] : memref<2x1296xf32, #tpu.memory_space<vmem>>, vector<1x36xf32>
    tpu.vector_store %arg12[%c1_90, %c432_91], %166 {strides = array<i32>} : memref<2x1296xf32, #tpu.memory_space<vmem>>, vector<1x36xf32>,
    %168 = vector.extract_strided_slice %141 {offsets = [13, 0], sizes = [1, 36], strides = [1, 1]} : vector<36x36xf32> to vector<1x36xf32>
    %c1_92 = arith.constant 1 : index
    %c468_93 = arith.constant 468 : index
    %169 = vector.load %arg12[%c1_92, %c468_93] : memref<2x1296xf32, #tpu.memory_space<vmem>>, vector<1x36xf32>
    tpu.vector_store %arg12[%c1_92, %c468_93], %168 {strides = array<i32>} : memref<2x1296xf32, #tpu.memory_space<vmem>>, vector<1x36xf32>,
    %170 = vector.extract_strided_slice %141 {offsets = [14, 0], sizes = [1, 36], strides = [1, 1]} : vector<36x36xf32> to vector<1x36xf32>
    %c1_94 = arith.constant 1 : index
    %c504_95 = arith.constant 504 : index
    %171 = vector.load %arg12[%c1_94, %c504_95] : memref<2x1296xf32, #tpu.memory_space<vmem>>, vector<1x36xf32>
    tpu.vector_store %arg12[%c1_94, %c504_95], %170 {strides = array<i32>} : memref<2x1296xf32, #tpu.memory_space<vmem>>, vector<1x36xf32>,
    %172 = vector.extract_strided_slice %141 {offsets = [15, 0], sizes = [1, 36], strides = [1, 1]} : vector<36x36xf32> to vector<1x36xf32>
    %c1_96 = arith.constant 1 : index
    %c540_97 = arith.constant 540 : index
    %173 = vector.load %arg12[%c1_96, %c540_97] : memref<2x1296xf32, #tpu.memory_space<vmem>>, vector<1x36xf32>
    tpu.vector_store %arg12[%c1_96, %c540_97], %172 {strides = array<i32>} : memref<2x1296xf32, #tpu.memory_space<vmem>>, vector<1x36xf32>,
    %174 = vector.extract_strided_slice %141 {offsets = [16, 0], sizes = [1, 36], strides = [1, 1]} : vector<36x36xf32> to vector<1x36xf32>
    %c1_98 = arith.constant 1 : index
    %c576_99 = arith.constant 576 : index
    %175 = vector.load %arg12[%c1_98, %c576_99] : memref<2x1296xf32, #tpu.memory_space<vmem>>, vector<1x36xf32>
    tpu.vector_store %arg12[%c1_98, %c576_99], %174 {strides = array<i32>} : memref<2x1296xf32, #tpu.memory_space<vmem>>, vector<1x36xf32>,
    %176 = vector.extract_strided_slice %141 {offsets = [17, 0], sizes = [1, 36], strides = [1, 1]} : vector<36x36xf32> to vector<1x36xf32>
    %c1_100 = arith.constant 1 : index
    %c612_101 = arith.constant 612 : index
    %177 = vector.load %arg12[%c1_100, %c612_101] : memref<2x1296xf32, #tpu.memory_space<vmem>>, vector<1x36xf32>
    tpu.vector_store %arg12[%c1_100, %c612_101], %176 {strides = array<i32>} : memref<2x1296xf32, #tpu.memory_space<vmem>>, vector<1x36xf32>,
    %178 = vector.extract_strided_slice %141 {offsets = [18, 0], sizes = [1, 36], strides = [1, 1]} : vector<36x36xf32> to vector<1x36xf32>
    %c1_102 = arith.constant 1 : index
    %c648_103 = arith.constant 648 : index
    %179 = vector.load %arg12[%c1_102, %c648_103] : memref<2x1296xf32, #tpu.memory_space<vmem>>, vector<1x36xf32>
    tpu.vector_store %arg12[%c1_102, %c648_103], %178 {strides = array<i32>} : memref<2x1296xf32, #tpu.memory_space<vmem>>, vector<1x36xf32>,
    %180 = vector.extract_strided_slice %141 {offsets = [19, 0], sizes = [1, 36], strides = [1, 1]} : vector<36x36xf32> to vector<1x36xf32>
    %c1_104 = arith.constant 1 : index
    %c684_105 = arith.constant 684 : index
    %181 = vector.load %arg12[%c1_104, %c684_105] : memref<2x1296xf32, #tpu.memory_space<vmem>>, vector<1x36xf32>
    tpu.vector_store %arg12[%c1_104, %c684_105], %180 {strides = array<i32>} : memref<2x1296xf32, #tpu.memory_space<vmem>>, vector<1x36xf32>,
    %182 = vector.extract_strided_slice %141 {offsets = [20, 0], sizes = [1, 36], strides = [1, 1]} : vector<36x36xf32> to vector<1x36xf32>
    %c1_106 = arith.constant 1 : index
    %c720_107 = arith.constant 720 : index
    %183 = vector.load %arg12[%c1_106, %c720_107] : memref<2x1296xf32, #tpu.memory_space<vmem>>, vector<1x36xf32>
    tpu.vector_store %arg12[%c1_106, %c720_107], %182 {strides = array<i32>} : memref<2x1296xf32, #tpu.memory_space<vmem>>, vector<1x36xf32>,
    %184 = vector.extract_strided_slice %141 {offsets = [21, 0], sizes = [1, 36], strides = [1, 1]} : vector<36x36xf32> to vector<1x36xf32>
    %c1_108 = arith.constant 1 : index
    %c756_109 = arith.constant 756 : index
    %185 = vector.load %arg12[%c1_108, %c756_109] : memref<2x1296xf32, #tpu.memory_space<vmem>>, vector<1x36xf32>
    tpu.vector_store %arg12[%c1_108, %c756_109], %184 {strides = array<i32>} : memref<2x1296xf32, #tpu.memory_space<vmem>>, vector<1x36xf32>,
    %186 = vector.extract_strided_slice %141 {offsets = [22, 0], sizes = [1, 36], strides = [1, 1]} : vector<36x36xf32> to vector<1x36xf32>
    %c1_110 = arith.constant 1 : index
    %c792_111 = arith.constant 792 : index
    %187 = vector.load %arg12[%c1_110, %c792_111] : memref<2x1296xf32, #tpu.memory_space<vmem>>, vector<1x36xf32>
    tpu.vector_store %arg12[%c1_110, %c792_111], %186 {strides = array<i32>} : memref<2x1296xf32, #tpu.memory_space<vmem>>, vector<1x36xf32>,
    %188 = vector.extract_strided_slice %141 {offsets = [23, 0], sizes = [1, 36], strides = [1, 1]} : vector<36x36xf32> to vector<1x36xf32>
    %c1_112 = arith.constant 1 : index
    %c828_113 = arith.constant 828 : index
    %189 = vector.load %arg12[%c1_112, %c828_113] : memref<2x1296xf32, #tpu.memory_space<vmem>>, vector<1x36xf32>
    tpu.vector_store %arg12[%c1_112, %c828_113], %188 {strides = array<i32>} : memref<2x1296xf32, #tpu.memory_space<vmem>>, vector<1x36xf32>,
    %190 = vector.extract_strided_slice %141 {offsets = [24, 0], sizes = [1, 36], strides = [1, 1]} : vector<36x36xf32> to vector<1x36xf32>
    %c1_114 = arith.constant 1 : index
    %c864_115 = arith.constant 864 : index
    %191 = vector.load %arg12[%c1_114, %c864_115] : memref<2x1296xf32, #tpu.memory_space<vmem>>, vector<1x36xf32>
    tpu.vector_store %arg12[%c1_114, %c864_115], %190 {strides = array<i32>} : memref<2x1296xf32, #tpu.memory_space<vmem>>, vector<1x36xf32>,
    %192 = vector.extract_strided_slice %141 {offsets = [25, 0], sizes = [1, 36], strides = [1, 1]} : vector<36x36xf32> to vector<1x36xf32>
    %c1_116 = arith.constant 1 : index
    %c900_117 = arith.constant 900 : index
    %193 = vector.load %arg12[%c1_116, %c900_117] : memref<2x1296xf32, #tpu.memory_space<vmem>>, vector<1x36xf32>
    tpu.vector_store %arg12[%c1_116, %c900_117], %192 {strides = array<i32>} : memref<2x1296xf32, #tpu.memory_space<vmem>>, vector<1x36xf32>,
    %194 = vector.extract_strided_slice %141 {offsets = [26, 0], sizes = [1, 36], strides = [1, 1]} : vector<36x36xf32> to vector<1x36xf32>
    %c1_118 = arith.constant 1 : index
    %c936_119 = arith.constant 936 : index
    %195 = vector.load %arg12[%c1_118, %c936_119] : memref<2x1296xf32, #tpu.memory_space<vmem>>, vector<1x36xf32>
    tpu.vector_store %arg12[%c1_118, %c936_119], %194 {strides = array<i32>} : memref<2x1296xf32, #tpu.memory_space<vmem>>, vector<1x36xf32>,
    %196 = vector.extract_strided_slice %141 {offsets = [27, 0], sizes = [1, 36], strides = [1, 1]} : vector<36x36xf32> to vector<1x36xf32>
    %c1_120 = arith.constant 1 : index
    %c972_121 = arith.constant 972 : index
    %197 = vector.load %arg12[%c1_120, %c972_121] : memref<2x1296xf32, #tpu.memory_space<vmem>>, vector<1x36xf32>
    tpu.vector_store %arg12[%c1_120, %c972_121], %196 {strides = array<i32>} : memref<2x1296xf32, #tpu.memory_space<vmem>>, vector<1x36xf32>,
    %198 = vector.extract_strided_slice %141 {offsets = [28, 0], sizes = [1, 36], strides = [1, 1]} : vector<36x36xf32> to vector<1x36xf32>
    %c1_122 = arith.constant 1 : index
    %c1008_123 = arith.constant 1008 : index
    %199 = vector.load %arg12[%c1_122, %c1008_123] : memref<2x1296xf32, #tpu.memory_space<vmem>>, vector<1x36xf32>
    tpu.vector_store %arg12[%c1_122, %c1008_123], %198 {strides = array<i32>} : memref<2x1296xf32, #tpu.memory_space<vmem>>, vector<1x36xf32>,
    %200 = vector.extract_strided_slice %141 {offsets = [29, 0], sizes = [1, 36], strides = [1, 1]} : vector<36x36xf32> to vector<1x36xf32>
    %c1_124 = arith.constant 1 : index
    %c1044_125 = arith.constant 1044 : index
    %201 = vector.load %arg12[%c1_124, %c1044_125] : memref<2x1296xf32, #tpu.memory_space<vmem>>, vector<1x36xf32>
    tpu.vector_store %arg12[%c1_124, %c1044_125], %200 {strides = array<i32>} : memref<2x1296xf32, #tpu.memory_space<vmem>>, vector<1x36xf32>,
    %202 = vector.extract_strided_slice %141 {offsets = [30, 0], sizes = [1, 36], strides = [1, 1]} : vector<36x36xf32> to vector<1x36xf32>
    %c1_126 = arith.constant 1 : index
    %c1080_127 = arith.constant 1080 : index
    %203 = vector.load %arg12[%c1_126, %c1080_127] : memref<2x1296xf32, #tpu.memory_space<vmem>>, vector<1x36xf32>
    tpu.vector_store %arg12[%c1_126, %c1080_127], %202 {strides = array<i32>} : memref<2x1296xf32, #tpu.memory_space<vmem>>, vector<1x36xf32>,
    %204 = vector.extract_strided_slice %141 {offsets = [31, 0], sizes = [1, 36], strides = [1, 1]} : vector<36x36xf32> to vector<1x36xf32>
    %c1_128 = arith.constant 1 : index
    %c1116_129 = arith.constant 1116 : index
    %205 = vector.load %arg12[%c1_128, %c1116_129] : memref<2x1296xf32, #tpu.memory_space<vmem>>, vector<1x36xf32>
    tpu.vector_store %arg12[%c1_128, %c1116_129], %204 {strides = array<i32>} : memref<2x1296xf32, #tpu.memory_space<vmem>>, vector<1x36xf32>,
    %206 = vector.extract_strided_slice %141 {offsets = [32, 0], sizes = [1, 36], strides = [1, 1]} : vector<36x36xf32> to vector<1x36xf32>
    %c1_130 = arith.constant 1 : index
    %c1152_131 = arith.constant 1152 : index
    %207 = vector.load %arg12[%c1_130, %c1152_131] : memref<2x1296xf32, #tpu.memory_space<vmem>>, vector<1x36xf32>
    tpu.vector_store %arg12[%c1_130, %c1152_131], %206 {strides = array<i32>} : memref<2x1296xf32, #tpu.memory_space<vmem>>, vector<1x36xf32>,
    %208 = vector.extract_strided_slice %141 {offsets = [33, 0], sizes = [1, 36], strides = [1, 1]} : vector<36x36xf32> to vector<1x36xf32>
    %c1_132 = arith.constant 1 : index
    %c1188_133 = arith.constant 1188 : index
    %209 = vector.load %arg12[%c1_132, %c1188_133] : memref<2x1296xf32, #tpu.memory_space<vmem>>, vector<1x36xf32>
    tpu.vector_store %arg12[%c1_132, %c1188_133], %208 {strides = array<i32>} : memref<2x1296xf32, #tpu.memory_space<vmem>>, vector<1x36xf32>,
    %210 = vector.extract_strided_slice %141 {offsets = [34, 0], sizes = [1, 36], strides = [1, 1]} : vector<36x36xf32> to vector<1x36xf32>
    %c1_134 = arith.constant 1 : index
    %c1224_135 = arith.constant 1224 : index
    %211 = vector.load %arg12[%c1_134, %c1224_135] : memref<2x1296xf32, #tpu.memory_space<vmem>>, vector<1x36xf32>
    tpu.vector_store %arg12[%c1_134, %c1224_135], %210 {strides = array<i32>} : memref<2x1296xf32, #tpu.memory_space<vmem>>, vector<1x36xf32>,
    %212 = vector.extract_strided_slice %141 {offsets = [35, 0], sizes = [1, 36], strides = [1, 1]} : vector<36x36xf32> to vector<1x36xf32>
    %c1_136 = arith.constant 1 : index
    %c1260_137 = arith.constant 1260 : index
    %213 = vector.load %arg12[%c1_136, %c1260_137] : memref<2x1296xf32, #tpu.memory_space<vmem>>, vector<1x36xf32>
    tpu.vector_store %arg12[%c1_136, %c1260_137], %212 {strides = array<i32>} : memref<2x1296xf32, #tpu.memory_space<vmem>>, vector<1x36xf32>,
    tpu.wait_dma2 semaphore(%arg14 : memref<!tpu.dma_semaphore, #tpu.memory_space<semaphore_mem>>) src(%arg6 : memref<1296x128xf32, #tpu.memory_space<any>>) dst(%arg13 : memref<1296x128xf32, #tpu.memory_space<vmem>>)
    %c0_138 = arith.constant 0 : index
    %c0_139 = arith.constant 0 : index
    %214 = vector.load %arg12[%c0_138, %c0_139] : memref<2x1296xf32, #tpu.memory_space<vmem>>, vector<2x1296xf32>
    %c0_140 = arith.constant 0 : index
    %c0_141 = arith.constant 0 : index
    %215 = vector.load %arg13[%c0_140, %c0_141] : memref<1296x128xf32, #tpu.memory_space<vmem>>, vector<1296x128xf32>
    %cst_142 = arith.constant dense<0.000000e+00> : vector<2x128xf32>
    %216 = tpu.matmul %214, %215, %cst_142 {dimension_numbers = #tpu.dot_dimension_numbers<[1], [0], [0], [1], [0, 0, 1, 1], [], []>} : vector<2x1296xf32>, vector<1296x128xf32>, vector<2x128xf32> -> vector<2x128xf32>
    %c0_143 = arith.constant 0 : index
    %c0_144 = arith.constant 0 : index
    %217 = vector.load %arg7[%c0_143, %c0_144] : memref<1x128xf32, #tpu.memory_space<vmem>>, vector<1x128xf32>
    %218 = vector.broadcast %217 : vector<1x128xf32> to vector<2x128xf32>
    %219 = arith.addf %216, %218 : vector<2x128xf32>
    %cst_145 = arith.constant 0.000000e+00 : f32
    %220 = vector.broadcast %cst_145 : f32 to vector<2x128xf32>
    %221 = arith.maximumf %219, %220 : vector<2x128xf32>
    %c0_146 = arith.constant 0 : index
    %c0_147 = arith.constant 0 : index
    %222 = vector.load %arg8[%c0_146, %c0_147] : memref<128x128xf32, #tpu.memory_space<vmem>>, vector<128x128xf32>
    %cst_148 = arith.constant dense<0.000000e+00> : vector<2x128xf32>
    %223 = tpu.matmul %221, %222, %cst_148 {dimension_numbers = #tpu.dot_dimension_numbers<[1], [0], [0], [1], [0, 0, 1, 1], [], []>} : vector<2x128xf32>, vector<128x128xf32>, vector<2x128xf32> -> vector<2x128xf32>
    %c0_149 = arith.constant 0 : index
    %c0_150 = arith.constant 0 : index
    %224 = vector.load %arg9[%c0_149, %c0_150] : memref<1x128xf32, #tpu.memory_space<vmem>>, vector<1x128xf32>
    %225 = vector.broadcast %224 : vector<1x128xf32> to vector<2x128xf32>
    %226 = arith.addf %223, %225 : vector<2x128xf32>
    %cst_151 = arith.constant 0.000000e+00 : f32
    %227 = vector.broadcast %cst_151 : f32 to vector<2x128xf32>
    %228 = arith.maximumf %226, %227 : vector<2x128xf32>
    %c0_152 = arith.constant 0 : index
    %c0_153 = arith.constant 0 : index
    %229 = vector.load %arg10[%c0_152, %c0_153] : memref<2x128xf32, #tpu.memory_space<vmem>>, vector<2x128xf32>
    tpu.vector_store %arg10[%c0_152, %c0_153], %228 {strides = array<i32>} : memref<2x128xf32, #tpu.memory_space<vmem>>, vector<2x128xf32>,
    return
  }
}

</mosaic_0001>

<bundles_post_ra>
// kernel: cnn_forward.1
= control target key start
LH: loop header
LB: loop body
LE: loop exit
PB: predicated region body
PF: predicated region fallthrough
CT: control target
= control target key end

     0   :  { %15 = vsyncpa [#allocation7], 0  ;;  %s7900_s0 = inlined_call_operand.vmem [shape: f32[75,1568], index: 0, kind: input, shape index: {}]   ;;  %s7901_s1 = inlined_call_operand.vmem [shape: f32[16,75], index: 1, kind: input, shape index: {}]   ;;  %s7902_s2 = inlined_call_operand.vmem [shape: f32[16,1], index: 2, kind: input, shape index: {}]   ;;  %s7903_s3 = inlined_call_operand.vmem [shape: f32[36,144], index: 3, kind: input, shape index: {}]   ;;  %s7904_s4 = inlined_call_operand.vmem [shape: f32[36,1], index: 4, kind: input, shape index: {}]   ;;  %s7905_s5 = inlined_call_operand.vmem [shape: f32[196,36], index: 5, kind: input, shape index: {}]   ;;  %s7906_s6 = inlined_call_operand.vmem [shape: f32[1296,128], index: 6, kind: input, shape index: {}]   ;;  %s7907_s7 = inlined_call_operand.vmem [shape: f32[1,128], index: 7, kind: input, shape index: {}]   ;;  %s7908_s8 = inlined_call_operand.vmem [shape: f32[128,128], index: 8, kind: input, shape index: {}]   ;;  %s7909_s9 = inlined_call_operand.vmem [shape: f32[1,128], index: 9, kind: input, shape index: {}]   ;;  %s7910_s10 = inlined_call_operand.hbm [shape: f32[2,128], index: 10, kind: output, shape index: {}]  }
   0x1   :  { %v5028_v0 = vld [vmem:[%s7906_s6] sm:$0xff]  ;;  %v5033_v1 = vld [vmem:[%s7906_s6 + $0x8] sm:$0xff]  ;;  %v5038_v2 = vld [vmem:[%s7906_s6 + $0x10] sm:$0xff] }
   0x2   :  { %7946 = vst [vmem:[#allocation11_spill] sm:$0xff] %v5038_v2  ;;  %v5043_v3 = vld [vmem:[%s7906_s6 + $0x18] sm:$0xff]  ;;  %v5048_v4 = vld [vmem:[%s7906_s6 + $0x20] sm:$0xff]  ;;  %v5053_v5 = vld [vmem:[%s7906_s6 + $0x28] sm:$0xff] }
   0x3   :  { %7947 = vst [vmem:[#allocation12_spill] sm:$0xff] %v5043_v3  ;;  %7948 = vst [vmem:[#allocation13_spill] sm:$0xff] %v5048_v4  ;;  %v5058_v6 = vld [vmem:[%s7906_s6 + $0x30] sm:$0xff]  ;;  %v5063_v7 = vld [vmem:[%s7906_s6 + $0x38] sm:$0xff] }
   0x4   :  { %7949 = vst [vmem:[#allocation14_spill] sm:$0xff] %v5053_v5  ;;  %7950 = vst [vmem:[#allocation15_spill] sm:$0xff] %v5058_v6  ;;  %v5068_v8 = vld [vmem:[%s7906_s6 + $0x40] sm:$0xff]  ;;  %v5073_v9 = vld [vmem:[%s7906_s6 + $0x48] sm:$0xff] }
   0x5   :  { %7951 = vst [vmem:[#allocation16_spill] sm:$0xff] %v5063_v7  ;;  %7952 = vst [vmem:[#allocation17_spill] sm:$0xff] %v5068_v8  ;;  %v5078_v10 = vld [vmem:[%s7906_s6 + $0x50] sm:$0xff]  ;;  %v5083_v11 = vld [vmem:[%s7906_s6 + $0x58] sm:$0xff] }
   0x6   :  { %7953 = vst [vmem:[#allocation18_spill] sm:$0xff] %v5073_v9  ;;  %7954 = vst [vmem:[#allocation19_spill] sm:$0xff] %v5078_v10  ;;  %v5088_v12 = vld [vmem:[%s7906_s6 + $0x60] sm:$0xff]  ;;  %v5093_v13 = vld [vmem:[%s7906_s6 + $0x68] sm:$0xff] }
   0x7   :  { %7955 = vst [vmem:[#allocation20_spill] sm:$0xff] %v5083_v11  ;;  %7956 = vst [vmem:[#allocation21_spill] sm:$0xff] %v5088_v12  ;;  %v5098_v14 = vld [vmem:[%s7906_s6 + $0x70] sm:$0xff]  ;;  %v5103_v15 = vld [vmem:[%s7906_s6 + $0x78] sm:$0xff] }
   0x8   :  { %7957 = vst [vmem:[#allocation22_spill] sm:$0xff] %v5093_v13  ;;  %7958 = vst [vmem:[#allocation23_spill] sm:$0xff] %v5098_v14  ;;  %v5108_v16 = vld [vmem:[%s7906_s6 + $0x80] sm:$0xff]  ;;  %v5113_v17 = vld [vmem:[%s7906_s6 + $0x88] sm:$0xff] }
   0x9   :  { %7959 = vst [vmem:[#allocation24_spill] sm:$0xff] %v5103_v15  ;;  %v5118_v18 = vld [vmem:[%s7906_s6 + $0x90] sm:$0xff]  ;;  %v5123_v19 = vld [vmem:[%s7906_s6 + $0x98] sm:$0xff]  ;;  %v5128_v20 = vld [vmem:[%s7906_s6 + $0xa0] sm:$0xff] }
   0xa   :  { %7960 = vst [vmem:[#allocation25_spill] sm:$0xff] %v5123_v19  ;;  %7961 = vst [vmem:[#allocation26_spill] sm:$0xff] %v5128_v20  ;;  %v5133_v21 = vld [vmem:[%s7906_s6 + $0xa8] sm:$0xff]  ;;  %v5138_v22 = vld [vmem:[%s7906_s6 + $0xb0] sm:$0xff] }
   0xb   :  { %7962 = vst [vmem:[#allocation27_spill] sm:$0xff] %v5133_v21  ;;  %7963 = vst [vmem:[#allocation28_spill] sm:$0xff] %v5138_v22  ;;  %v5143_v23 = vld [vmem:[%s7906_s6 + $0xb8] sm:$0xff]  ;;  %v5148_v24 = vld [vmem:[%s7906_s6 + $0xc0] sm:$0xff] }
   0xc   :  { %7964 = vst [vmem:[#allocation29_spill] sm:$0xff] %v5143_v23  ;;  %7965 = vst [vmem:[#allocation30_spill] sm:$0xff] %v5148_v24  ;;  %v5153_v25 = vld [vmem:[%s7906_s6 + $0xc8] sm:$0xff]  ;;  %v5158_v26 = vld [vmem:[%s7906_s6 + $0xd0] sm:$0xff] }
   0xd   :  { %7966 = vst [vmem:[#allocation31_spill] sm:$0xff] %v5153_v25  ;;  %7967 = vst [vmem:[#allocation32_spill] sm:$0xff] %v5158_v26  ;;  %v5163_v27 = vld [vmem:[%s7906_s6 + $0xd8] sm:$0xff]  ;;  %v5168_v28 = vld [vmem:[%s7906_s6 + $0xe0] sm:$0xff] }
   0xe   :  { %7968 = vst [vmem:[#allocation33_spill] sm:$0xff] %v5163_v27  ;;  %7969 = vst [vmem:[#allocation34_spill] sm:$0xff] %v5168_v28  ;;  %v5173_v29 = vld [vmem:[%s7906_s6 + $0xe8] sm:$0xff]  ;;  %v5178_v30 = vld [vmem:[%s7906_s6 + $0xf0] sm:$0xff] }
   0xf   :  { %7970 = vst [vmem:[#allocation35_spill] sm:$0xff] %v5173_v29  ;;  %7971 = vst [vmem:[#allocation36_spill] sm:$0xff] %v5178_v30  ;;  %v5183_v31 = vld [vmem:[%s7906_s6 + $0xf8] sm:$0xff]  ;;  %v5188_v32 = vld [vmem:[%s7906_s6 + $0x100] sm:$0xff] }
  0x10   :  { %7972 = vst [vmem:[#allocation37_spill] sm:$0xff] %v5183_v31  ;;  %v5193_v33 = vld [vmem:[%s7906_s6 + $0x108] sm:$0xff]  ;;  %v5198_v34 = vld [vmem:[%s7906_s6 + $0x110] sm:$0xff]  ;;  %v5203_v35 = vld [vmem:[%s7906_s6 + $0x118] sm:$0xff] }
  0x11   :  { %7973 = vst [vmem:[#allocation38_spill] sm:$0xff] %v5198_v34  ;;  %7974 = vst [vmem:[#allocation39_spill] sm:$0xff] %v5203_v35  ;;  %v5208_v36 = vld [vmem:[%s7906_s6 + $0x120] sm:$0xff]  ;;  %v5213_v37 = vld [vmem:[%s7906_s6 + $0x128] sm:$0xff] }
  0x12   :  { %7975 = vst [vmem:[#allocation40_spill] sm:$0xff] %v5208_v36  ;;  %7976 = vst [vmem:[#allocation41_spill] sm:$0xff] %v5213_v37  ;;  %v5218_v38 = vld [vmem:[%s7906_s6 + $0x130] sm:$0xff]  ;;  %v5223_v39 = vld [vmem:[%s7906_s6 + $0x138] sm:$0xff] }
  0x13   :  { %7977 = vst [vmem:[#allocation42_spill] sm:$0xff] %v5218_v38  ;;  %7978 = vst [vmem:[#allocation43_spill] sm:$0xff] %v5223_v39  ;;  %v5228_v40 = vld [vmem:[%s7906_s6 + $0x140] sm:$0xff]  ;;  %v5233_v41 = vld [vmem:[%s7906_s6 + $0x148] sm:$0xff] }
  0x14   :  { %7979 = vst [vmem:[#allocation44_spill] sm:$0xff] %v5228_v40  ;;  %7980 = vst [vmem:[#allocation45_spill] sm:$0xff] %v5233_v41  ;;  %v5238_v42 = vld [vmem:[%s7906_s6 + $0x150] sm:$0xff]  ;;  %v5243_v43 = vld [vmem:[%s7906_s6 + $0x158] sm:$0xff] }
  0x15   :  { %7981 = vst [vmem:[#allocation46_spill] sm:$0xff] %v5238_v42  ;;  %7982 = vst [vmem:[#allocation47_spill] sm:$0xff] %v5243_v43  ;;  %v5248_v44 = vld [vmem:[%s7906_s6 + $0x160] sm:$0xff]  ;;  %v5253_v45 = vld [vmem:[%s7906_s6 + $0x168] sm:$0xff] }
  0x16   :  { %7983 = vst [vmem:[#allocation48_spill] sm:$0xff] %v5248_v44  ;;  %7984 = vst [vmem:[#allocation49_spill] sm:$0xff] %v5253_v45  ;;  %v5258_v46 = vld [vmem:[%s7906_s6 + $0x170] sm:$0xff]  ;;  %v5263_v47 = vld [vmem:[%s7906_s6 + $0x178] sm:$0xff] }
  0x17   :  { %7985 = vst [vmem:[#allocation50_spill] sm:$0xff] %v5258_v46  ;;  %7986 = vst [vmem:[#allocation51_spill] sm:$0xff] %v5263_v47  ;;  %v5268_v48 = vld [vmem:[%s7906_s6 + $0x180] sm:$0xff]  ;;  %v5273_v49 = vld [vmem:[%s7906_s6 + $0x188] sm:$0xff] }
  0x18   :  { %v5278_v50 = vld [vmem:[%s7906_s6 + $0x190] sm:$0xff]  ;;  %v5283_v51 = vld [vmem:[%s7906_s6 + $0x198] sm:$0xff]  ;;  %v5288_v52 = vld [vmem:[%s7906_s6 + $0x1a0] sm:$0xff] }
  0x19   :  { %7987 = vst [vmem:[#allocation52_spill] sm:$0xff] %v5278_v50  ;;  %7988 = vst [vmem:[#allocation53_spill] sm:$0xff] %v5283_v51  ;;  %v5293_v53 = vld [vmem:[%s7906_s6 + $0x1a8] sm:$0xff]  ;;  %v5298_v54 = vld [vmem:[%s7906_s6 + $0x1b0] sm:$0xff] }
  0x1a   :  { %7989 = vst [vmem:[#allocation54_spill] sm:$0xff] %v5288_v52  ;;  %7990 = vst [vmem:[#allocation55_spill] sm:$0xff] %v5293_v53  ;;  %v5303_v55 = vld [vmem:[%s7906_s6 + $0x1b8] sm:$0xff]  ;;  %v5308_v56 = vld [vmem:[%s7906_s6 + $0x1c0] sm:$0xff] }
  0x1b   :  { %7991 = vst [vmem:[#allocation56_spill] sm:$0xff] %v5298_v54  ;;  %7992 = vst [vmem:[#allocation57_spill] sm:$0xff] %v5303_v55  ;;  %v5313_v57 = vld [vmem:[%s7906_s6 + $0x1c8] sm:$0xff]  ;;  %v5318_v58 = vld [vmem:[%s7906_s6 + $0x1d0] sm:$0xff] }
  0x1c   :  { %7993 = vst [vmem:[#allocation58_spill] sm:$0xff] %v5308_v56  ;;  %7994 = vst [vmem:[#allocation59_spill] sm:$0xff] %v5313_v57  ;;  %v5323_v59 = vld [vmem:[%s7906_s6 + $0x1d8] sm:$0xff]  ;;  %v5328_v60 = vld [vmem:[%s7906_s6 + $0x1e0] sm:$0xff] }
  0x1d   :  { %7995 = vst [vmem:[#allocation60_spill] sm:$0xff] %v5318_v58  ;;  %7996 = vst [vmem:[#allocation61_spill] sm:$0xff] %v5323_v59  ;;  %v5333_v61 = vld [vmem:[%s7906_s6 + $0x1e8] sm:$0xff]  ;;  %v5338_v62 = vld [vmem:[%s7906_s6 + $0x1f0] sm:$0xff] }
  0x1e   :  { %7997 = vst [vmem:[#allocation62_spill] sm:$0xff] %v5328_v60  ;;  %7998 = vst [vmem:[#allocation63_spill] sm:$0xff] %v5333_v61  ;;  %v5343_v63 = vld [vmem:[%s7906_s6 + $0x1f8] sm:$0xff]  ;;  %v5348_v47 = vld [vmem:[%s7906_s6 + $0x200] sm:$0xff] }
  0x1f   :  { %7999 = vst [vmem:[#allocation64_spill] sm:$0xff] %v5338_v62  ;;  %8000 = vst [vmem:[#allocation65_spill] sm:$0xff] %v5343_v63  ;;  %v5353_v46 = vld [vmem:[%s7906_s6 + $0x208] sm:$0xff]  ;;  %v5358_v15 = vld [vmem:[%s7906_s6 + $0x210] sm:$0xff] }
  0x20   :  { %8001 = vst [vmem:[#allocation66_spill] sm:$0xff] %v5348_v47  ;;  %8002 = vst [vmem:[#allocation67_spill] sm:$0xff] %v5353_v46  ;;  %v5363_v14 = vld [vmem:[%s7906_s6 + $0x218] sm:$0xff]  ;;  %v5368_v63 = vld [vmem:[%s7906_s6 + $0x220] sm:$0xff] }
  0x21   :  { %8003 = vst [vmem:[#allocation68_spill] sm:$0xff] %v5358_v15  ;;  %8004 = vst [vmem:[#allocation69_spill] sm:$0xff] %v5363_v14  ;;  %v5373_v47 = vld [vmem:[%s7906_s6 + $0x228] sm:$0xff]  ;;  %v5378_v46 = vld [vmem:[%s7906_s6 + $0x230] sm:$0xff] }
  0x22   :  { %8005 = vst [vmem:[#allocation70_spill] sm:$0xff] %v5368_v63  ;;  %8006 = vst [vmem:[#allocation71_spill] sm:$0xff] %v5373_v47  ;;  %v5383_v15 = vld [vmem:[%s7906_s6 + $0x238] sm:$0xff]  ;;  %v5388_v14 = vld [vmem:[%s7906_s6 + $0x240] sm:$0xff] }
  0x23   :  { %8007 = vst [vmem:[#allocation72_spill] sm:$0xff] %v5378_v46  ;;  %8008 = vst [vmem:[#allocation73_spill] sm:$0xff] %v5383_v15  ;;  %v5393_v63 = vld [vmem:[%s7906_s6 + $0x248] sm:$0xff]  ;;  %v5398_v47 = vld [vmem:[%s7906_s6 + $0x250] sm:$0xff] }
  0x24   :  { %8009 = vst [vmem:[#allocation74_spill] sm:$0xff] %v5388_v14  ;;  %8010 = vst [vmem:[#allocation75_spill] sm:$0xff] %v5393_v63  ;;  %v5403_v46 = vld [vmem:[%s7906_s6 + $0x258] sm:$0xff]  ;;  %v5408_v15 = vld [vmem:[%s7906_s6 + $0x260] sm:$0xff] }
  0x25   :  { %8011 = vst [vmem:[#allocation76_spill] sm:$0xff] %v5398_v47  ;;  %8012 = vst [vmem:[#allocation77_spill] sm:$0xff] %v5403_v46  ;;  %v5413_v14 = vld [vmem:[%s7906_s6 + $0x268] sm:$0xff]  ;;  %v5418_v63 = vld [vmem:[%s7906_s6 + $0x270] sm:$0xff] }
  0x26   :  { %8013 = vst [vmem:[#allocation78_spill] sm:$0xff] %v5408_v15  ;;  %8014 = vst [vmem:[#allocation79_spill] sm:$0xff] %v5413_v14  ;;  %v5423_v47 = vld [vmem:[%s7906_s6 + $0x278] sm:$0xff]  ;;  %v5428_v46 = vld [vmem:[%s7906_s6 + $0x280] sm:$0xff] }
  0x27   :  { %8015 = vst [vmem:[#allocation80_spill] sm:$0xff] %v5418_v63  ;;  %8016 = vst [vmem:[#allocation81_spill] sm:$0xff] %v5423_v47  ;;  %v5433_v15 = vld [vmem:[%s7906_s6 + $0x288] sm:$0xff]  ;;  %v5438_v14 = vld [vmem:[%s7906_s6 + $0x290] sm:$0xff] }
  0x28   :  { %8017 = vst [vmem:[#allocation82_spill] sm:$0xff] %v5428_v46  ;;  %8018 = vst [vmem:[#allocation83_spill] sm:$0xff] %v5433_v15  ;;  %v5443_v63 = vld [vmem:[%s7906_s6 + $0x298] sm:$0xff]  ;;  %v5448_v47 = vld [vmem:[%s7906_s6 + $0x2a0] sm:$0xff] }
  0x29   :  { %8019 = vst [vmem:[#allocation84_spill] sm:$0xff] %v5438_v14  ;;  %8020 = vst [vmem:[#allocation85_spill] sm:$0xff] %v5443_v63  ;;  %v5453_v46 = vld [vmem:[%s7906_s6 + $0x2a8] sm:$0xff]  ;;  %v5458_v15 = vld [vmem:[%s7906_s6 + $0x2b0] sm:$0xff] }
  0x2a   :  { %8021 = vst [vmem:[#allocation86_spill] sm:$0xff] %v5448_v47  ;;  %8022 = vst [vmem:[#allocation87_spill] sm:$0xff] %v5453_v46  ;;  %v5463_v14 = vld [vmem:[%s7906_s6 + $0x2b8] sm:$0xff]  ;;  %v5468_v63 = vld [vmem:[%s7906_s6 + $0x2c0] sm:$0xff] }
  0x2b   :  { %8023 = vst [vmem:[#allocation88_spill] sm:$0xff] %v5458_v15  ;;  %8024 = vst [vmem:[#allocation89_spill] sm:$0xff] %v5463_v14  ;;  %v5473_v47 = vld [vmem:[%s7906_s6 + $0x2c8] sm:$0xff]  ;;  %v5478_v46 = vld [vmem:[%s7906_s6 + $0x2d0] sm:$0xff] }
  0x2c   :  { %8025 = vst [vmem:[#allocation90_spill] sm:$0xff] %v5468_v63  ;;  %8026 = vst [vmem:[#allocation91_spill] sm:$0xff] %v5473_v47  ;;  %v5483_v15 = vld [vmem:[%s7906_s6 + $0x2d8] sm:$0xff]  ;;  %v5488_v14 = vld [vmem:[%s7906_s6 + $0x2e0] sm:$0xff] }
  0x2d   :  { %8027 = vst [vmem:[#allocation92_spill] sm:$0xff] %v5478_v46  ;;  %8028 = vst [vmem:[#allocation93_spill] sm:$0xff] %v5483_v15  ;;  %v5493_v63 = vld [vmem:[%s7906_s6 + $0x2e8] sm:$0xff]  ;;  %v5498_v47 = vld [vmem:[%s7906_s6 + $0x2f0] sm:$0xff] }
  0x2e   :  { %8029 = vst [vmem:[#allocation94_spill] sm:$0xff] %v5488_v14  ;;  %8030 = vst [vmem:[#allocation95_spill] sm:$0xff] %v5493_v63  ;;  %v5503_v46 = vld [vmem:[%s7906_s6 + $0x2f8] sm:$0xff]  ;;  %v5508_v15 = vld [vmem:[%s7906_s6 + $0x300] sm:$0xff] }
  0x2f   :  { %8031 = vst [vmem:[#allocation96_spill] sm:$0xff] %v5498_v47  ;;  %8032 = vst [vmem:[#allocation97_spill] sm:$0xff] %v5503_v46  ;;  %v5513_v14 = vld [vmem:[%s7906_s6 + $0x308] sm:$0xff]  ;;  %v5518_v63 = vld [vmem:[%s7906_s6 + $0x310] sm:$0xff] }
  0x30   :  { %8033 = vst [vmem:[#allocation98_spill] sm:$0xff] %v5508_v15  ;;  %8034 = vst [vmem:[#allocation99_spill] sm:$0xff] %v5513_v14  ;;  %v5523_v47 = vld [vmem:[%s7906_s6 + $0x318] sm:$0xff]  ;;  %v5528_v46 = vld [vmem:[%s7906_s6 + $0x320] sm:$0xff] }
  0x31   :  { %8035 = vst [vmem:[#allocation100_spill] sm:$0xff] %v5518_v63  ;;  %8036 = vst [vmem:[#allocation101_spill] sm:$0xff] %v5523_v47  ;;  %v5533_v15 = vld [vmem:[%s7906_s6 + $0x328] sm:$0xff]  ;;  %v5538_v14 = vld [vmem:[%s7906_s6 + $0x330] sm:$0xff] }
  0x32   :  { %8037 = vst [vmem:[#allocation102_spill] sm:$0xff] %v5528_v46  ;;  %8038 = vst [vmem:[#allocation103_spill] sm:$0xff] %v5533_v15  ;;  %v5543_v63 = vld [vmem:[%s7906_s6 + $0x338] sm:$0xff]  ;;  %v5548_v47 = vld [vmem:[%s7906_s6 + $0x340] sm:$0xff] }
  0x33   :  { %8039 = vst [vmem:[#allocation104_spill] sm:$0xff] %v5538_v14  ;;  %8040 = vst [vmem:[#allocation105_spill] sm:$0xff] %v5543_v63  ;;  %v5553_v46 = vld [vmem:[%s7906_s6 + $0x348] sm:$0xff]  ;;  %v5558_v15 = vld [vmem:[%s7906_s6 + $0x350] sm:$0xff] }
  0x34   :  { %8041 = vst [vmem:[#allocation106_spill] sm:$0xff] %v5548_v47  ;;  %8042 = vst [vmem:[#allocation107_spill] sm:$0xff] %v5553_v46  ;;  %v5563_v14 = vld [vmem:[%s7906_s6 + $0x358] sm:$0xff]  ;;  %v5568_v63 = vld [vmem:[%s7906_s6 + $0x360] sm:$0xff] }
  0x35   :  { %8043 = vst [vmem:[#allocation108_spill] sm:$0xff] %v5558_v15  ;;  %8044 = vst [vmem:[#allocation109_spill] sm:$0xff] %v5563_v14  ;;  %v5573_v47 = vld [vmem:[%s7906_s6 + $0x368] sm:$0xff]  ;;  %v5578_v46 = vld [vmem:[%s7906_s6 + $0x370] sm:$0xff] }
  0x36   :  { %8045 = vst [vmem:[#allocation110_spill] sm:$0xff] %v5568_v63  ;;  %8046 = vst [vmem:[#allocation111_spill] sm:$0xff] %v5573_v47  ;;  %v5583_v15 = vld [vmem:[%s7906_s6 + $0x378] sm:$0xff]  ;;  %v5588_v14 = vld [vmem:[%s7906_s6 + $0x380] sm:$0xff] }
  0x37   :  { %8047 = vst [vmem:[#allocation112_spill] sm:$0xff] %v5578_v46  ;;  %8048 = vst [vmem:[#allocation113_spill] sm:$0xff] %v5583_v15  ;;  %v5593_v63 = vld [vmem:[%s7906_s6 + $0x388] sm:$0xff]  ;;  %v5598_v47 = vld [vmem:[%s7906_s6 + $0x390] sm:$0xff] }
  0x38   :  { %8049 = vst [vmem:[#allocation114_spill] sm:$0xff] %v5588_v14  ;;  %8050 = vst [vmem:[#allocation115_spill] sm:$0xff] %v5593_v63  ;;  %v5603_v46 = vld [vmem:[%s7906_s6 + $0x398] sm:$0xff]  ;;  %v5608_v15 = vld [vmem:[%s7906_s6 + $0x3a0] sm:$0xff] }
  0x39   :  { %8051 = vst [vmem:[#allocation116_spill] sm:$0xff] %v5598_v47  ;;  %8052 = vst [vmem:[#allocation117_spill] sm:$0xff] %v5603_v46  ;;  %v5613_v14 = vld [vmem:[%s7906_s6 + $0x3a8] sm:$0xff]  ;;  %v5618_v63 = vld [vmem:[%s7906_s6 + $0x3b0] sm:$0xff] }
  0x3a   :  { %8053 = vst [vmem:[#allocation118_spill] sm:$0xff] %v5608_v15  ;;  %8054 = vst [vmem:[#allocation119_spill] sm:$0xff] %v5613_v14  ;;  %v5623_v47 = vld [vmem:[%s7906_s6 + $0x3b8] sm:$0xff]  ;;  %v5628_v46 = vld [vmem:[%s7906_s6 + $0x3c0] sm:$0xff] }
  0x3b   :  { %8055 = vst [vmem:[#allocation120_spill] sm:$0xff] %v5618_v63  ;;  %8056 = vst [vmem:[#allocation121_spill] sm:$0xff] %v5623_v47  ;;  %v5633_v15 = vld [vmem:[%s7906_s6 + $0x3c8] sm:$0xff]  ;;  %v5638_v14 = vld [vmem:[%s7906_s6 + $0x3d0] sm:$0xff] }
  0x3c   :  { %8057 = vst [vmem:[#allocation122_spill] sm:$0xff] %v5628_v46  ;;  %8058 = vst [vmem:[#allocation123_spill] sm:$0xff] %v5633_v15  ;;  %v5643_v63 = vld [vmem:[%s7906_s6 + $0x3d8] sm:$0xff]  ;;  %v5648_v47 = vld [vmem:[%s7906_s6 + $0x3e0] sm:$0xff] }
  0x3d   :  { %8059 = vst [vmem:[#allocation124_spill] sm:$0xff] %v5638_v14  ;;  %8060 = vst [vmem:[#allocation125_spill] sm:$0xff] %v5643_v63  ;;  %v5653_v46 = vld [vmem:[%s7906_s6 + $0x3e8] sm:$0xff]  ;;  %v5658_v15 = vld [vmem:[%s7906_s6 + $0x3f0] sm:$0xff] }
  0x3e   :  { %8061 = vst [vmem:[#allocation126_spill] sm:$0xff] %v5648_v47  ;;  %8062 = vst [vmem:[#allocation127_spill] sm:$0xff] %v5653_v46  ;;  %v5663_v14 = vld [vmem:[%s7906_s6 + $0x3f8] sm:$0xff]  ;;  %v5668_v63 = vld [vmem:[%s7906_s6 + $0x400] sm:$0xff] }
  0x3f   :  { %8063 = vst [vmem:[#allocation128_spill] sm:$0xff] %v5658_v15  ;;  %8064 = vst [vmem:[#allocation129_spill] sm:$0xff] %v5663_v14  ;;  %v5673_v47 = vld [vmem:[%s7906_s6 + $0x408] sm:$0xff]  ;;  %v5678_v46 = vld [vmem:[%s7906_s6 + $0x410] sm:$0xff] }
  0x40   :  { %8065 = vst [vmem:[#allocation130_spill] sm:$0xff] %v5668_v63  ;;  %8066 = vst [vmem:[#allocation131_spill] sm:$0xff] %v5673_v47  ;;  %v5683_v15 = vld [vmem:[%s7906_s6 + $0x418] sm:$0xff]  ;;  %v5688_v14 = vld [vmem:[%s7906_s6 + $0x420] sm:$0xff] }
  0x41   :  { %8067 = vst [vmem:[#allocation132_spill] sm:$0xff] %v5678_v46  ;;  %8068 = vst [vmem:[#allocation133_spill] sm:$0xff] %v5683_v15  ;;  %v5693_v63 = vld [vmem:[%s7906_s6 + $0x428] sm:$0xff]  ;;  %v5698_v47 = vld [vmem:[%s7906_s6 + $0x430] sm:$0xff] }
  0x42   :  { %8069 = vst [vmem:[#allocation134_spill] sm:$0xff] %v5688_v14  ;;  %8070 = vst [vmem:[#allocation135_spill] sm:$0xff] %v5693_v63  ;;  %v5703_v46 = vld [vmem:[%s7906_s6 + $0x438] sm:$0xff]  ;;  %v5708_v15 = vld [vmem:[%s7906_s6 + $0x440] sm:$0xff] }
  0x43   :  { %8071 = vst [vmem:[#allocation136_spill] sm:$0xff] %v5698_v47  ;;  %8072 = vst [vmem:[#allocation137_spill] sm:$0xff] %v5703_v46  ;;  %v5713_v14 = vld [vmem:[%s7906_s6 + $0x448] sm:$0xff]  ;;  %v5718_v63 = vld [vmem:[%s7906_s6 + $0x450] sm:$0xff] }
  0x44   :  { %8073 = vst [vmem:[#allocation138_spill] sm:$0xff] %v5708_v15  ;;  %8074 = vst [vmem:[#allocation139_spill] sm:$0xff] %v5713_v14  ;;  %v5723_v47 = vld [vmem:[%s7906_s6 + $0x458] sm:$0xff]  ;;  %v5728_v46 = vld [vmem:[%s7906_s6 + $0x460] sm:$0xff] }
  0x45   :  { %8075 = vst [vmem:[#allocation140_spill] sm:$0xff] %v5718_v63  ;;  %8076 = vst [vmem:[#allocation141_spill] sm:$0xff] %v5723_v47  ;;  %v5733_v15 = vld [vmem:[%s7906_s6 + $0x468] sm:$0xff]  ;;  %v5738_v14 = vld [vmem:[%s7906_s6 + $0x470] sm:$0xff] }
  0x46   :  { %8077 = vst [vmem:[#allocation142_spill] sm:$0xff] %v5728_v46  ;;  %8078 = vst [vmem:[#allocation143_spill] sm:$0xff] %v5733_v15  ;;  %v5743_v63 = vld [vmem:[%s7906_s6 + $0x478] sm:$0xff]  ;;  %v5748_v47 = vld [vmem:[%s7906_s6 + $0x480] sm:$0xff] }
  0x47   :  { %8079 = vst [vmem:[#allocation144_spill] sm:$0xff] %v5738_v14  ;;  %8080 = vst [vmem:[#allocation145_spill] sm:$0xff] %v5743_v63  ;;  %v5753_v46 = vld [vmem:[%s7906_s6 + $0x488] sm:$0xff]  ;;  %v5758_v15 = vld [vmem:[%s7906_s6 + $0x490] sm:$0xff] }
  0x48   :  { %8081 = vst [vmem:[#allocation146_spill] sm:$0xff] %v5748_v47  ;;  %8082 = vst [vmem:[#allocation147_spill] sm:$0xff] %v5753_v46  ;;  %v5763_v14 = vld [vmem:[%s7906_s6 + $0x498] sm:$0xff]  ;;  %v5768_v63 = vld [vmem:[%s7906_s6 + $0x4a0] sm:$0xff] }
  0x49   :  { %8083 = vst [vmem:[#allocation148_spill] sm:$0xff] %v5758_v15  ;;  %8084 = vst [vmem:[#allocation149_spill] sm:$0xff] %v5763_v14  ;;  %v5773_v47 = vld [vmem:[%s7906_s6 + $0x4a8] sm:$0xff]  ;;  %v5778_v46 = vld [vmem:[%s7906_s6 + $0x4b0] sm:$0xff] }
  0x4a   :  { %8085 = vst [vmem:[#allocation150_spill] sm:$0xff] %v5768_v63  ;;  %8086 = vst [vmem:[#allocation151_spill] sm:$0xff] %v5773_v47  ;;  %v5783_v15 = vld [vmem:[%s7906_s6 + $0x4b8] sm:$0xff]  ;;  %v5788_v14 = vld [vmem:[%s7906_s6 + $0x4c0] sm:$0xff] }
  0x4b   :  { %8087 = vst [vmem:[#allocation152_spill] sm:$0xff] %v5778_v46  ;;  %8088 = vst [vmem:[#allocation153_spill] sm:$0xff] %v5783_v15  ;;  %v5793_v63 = vld [vmem:[%s7906_s6 + $0x4c8] sm:$0xff]  ;;  %v5798_v47 = vld [vmem:[%s7906_s6 + $0x4d0] sm:$0xff] }
  0x4c   :  { %8089 = vst [vmem:[#allocation154_spill] sm:$0xff] %v5788_v14  ;;  %8090 = vst [vmem:[#allocation155_spill] sm:$0xff] %v5793_v63  ;;  %v5803_v46 = vld [vmem:[%s7906_s6 + $0x4d8] sm:$0xff]  ;;  %v5808_v15 = vld [vmem:[%s7906_s6 + $0x4e0] sm:$0xff] }
  0x4d   :  { %8091 = vst [vmem:[#allocation156_spill] sm:$0xff] %v5798_v47  ;;  %8092 = vst [vmem:[#allocation157_spill] sm:$0xff] %v5803_v46  ;;  %v5813_v14 = vld [vmem:[%s7906_s6 + $0x4e8] sm:$0xff]  ;;  %v5818_v63 = vld [vmem:[%s7906_s6 + $0x4f0] sm:$0xff] }
  0x4e   :  { %8093 = vst [vmem:[#allocation158_spill] sm:$0xff] %v5808_v15  ;;  %8094 = vst [vmem:[#allocation159_spill] sm:$0xff] %v5813_v14  ;;  %v5823_v47 = vld [vmem:[%s7906_s6 + $0x4f8] sm:$0xff]  ;;  %v5828_v46 = vld [vmem:[%s7906_s6 + $0x500] sm:$0xff] }
  0x4f   :  { %8095 = vst [vmem:[#allocation160_spill] sm:$0xff] %v5818_v63  ;;  %8096 = vst [vmem:[#allocation161_spill] sm:$0xff] %v5823_v47  ;;  %v5833_v15 = vld [vmem:[%s7906_s6 + $0x508] sm:$0xff] }
  0x50   :  { %8097 = vst [vmem:[#allocation162_spill] sm:$0xff] %v5828_v46  ;;  %8098 = vst [vmem:[#allocation163_spill] sm:$0xff] %v5833_v15 }
  0x51   :  { %397 = vsyncadd [#allocation5], 20736  ;;  %v401_v63 = vld [vmem:[%s7900_s0 + $0x8] sm:$0xff]  ;;  %v414_v14 = vld [vmem:[%s7900_s0 + $0x70] sm:$0xff]  ;;  %v7911_v45 = vmov 0.0   ;;  %v4921_v61 = vmov 0  }
  0x52   :  { %v4354_v47 = vpack.c.bf16 %v414_v14, %v401_v63  ;;  %v405_v62 = vld [vmem:[%s7900_s0 + $0x28] sm:$0xff]  ;;  %v418_v46 = vld [vmem:[%s7900_s0 + $0x90] sm:$0xff]  ;;  %v400_v15 = vld [vmem:[%s7900_s0] sm:$0xff]  ;;  %641 = vmatprep.mubr.f32.mxu1 %v7911_v45  ;;  %795 = vmatprep.mubr.f32.mxu0 %v7911_v45  ;;  %vm537_vm0 = vcmask 1042432   ;;  %vm4922_vm1 = vmmov 1   ;;  %vm530_vm3 = vcmask 613376  }
  0x53   :  { %v4398_v31 = vpack.c.bf16 %v418_v46, %v405_v62  ;;  %v413_v30 = vld [vmem:[%s7900_s0 + $0x68] sm:$0xff]  ;;  %v404_v14 = vld [vmem:[%s7900_s0 + $0x20] sm:$0xff]  ;;  %v427_v62 = vld [vmem:[%s7900_s0 + $0xd8] sm:$0xff]  ;;  %4890 = vset.pattern.permute.xlu1 %v4921_v61  ;;  %4889 = vset.pattern.permute.xlu0 %v4921_v61  ;;  %v8101_v10 = vmov 0.0   ;;  %s4924_s23 = smov 112   ;;  %vm7927_vm4 = vcmask 982016  }
  0x54   :  { %v417_v63 = vld [vmem:[%s7900_s0 + $0x88] sm:$0xff]  ;;  %4355 = vmatprep.subr.bf16.mxu1 %v4354_v47  ;;  %v4356_v44 = vpack.c.bf16 %v413_v30, %v400_v15  ;;  %v440_v13 = vld [vmem:[%s7900_s0 + $0x140] sm:$0xff]  ;;  %v431_v12 = vld [vmem:[%s7900_s0 + $0xf8] sm:$0xff]  ;;  %vm1285_vm5 = vcmask 64512   ;;  %s4925_s24 = smov 127   ;;  %s4926_s6 = smov 126  }
  0x55   :  { %v4400_v46 = vpack.c.bf16 %v417_v63, %v404_v14  ;;  %4399 = vmatprep.subr.bf16.mxu0 %v4398_v31  ;;  %v4358_v60 = vpack.c.bf16 %v440_v13, %v427_v62  ;;  %v444_v15 = vld [vmem:[%s7900_s0 + $0x160] sm:$0xff]  ;;  %v426_v30 = vld [vmem:[%s7900_s0 + $0xd0] sm:$0xff]  ;;  %v439_v47 = vld [vmem:[%s7900_s0 + $0x138] sm:$0xff]  ;;  %s4927_s25 = smov 114   ;;  %s4928_s26 = smov 113   ;;  %vm7945_vm6 = vcmask 916480  }
  0x56   :  { %4357 = vmatpush1.bf16.msra.mxu1 %v4356_v44  ;;  %v4402_v14 = vpack.c.bf16 %v444_v15, %v431_v12  ;;  %v4360_v63 = vpack.c.bf16 %v439_v47, %v426_v30  ;;  %v430_v13 = vld [vmem:[%s7900_s0 + $0xf0] sm:$0xff]  ;;  %v443_v31 = vld [vmem:[%s7900_s0 + $0x158] sm:$0xff]  ;;  %v453_v62 = vld [vmem:[%s7900_s0 + $0x1a8] sm:$0xff]  ;;  %s4929_s27 = smov 100   ;;  %s4930_s28 = smov 7   ;;  %vm7913_vm7 = vcmask 56320  }
  0x57   :  { %4401 = vmatpush1.bf16.msra.mxu0 %v4400_v46  ;;  %4359 = vmatprep.subr.bf16.mxu1 %v4358_v60  ;;  %v4404_v45 = vpack.c.bf16 %v443_v31, %v430_v13  ;;  %v466_v44 = vld [vmem:[%s7900_s0 + $0x210] sm:$0xff]  ;;  %v457_v12 = vld [vmem:[%s7900_s0 + $0x1c8] sm:$0xff]  ;;  %v452_v60 = vld [vmem:[%s7900_s0 + $0x1a0] sm:$0xff]  ;;  %s4931_s29 = smov 99   ;;  %s4932_s30 = smov 98   ;;  %vm1315_vm8 = vcmask 1039360  }
  0x58   :  { %v470_v61 = vld [vmem:[%s7900_s0 + $0x230] sm:$0xff]  ;;  %4403 = vmatprep.subr.bf16.mxu0 %v4402_v14  ;;  %v4362_v46 = vpack.c.bf16 %v466_v44, %v453_v62  ;;  %v465_v30 = vld [vmem:[%s7900_s0 + $0x208] sm:$0xff]  ;;  %v456_v47 = vld [vmem:[%s7900_s0 + $0x1c0] sm:$0xff]  ;;  %s4933_s11 = smov 6   ;;  %s4934_s12 = smov 122   ;;  %vm1384_vm9 = vcmask 48128  }
  0x59   :  { %v4406_v15 = vpack.c.bf16 %v470_v61, %v457_v12  ;;  %v469_v13 = vld [vmem:[%s7900_s0 + $0x228] sm:$0xff]  ;;  %v479_v14 = vld [vmem:[%s7900_s0 + $0x278] sm:$0xff]  ;;  %v492_v31 = vld [vmem:[%s7900_s0 + $0x2e0] sm:$0xff]  ;;  %v4364_v62 = vpack.c.bf16 %v465_v30, %v452_v60  ;;  %s4935_s13 = smov 121   ;;  %s4936_s14 = smov 108   ;;  %vm1363_vm10 = vcmask 1031168  }
  0x5a   :  { %4361 = vmatpush1.bf16.msra.mxu1 %v4360_v63  ;;  %v4408_v44 = vpack.c.bf16 %v469_v13, %v456_v47  ;;  %v483_v12 = vld [vmem:[%s7900_s0 + $0x298] sm:$0xff]  ;;  %v496_v61 = vld [vmem:[%s7900_s0 + $0x300] sm:$0xff]  ;;  %v478_v29 = vld [vmem:[%s7900_s0 + $0x270] sm:$0xff]  ;;  %v4366_v28 = vpack.c.bf16 %v492_v31, %v479_v14  ;;  %s4937_s15 = smov 107   ;;  %s4938_s16 = smov 106   ;;  %vm7917_vm11 = vcmask 130048  }
  0x5b   :  { %4405 = vmatpush1.bf16.msra.mxu0 %v4404_v45  ;;  %4363 = vmatprep.subr.bf16.mxu1 %v4362_v46  ;;  %v4410_v43 = vpack.c.bf16 %v496_v61, %v483_v12  ;;  %v491_v45 = vld [vmem:[%s7900_s0 + $0x2d8] sm:$0xff]  ;;  %v482_v63 = vld [vmem:[%s7900_s0 + $0x290] sm:$0xff]  ;;  %v505_v46 = vld [vmem:[%s7900_s0 + $0x348] sm:$0xff]  ;;  %vm1411_vm12 = vcmask 932864   ;;  %vm1430_vm13 = vcmask 998400   ;;  %vm1457_vm14 = vcmask 924672  }
  0x5c   :  { %4407 = vmatprep.subr.bf16.mxu0 %v4406_v15  ;;  %v495_v60 = vld [vmem:[%s7900_s0 + $0x2f8] sm:$0xff]  ;;  %v518_v15 = vld [vmem:[%s7900_s0 + $0x3b0] sm:$0x7]  ;;  %v509_v30 = vld [vmem:[%s7900_s0 + $0x368] sm:$0xff]  ;;  %v4368_v13 = vpack.c.bf16 %v491_v45, %v478_v29  ;;  %vm1476_vm15 = vcmask 990208   ;;  %s4944_s21 = smov 16  }
  0x5d   :  { %v522_v47 = vld [vmem:[%s7900_s0 + $0x3d0] sm:$0x7]  ;;  %v4412_v14 = vpack.c.bf16 %v495_v60, %v482_v63  ;;  %vm5945_vm2 = vmpackc.low %vm537_vm0, %vm4922_vm1  ;;  %v504_v12 = vld [vmem:[%s7900_s0 + $0x340] sm:$0xff]  ;;  %v4370_v42 = vpack.c.bf16 %v518_v15, %v505_v46  ;;  %vm7932_vm0 = vcmask 818176   ;;  %vm7931_vm1 = vcmask 883712   ;;  %s4946_s22 = smov 52  }
  0x5e   :  { %4365 = vmatpush1.bf16.msra.mxu1 %v4364_v62  ;;  %v517_v61 = vld [vmem:[%s7900_s0 + $0x3a8] sm:$0x7]  ;;  %v4414_v62 = vpack.c.bf16 %v522_v47, %v509_v30  ;;  %v508_v29 = vld [vmem:[%s7900_s0 + $0x360] sm:$0xff]  ;;  %v403_v45 = vld [vmem:[%s7900_s0 + $0x18] sm:$0xff]  ;;  %s4958_s17 = smov 80   ;;  %s4959_s18 = smov 116  }
  0x5f   :  { %4409 = vmatpush1.bf16.msra.mxu0 %v4408_v44  ;;  %4367 = vmatprep.subr.bf16.mxu1 %v4366_v28  ;;  %v521_v44 = vld [vmem:[%s7900_s0 + $0x3c8] sm:$0x7]  ;;  %v416_v63 = vld [vmem:[%s7900_s0 + $0x80] sm:$0xff]  ;;  %v4373_v60 = vpack.c.bf16 %v517_v61, %v504_v12  ;;  %v402_v15 = vld [vmem:[%s7900_s0 + $0x10] sm:$0xff]  ;;  %s7914_s19 = smov 24   ;;  %s4961_s20 = smov 96  }
  0x60   :  { %4411 = vmatprep.subr.bf16.mxu0 %v4410_v43  ;;  %v409_v28 = vld [vmem:[%s7900_s0 + $0x48] sm:$0xff]  ;;  %v422_v43 = vld [vmem:[%s7900_s0 + $0xb0] sm:$0xff]  ;;  %v4417_v46 = vpack.c.bf16 %v521_v44, %v508_v29  ;;  %v4376_v30 = vpack.c.bf16 %v416_v63, %v403_v45  ;;  %v415_v11 = vld [vmem:[%s7900_s0 + $0x78] sm:$0xff] }
  0x61   :  { %v4442_v47 = vpack.c.bf16 %v422_v43, %v409_v28  ;;  %v442_v12 = vld [vmem:[%s7900_s0 + $0x150] sm:$0xff]  ;;  %v435_v61 = vld [vmem:[%s7900_s0 + $0x118] sm:$0xff]  ;;  %v6008_v29 = vld [vmem:[%s7901_s1] sm:$0xff]  ;;  %v4378_v44 = vpack.c.bf16 %v415_v11, %v402_v15 }
  0x62   :  { %4369 = vmatpush1.bf16.msra.mxu1 %v4368_v13  ;;  %v408_v13 = vld [vmem:[%s7900_s0 + $0x40] sm:$0xff]  ;;  %v441_v28 = vld [vmem:[%s7900_s0 + $0x148] sm:$0xff]  ;;  %v447_v11 = vld [vmem:[%s7900_s0 + $0x178] sm:$0xff] }
  0x63   :  { %4413 = vmatpush1.bf16.msra.mxu0 %v4412_v14  ;;  %4372 = vmatprep.subr.msk.bf16.mxu1 %vm5945_vm2, %v4370_v42  ;;  %v421_v14 = vld [vmem:[%s7900_s0 + $0xa8] sm:$0xff]  ;;  %v428_v63 = vld [vmem:[%s7900_s0 + $0xe0] sm:$0xff]  ;;  %v486_v27 = vld [vmem:[%s7900_s0 + $0x2b0] sm:$0xff] }
  0x64   :  { %4416 = vmatprep.subr.msk.bf16.mxu0 %vm5945_vm2, %v4414_v62  ;;  %v429_v42 = vld [vmem:[%s7900_s0 + $0xe8] sm:$0xff]  ;;  %v448_v62 = vld [vmem:[%s7900_s0 + $0x180] sm:$0xff]  ;;  %v4444_v45 = vpack.c.bf16 %v421_v14, %v408_v13 }
  0x65   :  { %v4380_v43 = vpack.c.bf16 %v442_v12, %v429_v42  ;;  %v4446_v15 = vpack.c.bf16 %v448_v62, %v435_v61  ;;  %v468_v13 = vld [vmem:[%s7900_s0 + $0x220] sm:$0xff]  ;;  %v6041_v14 = vld [vmem:[%s7901_s1 + $0x8] sm:$0xff]  ;;  %v4382_v42 = vpack.c.bf16 %v441_v28, %v428_v63  ;;  %v454_v61 = vld [vmem:[%s7900_s0 + $0x1b0] sm:$0xff]  ;;  %s4943_s1 = smov 36  }
  0x66   :  { %4375 = vmatpush1.bf16.msk.msra.mxu1 %vm5945_vm2, %v4373_v60  ;;  %v434_v60 = vld [vmem:[%s7900_s0 + $0x110] sm:$0xff]  ;;  %v467_v62 = vld [vmem:[%s7900_s0 + $0x218] sm:$0xff]  ;;  %v460_v59 = vld [vmem:[%s7900_s0 + $0x1e0] sm:$0xff] }
  0x67   :  { %4419 = vmatpush1.bf16.msk.msra.mxu0 %vm5945_vm2, %v4417_v46  ;;  %4377 = vmatprep.subr.bf16.mxu1 %v4376_v30  ;;  %v455_v46 = vld [vmem:[%s7900_s0 + $0x1b8] sm:$0xff]  ;;  %v461_v30 = vld [vmem:[%s7900_s0 + $0x1e8] sm:$0xff]  ;;  %v4448_v12 = vpack.c.bf16 %v447_v11, %v434_v60  ;;  %v494_v60 = vld [vmem:[%s7900_s0 + $0x2f0] sm:$0xff] }
  0x68   :  { %4443 = vmatprep.subr.bf16.mxu0 %v4442_v47  ;;  %v474_v47 = vld [vmem:[%s7900_s0 + $0x250] sm:$0xff]  ;;  %v473_v63 = vld [vmem:[%s7900_s0 + $0x248] sm:$0xff]  ;;  %v500_v11 = vld [vmem:[%s7900_s0 + $0x320] sm:$0xff] }
  0x69   :  { %3995 = vmatmul.mubr.msk.f32.vlgmr.msra.gmra.mrb[0].mxu1 %vm530_vm3, %v6008_v29  ;;  %v481_v28 = vld [vmem:[%s7900_s0 + $0x288] sm:$0xff] }
  0x6a   :  { %4003 = vmatmul.mubr.msk.f32.vlgmr.msra.gmra.mrb[0].mxu0 %vm530_vm3, %v6008_v29  ;;  %4379 = vmatpush1.bf16.msra.mxu1 %v4378_v44  ;;  %v4384_v44 = vpack.c.bf16 %v468_v13, %v455_v46  ;;  %v4386_v46 = vpack.c.bf16 %v467_v62, %v454_v61  ;;  %v480_v13 = vld [vmem:[%s7900_s0 + $0x280] sm:$0xff]  ;;  %v513_v61 = vld [vmem:[%s7900_s0 + $0x388] sm:$0xff]  ;;  %v526_v62 = vld [vmem:[%s7900_s0 + $0x3f0] sm:$0x7] }
  0x6b   :  { %4445 = vmatpush1.bf16.msra.mxu0 %v4444_v45  ;;  %801 = vmatprep.mubr.f32.mxu0 %v8101_v10  ;;  %v4450_v45 = vpack.c.bf16 %v474_v47, %v461_v30  ;;  %v493_v30 = vld [vmem:[%s7900_s0 + $0x2e8] sm:$0xff]  ;;  %v4388_v47 = vpack.c.bf16 %v494_v60, %v481_v28  ;;  %v519_v28 = vld [vmem:[%s7900_s0 + $0x3b8] sm:$0x7] }
  0x6c   :  { %4381 = vmatprep.subr.bf16.mxu1 %v4380_v43  ;;  %4447 = vmatprep.subr.bf16.mxu0 %v4446_v15  ;;  %v487_v43 = vld [vmem:[%s7900_s0 + $0x2b8] sm:$0xff]  ;;  %v4452_v15 = vpack.c.bf16 %v473_v63, %v460_v59  ;;  %v506_v63 = vld [vmem:[%s7900_s0 + $0x350] sm:$0xff] }
  0x6d   :  { %647 = vmatprep.mubr.f32.mxu1 %v8101_v10  ;;  %v4454_v58 = vpack.c.bf16 %v500_v11, %v487_v43  ;;  %v499_v59 = vld [vmem:[%s7900_s0 + $0x318] sm:$0xff]  ;;  %v4458_v43 = vpack.c.bf16 %v526_v62, %v513_v61  ;;  %v512_v11 = vld [vmem:[%s7900_s0 + $0x380] sm:$0xff]  ;;  %v433_v62 = vld [vmem:[%s7900_s0 + $0x108] sm:$0xff] }
  0x6e   :  { %4004 = vmatmul.mubr.msk.f32.gmra.mrb[2].mxu0 %vm530_vm3, %v6041_v14  ;;  %3996 = vmatmul.mubr.msk.f32.gmra.mrb[2].mxu1 %vm530_vm3, %v6041_v14  ;;  %v419_v61 = vld [vmem:[%s7900_s0 + $0x98] sm:$0xff] }
  0x6f   :  { %4383 = vmatpush1.bf16.msra.mxu1 %v4382_v42  ;;  %4449 = vmatpush1.bf16.msra.mxu0 %v4448_v12  ;;  %v507_v42 = vld [vmem:[%s7900_s0 + $0x358] sm:$0xff]  ;;  %v520_v12 = vld [vmem:[%s7900_s0 + $0x3c0] sm:$0x7] }
  0x70   :  { %4385 = vmatprep.subr.bf16.mxu1 %v4384_v44  ;;  %4451 = vmatprep.subr.bf16.mxu0 %v4450_v45  ;;  %v4390_v44 = vpack.c.bf16 %v493_v30, %v480_v13  ;;  %v4456_v45 = vpack.c.bf16 %v499_v59, %v486_v27  ;;  %v4392_v60 = vpack.c.bf16 %v520_v12, %v507_v42  ;;  %v525_v27 = vld [vmem:[%s7900_s0 + $0x3e8] sm:$0x7]  ;;  %v406_v12 = vld [vmem:[%s7900_s0 + $0x30] sm:$0xff] }
  0x71   :  { %718 = vmatprep.mubr.f32.mxu1 %v8101_v10  ;;  %949 = vmatprep.mubr.f32.mxu0 %v8101_v10  ;;  %v425_v13 = vld [vmem:[%s7900_s0 + $0xc8] sm:$0xff]  ;;  %v4395_v30 = vpack.c.bf16 %v519_v28, %v506_v63  ;;  %v451_v63 = vld [vmem:[%s7900_s0 + $0x198] sm:$0xff]  ;;  %v4422_v28 = vpack.c.bf16 %v419_v61, %v406_v12  ;;  %v458_v12 = vld [vmem:[%s7900_s0 + $0x1d0] sm:$0xff] }
  0x72   :  { %v471_v61 = vld [vmem:[%s7900_s0 + $0x238] sm:$0xff] }
  0x73   :  { %4387 = vmatpush1.bf16.msra.mxu1 %v4386_v46  ;;  %4453 = vmatpush1.bf16.msra.mxu0 %v4452_v15  ;;  %v407_v46 = vld [vmem:[%s7900_s0 + $0x38] sm:$0xff]  ;;  %v420_v15 = vld [vmem:[%s7900_s0 + $0xa0] sm:$0xff] }
  0x74   :  { %4389 = vmatprep.subr.bf16.mxu1 %v4388_v47  ;;  %4455 = vmatprep.subr.bf16.mxu0 %v4454_v58  ;;  %v412_v58 = vld [vmem:[%s7900_s0 + $0x60] sm:$0xff]  ;;  %v4461_v47 = vpack.c.bf16 %v525_v27, %v512_v11  ;;  %v4420_v59 = vpack.c.bf16 %v420_v15, %v407_v46  ;;  %v445_v11 = vld [vmem:[%s7900_s0 + $0x168] sm:$0xff]  ;;  %v459_v27 = vld [vmem:[%s7900_s0 + $0x1d8] sm:$0xff] }
  0x75   :  { %v4486_v42 = vpack.c.bf16 %v425_v13, %v412_v58  ;;  %v472_v15 = vld [vmem:[%s7900_s0 + $0x240] sm:$0xff]  ;;  %v477_v13 = vld [vmem:[%s7900_s0 + $0x268] sm:$0xff] }
  0x76   :  { %v464_v58 = vld [vmem:[%s7900_s0 + $0x200] sm:$0xff] }
  0x77   :  { %4391 = vmatpush1.bf16.msra.mxu1 %v4390_v44  ;;  %4457 = vmatpush1.bf16.msra.mxu0 %v4456_v45  ;;  %v446_v44 = vld [vmem:[%s7900_s0 + $0x170] sm:$0xff] }
  0x78   :  { %4394 = vmatprep.subr.msk.bf16.mxu1 %vm5945_vm2, %v4392_v60  ;;  %4460 = vmatprep.subr.msk.bf16.mxu0 %vm5945_vm2, %v4458_v43  ;;  %v438_v45 = vld [vmem:[%s7900_s0 + $0x130] sm:$0xff]  ;;  %v4424_v60 = vpack.c.bf16 %v446_v44, %v433_v62  ;;  %v432_v43 = vld [vmem:[%s7900_s0 + $0x100] sm:$0xff]  ;;  %v485_v62 = vld [vmem:[%s7900_s0 + $0x2a8] sm:$0xff] }
  0x79   :  { %v4490_v46 = vpack.c.bf16 %v451_v63, %v438_v45  ;;  %v490_v44 = vld [vmem:[%s7900_s0 + $0x2d0] sm:$0xff]  ;;  %v503_v45 = vld [vmem:[%s7900_s0 + $0x338] sm:$0xff]  ;;  %v4430_v63 = vpack.c.bf16 %v471_v61, %v458_v12 }
  0x7b   :  { %4397 = vmatpush1.bf16.msk.msra.mxu1 %vm5945_vm2, %v4395_v30  ;;  %4463 = vmatpush1.bf16.msk.msra.mxu0 %vm5945_vm2, %v4461_v47  ;;  %v4426_v30 = vpack.c.bf16 %v445_v11, %v432_v43  ;;  %v4428_v47 = vpack.c.bf16 %v472_v15, %v459_v27  ;;  %v4498_v11 = vpack.c.bf16 %v503_v45, %v490_v44  ;;  %v484_v27 = vld [vmem:[%s7900_s0 + $0x2a0] sm:$0xff]  ;;  %v511_v15 = vld [vmem:[%s7900_s0 + $0x378] sm:$0xff] }
  0x7c   :  { %4421 = vmatprep.subr.bf16.mxu1 %v4420_v59  ;;  %4487 = vmatprep.subr.bf16.mxu0 %v4486_v42  ;;  %v4494_v59 = vpack.c.bf16 %v477_v13, %v464_v58  ;;  %v524_v58 = vld [vmem:[%s7900_s0 + $0x3e0] sm:$0x7]  ;;  %v411_v44 = vld [vmem:[%s7900_s0 + $0x58] sm:$0xff] }
  0x7d   :  { %v516_v13 = vld [vmem:[%s7900_s0 + $0x3a0] sm:$0xff]  ;;  %v4436_v12 = vpack.c.bf16 %v524_v58, %v511_v15  ;;  %v449_v58 = vld [vmem:[%s7900_s0 + $0x188] sm:$0xff] }
  0x7e   :  { %3999 = vmatmul.mubr.msk.f32.vlgmr.msra.gmra.mrb[4].mxu1 %vm530_vm3, %v6008_v29  ;;  %4011 = vmatmul.mubr.msk.f32.vlgmr.msra.gmra.mrb[4].mxu0 %vm530_vm3, %v6008_v29  ;;  %v436_v15 = vld [vmem:[%s7900_s0 + $0x120] sm:$0xff] }
  0x7f   :  { %4423 = vmatpush1.bf16.msra.mxu1 %v4422_v28  ;;  %4489 = vmatpush3.bf16.msra.mxu0 %v4486_v42  ;;  %v498_v42 = vld [vmem:[%s7900_s0 + $0x310] sm:$0xff]  ;;  %v1255_v28 = vld [vmem:[%s7902_s2 + $0x8] sm:$0xff] }
  0x80   :  { %955 = vmatprep.mubr.f32.mxu0 %v8101_v10  ;;  %4425 = vmatprep.subr.bf16.mxu1 %v4424_v60  ;;  %v1254_v60 = vld [vmem:[%s7902_s2] sm:$0xff]  ;;  %v4432_v43 = vpack.c.bf16 %v498_v42, %v485_v62  ;;  %v510_v62 = vld [vmem:[%s7900_s0 + $0x370] sm:$0xff]  ;;  %v523_v42 = vld [vmem:[%s7900_s0 + $0x3d8] sm:$0x7]  ;;  %s4945_s2 = smov 88  }
  0x81   :  { %4491 = vmatprep.subr.bf16.mxu0 %v4490_v46  ;;  %724 = vmatprep.mubr.f32.mxu1 %v8101_v10  ;;  %v4439_v45 = vpack.c.bf16 %v523_v42, %v510_v62  ;;  %v475_v62 = vld [vmem:[%s7900_s0 + $0x258] sm:$0xff]  ;;  %v489_v42 = vld [vmem:[%s7900_s0 + $0x2c8] sm:$0xff] }
  0x82   :  { %4012 = vmatmul.mubr.msk.f32.gmra.mrb[6].mxu0 %vm530_vm3, %v6041_v14  ;;  %4000 = vmatmul.mubr.msk.f32.gmra.mrb[6].mxu1 %vm530_vm3, %v6041_v14 }
  0x83   :  { %4427 = vmatpush1.bf16.msra.mxu1 %v4426_v30  ;;  %4493 = vmatpush3.bf16.msra.mxu0 %v4490_v46  ;;  %v497_v46 = vld [vmem:[%s7900_s0 + $0x308] sm:$0xff] }
  0x84   :  { %4429 = vmatprep.subr.bf16.mxu1 %v4428_v47  ;;  %4495 = vmatprep.subr.bf16.mxu0 %v4494_v59  ;;  %v529_v30 = vld [vmem:[%s7900_s0 + $0x408] sm:$0x7]  ;;  %v4434_v47 = vpack.c.bf16 %v497_v46, %v484_v27 }
  0x85   :  { %872 = vmatprep.mubr.f32.mxu1 %v8101_v10  ;;  %4309 = vmatprep.mubr.msk.f32.mxu0 %vm530_vm3, %v6008_v29  ;;  %v4502_v61 = vpack.c.bf16 %v529_v30, %v516_v13  ;;  %v463_v13 = vld [vmem:[%s7900_s0 + $0x1f8] sm:$0xff]  ;;  %v476_v30 = vld [vmem:[%s7900_s0 + $0x260] sm:$0xff] }
  0x86   :  { %1263 = vperm.xlu1 %4890, %v1255_v28   ;;  %1258 = vperm.xlu0 %4889, %v1254_v60   ;;  %v410_v28 = vld [vmem:[%s7900_s0 + $0x50] sm:$0xff]  ;;  %v423_v60 = vld [vmem:[%s7900_s0 + $0xb8] sm:$0xff] }
  0x87   :  { %4431 = vmatpush1.bf16.msra.mxu1 %v4430_v63  ;;  %4497 = vmatpush3.bf16.msra.mxu0 %v4494_v59  ;;  %v424_v59 = vld [vmem:[%s7900_s0 + $0xc0] sm:$0xff]  ;;  %v4466_v27 = vpack.c.bf16 %v423_v60, %v410_v28  ;;  %v501_v28 = vld [vmem:[%s7900_s0 + $0x328] sm:$0xff]  ;;  %v515_v60 = vld [vmem:[%s7900_s0 + $0x398] sm:$0xff] }
  0x88   :  { %4433 = vmatprep.subr.bf16.mxu1 %v4432_v43  ;;  %4499 = vmatprep.subr.bf16.mxu0 %v4498_v11  ;;  %v4464_v63 = vpack.c.bf16 %v424_v59, %v411_v44  ;;  %v437_v43 = vld [vmem:[%s7900_s0 + $0x128] sm:$0xff]  ;;  %v502_v44 = vld [vmem:[%s7900_s0 + $0x330] sm:$0xff] }
  0x8b   :  { %4435 = vmatpush1.bf16.msra.mxu1 %v4434_v47  ;;  %4501 = vmatpush3.bf16.msra.mxu0 %v4498_v11  ;;  %v450_v11 = vld [vmem:[%s7900_s0 + $0x190] sm:$0xff]  ;;  %v4470_v47 = vpack.c.bf16 %v449_v58, %v436_v15  ;;  %v527_v15 = vld [vmem:[%s7900_s0 + $0x3f8] sm:$0x7] }
  0x8c   :  { %4438 = vmatprep.subr.msk.bf16.mxu1 %vm5945_vm2, %v4436_v12  ;;  %4504 = vmatprep.subr.msk.bf16.mxu0 %vm5945_vm2, %v4502_v61  ;;  %v4468_v46 = vpack.c.bf16 %v450_v11, %v437_v43  ;;  %v4472_v12 = vpack.c.bf16 %v476_v30, %v463_v13  ;;  %v528_v43 = vld [vmem:[%s7900_s0 + $0x400] sm:$0x7] }
  0x8f   :  { %4441 = vmatpush1.bf16.msk.msra.mxu1 %vm5945_vm2, %v4439_v45  ;;  %4507 = vmatpush3.bf16.msk.msra.mxu0 %vm5945_vm2, %v4502_v61  ;;  %v462_v61 = vld [vmem:[%s7900_s0 + $0x1f0] sm:$0xff]  ;;  %v4476_v45 = vpack.c.bf16 %v502_v44, %v489_v42 }
  0x90   :  { %4465 = vmatprep.subr.bf16.mxu1 %v4464_v63  ;;  %v4474_v59 = vpack.c.bf16 %v475_v62, %v462_v61  ;;  %v488_v63 = vld [vmem:[%s7900_s0 + $0x2c0] sm:$0xff] }
  0x91   :  { %v4478_v11 = vpack.c.bf16 %v501_v28, %v488_v63 }
  0x92   :  { %4007 = vmatmul.mubr.msk.f32.vlgmr.msra.gmra.mrb[8].mxu1 %vm530_vm3, %v6008_v29  ;;  %4310 = vmatmul.mubr.msk.f32.vlgmr.msra.gmra.mrb[8].mxu0 %vm530_vm3, %v6041_v14 }
  0x93   :  { %4467 = vmatpush1.bf16.msra.mxu1 %v4466_v27  ;;  %878 = vmatprep.mubr.f32.mxu1 %v8101_v10  ;;  %v4480_v27 = vpack.c.bf16 %v528_v43, %v515_v60 }
  0x94   :  { %4469 = vmatprep.subr.bf16.mxu1 %v4468_v46  ;;  %v514_v46 = vld [vmem:[%s7900_s0 + $0x390] sm:$0xff]  ;;  %s4923_s0 = smov 120  }
  0x95   :  { %v4483_v58 = vpack.c.bf16 %v527_v15, %v514_v46 }
  0x96   :  { %4008 = vmatmul.mubr.msk.f32.gmra.mrb[10].mxu1 %vm530_vm3, %v6041_v14 }
  0x97   :  { %4471 = vmatpush1.bf16.msra.mxu1 %v4470_v47  ;;  %1026 = vmatprep.mubr.f32.mxu1 %v8101_v10 }
  0x98   :  { %4473 = vmatprep.subr.bf16.mxu1 %v4472_v12 }
  0x9b   :  { %4475 = vmatpush1.bf16.msra.mxu1 %v4474_v59 }
  0x9c   :  { %4477 = vmatprep.subr.bf16.mxu1 %v4476_v45 }
  0x9f   :  { %4479 = vmatpush1.bf16.msra.mxu1 %v4478_v11 }
  0xa0   :  { %4482 = vmatprep.subr.msk.bf16.mxu1 %vm5945_vm2, %v4480_v27 }
  0xa3   :  { %4485 = vmatpush1.bf16.msk.msra.mxu1 %vm5945_vm2, %v4483_v58  ;;  %vm1593_vm2 = vcmask 809984  }
  0xa6   :  { %4015 = vmatmul.mubr.msk.f32.vlgmr.msra.gmra.mrb[12].mxu1 %vm530_vm3, %v6008_v29 }
  0xa7   :  { %1032 = vmatprep.mubr.f32.mxu1 %v8101_v10 }
  0xaa   :  { %4016 = vmatmul.mubr.msk.f32.gmra.mrb[14].mxu1 %vm530_vm3, %v6041_v14  ;;  %vm1612_vm3 = vcmask 875520  }
 0x13c   :  { %v6313_v13 = vpop.f32.mrb[0].mxu1 }
 0x13d   :  { %v797_v30 = vpop.f32.mrb[0].mxu0  ;;  %v6315_v47 = vpop.f32.mrb[1].mxu1 }
 0x13e   :  { %v799_v12 = vpop.f32.mrb[1].mxu0  ;;  %1124 = vrot.lane.b32.xlu0 %v797_v30, %s4923_s0 }
 0x13f   :  { %1126 = vrot.lane.b32.xlu1 %v799_v12, %s4923_s0 }
 0x141   :  { %v803_v31 = vpop.f32.mrb[2].mxu0  ;;  %v6319_v61 = vpop.f32.mrb[2].mxu1 }
 0x142   :  { %v805_v29 = vpop.f32.mrb[3].mxu0  ;;  %1132 = vrot.lane.b32.xlu0 %v803_v31, %s4923_s0  ;;  %v6322_v62 = vpop.f32.mrb[3].mxu1 }
 0x143   :  { %1134 = vrot.lane.b32.xlu1 %v805_v29, %s4923_s0 }
 0x151   :  { %v6325_v14 = vpop.f32.mrb[4].mxu1  ;;  %v6327_v42 = vpop.f32.mrb[4].mxu0 }
 0x152   :  { %v6329_v44 = vpop.f32.mrb[5].mxu1  ;;  %v953_v59 = vpop.f32.mrb[5].mxu0 }
 0x153   :  { %1122 = vrot.lane.b32.xlu1 %v6329_v44, %s4923_s0  ;;  %1169 = vrot.lane.b32.xlu0 %v953_v59, %s4923_s0 }
 0x155   :  { %v6334_v45 = vpop.f32.mrb[6].mxu0  ;;  %v6336_v63 = vpop.f32.mrb[6].mxu1 }
 0x156   :  { %v959_v28 = vpop.f32.mrb[7].mxu0  ;;  %v6338_v60 = vpop.f32.mrb[7].mxu1 }
 0x157   :  { %1177 = vrot.lane.b32.xlu1 %v959_v28, %s4923_s0 }
 0x15b   :  { %1130 = vrot.lane.b32.xlu1 %v6338_v60, %s4923_s0 }
 0x165   :  { %v874_v43 = vpop.f32.mrb[8].mxu1  ;;  %v4311_v11 = vpop.f32.mrb[8].mxu0 }
 0x166   :  { %1183 = vrot.lane.b32.xlu1 %v4311_v11, %s4923_s0  ;;  %1128 = vrot.lane.b32.xlu0 %v874_v43, %s4923_s0  ;;  %v876_v27 = vpop.f32.mrb[9].mxu1  ;;  %v1105_v46 = vpop.f32.mrb[9].mxu0 }
 0x167   :  { %v6351_v11 = vpop.permute.xlu1 %1263 }
 0x169   :  { %v880_v15 = vpop.f32.mrb[10].mxu1 }
 0x16a   :  { %1175 = vrot.lane.b32.xlu0 %v1105_v46, %s4923_s0  ;;  %v882_v58 = vpop.f32.mrb[11].mxu1  ;;  %v6355_v46 = vpop.permute.xlu0 %1258 }
 0x16e   :  { %1136 = vrot.lane.b32.xlu0 %v880_v15, %s4923_s0 }
 0x179   :  { %v1028_v30 = vpop.f32.mrb[12].mxu1 }
 0x17a   :  { %1171 = vrot.lane.b32.xlu0 %v1028_v30, %s4923_s0  ;;  %v1030_v12 = vpop.f32.mrb[13].mxu1 }
 0x17b   :  { %1173 = vrot.lane.b32.xlu1 %v1030_v12, %s4923_s0 }
 0x17d   :  { %v1034_v31 = vpop.f32.mrb[14].mxu1 }
 0x17e   :  { %1179 = vrot.lane.b32.xlu0 %v1034_v31, %s4923_s0  ;;  %v1036_v29 = vpop.f32.mrb[15].mxu1 }
 0x17f   :  { %1181 = vrot.lane.b32.xlu1 %v1036_v29, %s4923_s0 }
 0x1b0   :  { %v6359_v9 = vpop.permute.xlu0 %1124 }
 0x1b1   :  { %v6353_v26 = vpop.permute.xlu1 %1126 }
 0x1b4   :  { %v6361_v8 = vpop.permute.xlu0 %1132 }
 0x1b5   :  { %v6357_v41 = vpop.permute.xlu1 %1134 }
 0x1c5   :  { %v1123_v40 = vpop.permute.xlu1 %1122  ;;  %v1170_v31 = vpop.permute.xlu0 %1169 }
 0x1c9   :  { %v1178_v30 = vpop.permute.xlu1 %1177 }
 0x1cd   :  { %v6363_v12 = vpop.permute.xlu1 %1130 }
 0x1d8   :  { %v1184_v57 = vpop.permute.xlu1 %1183  ;;  %v6365_v56 = vpop.permute.xlu0 %1128 }
 0x1d9   :  { %v1206_v29 = vmax.f32 %v959_v28, %v1184_v57 }
 0x1db   :  { %1229 = vrot.lane.b32.xlu0 %v1206_v29, %s4924_s23 }
 0x1dc   :  { %v1176_v25 = vpop.permute.xlu0 %1175 }
 0x1dd   :  { %v1202_v24 = vmax.f32 %v953_v59, %v1176_v25 }
 0x1df   :  { %1221 = vrot.lane.b32.xlu0 %v1202_v24, %s4924_s23 }
 0x1e0   :  { %v6369_v39 = vpop.permute.xlu0 %1136 }
 0x1ec   :  { %v1172_v38 = vpop.permute.xlu0 %1171 }
 0x1ed   :  { %v1185_v7 = vsel %vm7927_vm4, %v1170_v31, %v1172_v38  ;;  %v1174_v6 = vpop.permute.xlu1 %1173 }
 0x1ee   :  { %v1186_v55 = vsel %vm7927_vm4, %v1172_v38, %v1174_v6  ;;  %v1199_v54 = vmax.f32 %v874_v43, %v1185_v7  ;;  %v1187_v23 = vsel %vm7927_vm4, %v1174_v6, %v1176_v25  ;;  %v1160_v38 = vmax.f32 %v6338_v60, %v6369_v39 }
 0x1ef   :  { %v1200_v28 = vmax.f32 %v876_v27, %v1186_v55  ;;  %v1201_v29 = vmax.f32 %v6327_v42, %v1187_v23  ;;  %v1139_v27 = vsel %vm7927_vm4, %v1123_v40, %v6359_v9 }
 0x1f0   :  { %v1180_v22 = vpop.permute.xlu0 %1179  ;;  %1215 = vrot.lane.b32.xlu1 %v1199_v54, %s4924_s23  ;;  %v1156_v54 = vmax.f32 %v6329_v44, %v6365_v56 }
 0x1f1   :  { %1217 = vrot.lane.b32.xlu0 %v1200_v28, %s4924_s23  ;;  %v1182_v59 = vpop.permute.xlu1 %1181  ;;  %v1188_v37 = vsel %vm7927_vm4, %v1178_v30, %v1180_v22  ;;  %v1140_v30 = vsel %vm7927_vm4, %v6359_v9, %v6353_v26  ;;  %v1153_v28 = vmax.f32 %v6313_v13, %v1139_v27  ;;  %v1142_v9 = vsel %vm7927_vm4, %v6363_v12, %v6361_v8 }
 0x1f2   :  { %v1189_v24 = vsel %vm7927_vm4, %v1180_v22, %v1182_v59  ;;  %v1203_v7 = vmax.f32 %v880_v15, %v1188_v37  ;;  %v1190_v6 = vsel %vm7927_vm4, %v1182_v59, %v1184_v57  ;;  %v1141_v59 = vsel %vm7927_vm4, %v6353_v26, %v6365_v56 }
 0x1f3   :  { %v1204_v31 = vmax.f32 %v882_v58, %v1189_v24  ;;  %v1205_v25 = vmax.f32 %v6334_v45, %v1190_v6 }
 0x1f4   :  { %1219 = vrot.lane.b32.xlu1 %v1201_v29, %s4924_s23 }
 0x1f5   :  { %1225 = vrot.lane.b32.xlu0 %v1204_v31, %s4924_s23  ;;  %v1154_v31 = vmax.f32 %v6315_v47, %v1140_v30 }
 0x1f8   :  { %1223 = vrot.lane.b32.xlu1 %v1203_v7, %s4924_s23  ;;  %v1155_v7 = vmax.f32 %v6325_v14, %v1141_v59  ;;  %v1157_v14 = vmax.f32 %v6319_v61, %v1142_v9 }
 0x1fc   :  { %1227 = vrot.lane.b32.xlu1 %v1205_v25, %s4924_s23 }
 0x24d   :  { %v6387_v23 = vpop.permute.xlu0 %1229 }
 0x24e   :  { %v1253_v22 = vmax.f32 %v1160_v38, %v6387_v23 }
 0x250   :  { %v1273_v37 = vadd.f32 %v6351_v11, %v1253_v22 }
 0x251   :  { %v1222_v55 = vpop.permute.xlu0 %1221 }
 0x252   :  { %v6393_v57 = vmax.f32 %v1273_v37, 0.0  ;;  %v1249_v42 = vmax.f32 %v1156_v54, %v1222_v55 }
 0x254   :  { %v1269_v45 = vadd.f32 %v6355_v46, %v1249_v42  ;;  %1313 = vrot.lane.b32.xlu0 %v6393_v57, %s4925_s24  ;;  %1290 = vst.msk [vmem:[#allocation2 + $0x38] sm:$0xff] %vm1285_vm5, %v6393_v57  ;;  %v1144_v42 = vsel %vm7927_vm4, %v6357_v41, %v6369_v39 }
 0x256   :  { %v6400_v60 = vmax.f32 %v1269_v45, 0.0 }
 0x258   :  { %1305 = vrot.lane.b32.xlu1 %v6400_v60, %s4925_s24  ;;  %1361 = vrot.lane.b32.xlu0 %v6393_v57, %s4926_s6  ;;  %1286 = vst.msk [vmem:[#allocation2 + $0x18] sm:$0xff] %vm1285_vm5, %v6400_v60 }
 0x25b   :  { %v1686_v43 = vld [vmem:[#allocation2 + $0x38] sm:$0xff] }
 0x25c   :  { %1353 = vrot.lane.b32.xlu1 %v6400_v60, %s4926_s6  ;;  %1409 = vrot.lane.b32.xlu0 %v6393_v57, %s4927_s25 }
 0x25f   :  { %v1682_v44 = vld [vmem:[#allocation2 + $0x18] sm:$0xff] }
 0x260   :  { %1455 = vrot.lane.b32.xlu0 %v6393_v57, %s4928_s26  ;;  %v4544_v15 = vpack.c.bf16 %v1686_v43, %v1682_v44  ;;  %v1159_v43 = vmax.f32 %v6336_v63, %v1144_v42 }
 0x262   :  { %4545 = vmatprep.subr.bf16.mxu0 %v4544_v15  ;;  %v1216_v58 = vpop.permute.xlu1 %1215 }
 0x263   :  { %v1218_v24 = vpop.permute.xlu0 %1217 }
 0x264   :  { %v1232_v40 = vsel %vm7945_vm6, %v1216_v58, %v1218_v24  ;;  %1501 = vrot.lane.b32.xlu0 %v6393_v57, %s4924_s23 }
 0x265   :  { %v1246_v29 = vmax.f32 %v1153_v28, %v1232_v40 }
 0x266   :  { %v1220_v6 = vpop.permute.xlu1 %1219 }
 0x267   :  { %v1266_v13 = vadd.f32 %v6355_v46, %v1246_v29  ;;  %v1233_v26 = vsel %vm7945_vm6, %v1218_v24, %v1220_v6  ;;  %v1234_v56 = vsel %vm7945_vm6, %v1220_v6, %v1222_v55  ;;  %v1226_v54 = vpop.permute.xlu0 %1225  ;;  %v1143_v55 = vsel %vm7927_vm4, %v6361_v8, %v6357_v41 }
 0x268   :  { %v1247_v25 = vmax.f32 %v1154_v31, %v1233_v26  ;;  %v1248_v38 = vmax.f32 %v1155_v7, %v1234_v56  ;;  %1545 = vrot.lane.b32.xlu0 %v6393_v57, %s4929_s27  ;;  %v1158_v8 = vmax.f32 %v6322_v62, %v1143_v55 }
 0x269   :  { %v6436_v47 = vmax.f32 %v1266_v13, 0.0 }
 0x26a   :  { %v1267_v22 = vadd.f32 %v6355_v46, %v1247_v25  ;;  %v1268_v12 = vadd.f32 %v6355_v46, %v1248_v38  ;;  %v1224_v37 = vpop.permute.xlu1 %1223 }
 0x26b   :  { %v1235_v45 = vsel %vm7945_vm6, %v1224_v37, %v1226_v54  ;;  %1330 = vrot.lane.b32.xlu1 %v6436_v47, %s4930_s28 }
 0x26c   :  { %v6450_v61 = vmax.f32 %v1267_v22, 0.0  ;;  %v6452_v44 = vmax.f32 %v1268_v12, 0.0  ;;  %v1250_v46 = vmax.f32 %v1157_v14, %v1235_v45  ;;  %1591 = vrot.lane.b32.xlu0 %v6393_v57, %s4931_s29 }
 0x26e   :  { %v1270_v39 = vadd.f32 %v6351_v11, %v1250_v46  ;;  %v1228_v41 = vpop.permute.xlu1 %1227 }
 0x26f   :  { %v1236_v27 = vsel %vm7945_vm6, %v1226_v54, %v1228_v41  ;;  %v1237_v15 = vsel %vm7945_vm6, %v1228_v41, %v6387_v23  ;;  %1301 = vrot.lane.b32.xlu1 %v6450_v61, %s4925_s24 }
 0x270   :  { %v6464_v58 = vmax.f32 %v1270_v39, 0.0  ;;  %v1251_v30 = vmax.f32 %v1158_v8, %v1236_v27  ;;  %v1252_v28 = vmax.f32 %v1159_v43, %v1237_v15  ;;  %1637 = vrot.lane.b32.xlu0 %v6393_v57, %s4932_s30  ;;  %v1670_v43 = vld [vmem:[%s7903_s3 + $0x8] sm:$0xff] }
 0x271   :  { %4025 = vmatprep.mubr.msk.f32.mxu0 %vm7917_vm11, %v1670_v43  ;;  %4020 = vmatprep.mubr.msk.f32.mxu1 %vm7917_vm11, %v1670_v43 }
 0x272   :  { %v1271_v62 = vadd.f32 %v6351_v11, %v1251_v30  ;;  %v1272_v63 = vadd.f32 %v6351_v11, %v1252_v28  ;;  %v4510_v11 = vpack.c.bf16 %v6464_v58, %v6436_v47 }
 0x273   :  { %1299 = vrot.lane.b32.xlu1 %v6436_v47, %s4925_s24 }
 0x274   :  { %v6472_v59 = vmax.f32 %v1271_v62, 0.0  ;;  %v6474_v23 = vmax.f32 %v1272_v63, 0.0  ;;  %1401 = vrot.lane.b32.xlu0 %v6400_v60, %s4927_s25 }
 0x276   :  { %v4508_v24 = vpack.c.bf16 %v6472_v59, %v6450_v61  ;;  %v4546_v57 = vpack.c.bf16 %v6474_v23, %v6452_v44 }
 0x277   :  { %1378 = vrot.lane.b32.xlu1 %v6436_v47, %s4933_s11 }
 0x278   :  { %1447 = vrot.lane.b32.xlu0 %v6400_v60, %s4928_s26  ;;  %4509 = vmatprep.subr.bf16.mxu1 %v4508_v24 }
 0x279   :  { %4547 = vmatpush1.bf16.msra.mxu0 %v4546_v57  ;;  %4511 = vmatpush1.bf16.msra.mxu1 %v4510_v11 }
 0x27b   :  { %1349 = vrot.lane.b32.xlu1 %v6450_v61, %s4926_s6 }
 0x27c   :  { %1493 = vrot.lane.b32.xlu0 %v6400_v60, %s4924_s23 }
 0x27f   :  { %1347 = vrot.lane.b32.xlu1 %v6436_v47, %s4926_s6 }
 0x280   :  { %1537 = vrot.lane.b32.xlu0 %v6400_v60, %s4929_s27 }
 0x283   :  { %1399 = vrot.lane.b32.xlu1 %v6452_v44, %s4927_s25 }
 0x284   :  { %1583 = vrot.lane.b32.xlu0 %v6400_v60, %s4931_s29 }
 0x287   :  { %1397 = vrot.lane.b32.xlu1 %v6450_v61, %s4927_s25 }
 0x288   :  { %1629 = vrot.lane.b32.xlu0 %v6400_v60, %s4932_s30 }
 0x28b   :  { %1424 = vrot.lane.b32.xlu1 %v6436_v47, %s4934_s12 }
 0x28c   :  { %1303 = vrot.lane.b32.xlu0 %v6452_v44, %s4925_s24 }
 0x28f   :  { %1395 = vrot.lane.b32.xlu1 %v6436_v47, %s4927_s25 }
 0x290   :  { %1351 = vrot.lane.b32.xlu0 %v6452_v44, %s4926_s6 }
 0x293   :  { %1445 = vrot.lane.b32.xlu1 %v6452_v44, %s4928_s26 }
 0x294   :  { %1332 = vrot.lane.b32.xlu0 %v6464_v58, %s4930_s28 }
 0x297   :  { %1443 = vrot.lane.b32.xlu1 %v6450_v61, %s4928_s26 }
 0x298   :  { %1311 = vrot.lane.b32.xlu0 %v6474_v23, %s4925_s24 }
 0x29b   :  { %1470 = vrot.lane.b32.xlu1 %v6436_v47, %s4935_s13 }
 0x29c   :  { %1307 = vrot.lane.b32.xlu0 %v6464_v58, %s4925_s24 }
 0x29f   :  { %1441 = vrot.lane.b32.xlu1 %v6436_v47, %s4928_s26 }
 0x2a0   :  { %1380 = vrot.lane.b32.xlu0 %v6464_v58, %s4933_s11  ;;  %s4953_s11 = smov 84  }
 0x2a3   :  { %1491 = vrot.lane.b32.xlu1 %v6452_v44, %s4924_s23 }
 0x2a4   :  { %1359 = vrot.lane.b32.xlu0 %v6474_v23, %s4926_s6 }
 0x2a7   :  { %1489 = vrot.lane.b32.xlu1 %v6450_v61, %s4924_s23 }
 0x2a8   :  { %1355 = vrot.lane.b32.xlu0 %v6464_v58, %s4926_s6 }
 0x2ab   :  { %1515 = vrot.lane.b32.xlu1 %v6436_v47, %s4923_s0 }
 0x2ac   :  { %1405 = vrot.lane.b32.xlu0 %v6472_v59, %s4927_s25 }
 0x2af   :  { %1487 = vrot.lane.b32.xlu1 %v6436_v47, %s4924_s23 }
 0x2b0   :  { %1426 = vrot.lane.b32.xlu0 %v6464_v58, %s4934_s12 }
 0x2b3   :  { %1535 = vrot.lane.b32.xlu1 %v6452_v44, %s4929_s27 }
 0x2b4   :  { %1403 = vrot.lane.b32.xlu0 %v6464_v58, %s4927_s25 }
 0x2b7   :  { %1533 = vrot.lane.b32.xlu1 %v6450_v61, %s4929_s27 }
 0x2b8   :  { %1451 = vrot.lane.b32.xlu0 %v6472_v59, %s4928_s26 }
 0x2bb   :  { %1560 = vrot.lane.b32.xlu1 %v6436_v47, %s4936_s14 }
 0x2bc   :  { %1472 = vrot.lane.b32.xlu0 %v6464_v58, %s4935_s13  ;;  %s4954_s13 = smov 28  }
 0x2bf   :  { %1531 = vrot.lane.b32.xlu1 %v6436_v47, %s4929_s27 }
 0x2c0   :  { %1449 = vrot.lane.b32.xlu0 %v6464_v58, %s4928_s26 }
 0x2c3   :  { %1581 = vrot.lane.b32.xlu1 %v6452_v44, %s4931_s29 }
 0x2c4   :  { %1497 = vrot.lane.b32.xlu0 %v6472_v59, %s4924_s23 }
 0x2c6   :  { %v6560_v60 = vpop.permute.xlu0 %1313 }
 0x2c7   :  { %1579 = vrot.lane.b32.xlu1 %v6450_v61, %s4931_s29 }
 0x2c8   :  { %1517 = vrot.lane.b32.xlu0 %v6464_v58, %s4923_s0 }
 0x2ca   :  { %v6566_v40 = vpop.permute.xlu0 %1361  ;;  %v6579_v7 = vpop.permute.xlu1 %1305 }
 0x2cb   :  { %1606 = vrot.lane.b32.xlu1 %v6436_v47, %s4937_s15 }
 0x2cc   :  { %1495 = vrot.lane.b32.xlu0 %v6464_v58, %s4924_s23 }
 0x2ce   :  { %v6571_v29 = vpop.permute.xlu0 %1409  ;;  %v6591_v9 = vpop.permute.xlu1 %1353 }
 0x2cf   :  { %1577 = vrot.lane.b32.xlu1 %v6436_v47, %s4931_s29 }
 0x2d0   :  { %1541 = vrot.lane.b32.xlu0 %v6472_v59, %s4929_s27 }
 0x2d2   :  { %v6577_v31 = vpop.permute.xlu0 %1455 }
 0x2d3   :  { %1627 = vrot.lane.b32.xlu1 %v6452_v44, %s4932_s30 }
 0x2d4   :  { %1562 = vrot.lane.b32.xlu0 %v6464_v58, %s4936_s14 }
 0x2d6   :  { %v6585_v6 = vpop.permute.xlu0 %1501 }
 0x2d7   :  { %1625 = vrot.lane.b32.xlu1 %v6450_v61, %s4932_s30 }
 0x2d8   :  { %1539 = vrot.lane.b32.xlu0 %v6464_v58, %s4929_s27 }
 0x2da   :  { %v6593_v13 = vpop.permute.xlu0 %1545 }
 0x2db   :  { %1652 = vrot.lane.b32.xlu1 %v6436_v47, %s4938_s16 }
 0x2dc   :  { %1587 = vrot.lane.b32.xlu0 %v6472_v59, %s4931_s29 }
 0x2dd   :  { %v1331_v26 = vpop.permute.xlu1 %1330 }
 0x2de   :  { %v1337_v56 = vsel %vm7913_vm7, %v6579_v7, %v1331_v26  ;;  %v6600_v25 = vpop.permute.xlu0 %1591 }
 0x2df   :  { %1342 = vst.msk [vmem:[#allocation2 + $0x58] sm:$0xff] %vm1285_vm5, %v1337_v56  ;;  %1309 = vrot.lane.b32.xlu1 %v6472_v59, %s4925_s24 }
 0x2e0   :  { %1608 = vrot.lane.b32.xlu0 %v6464_v58, %s4937_s15  ;;  %s4955_s15 = smov 64  }
 0x2e1   :  { %v1302_v38 = vpop.permute.xlu1 %1301 }
 0x2e2   :  { %v6606_v14 = vpop.permute.xlu0 %1637 }
 0x2e3   :  { %1357 = vrot.lane.b32.xlu1 %v6472_v59, %s4926_s6  ;;  %s4947_s6 = smov 124  }
 0x2e4   :  { %1585 = vrot.lane.b32.xlu0 %v6464_v58, %s4931_s29 }
 0x2e5   :  { %v1300_v22 = vpop.permute.xlu1 %1299 }
 0x2e6   :  { %v6613_v12 = vsel %vm1315_vm8, %v1300_v22, %v1302_v38  ;;  %v1402_v54 = vpop.permute.xlu0 %1401 }
 0x2e7   :  { %1407 = vrot.lane.b32.xlu1 %v6474_v23, %s4927_s25 }
 0x2e8   :  { %1633 = vrot.lane.b32.xlu0 %v6472_v59, %s4932_s30 }
 0x2e9   :  { %v1379_v37 = vpop.permute.xlu1 %1378 }
 0x2ea   :  { %v1385_v55 = vsel %vm1384_vm9, %v6591_v9, %v1379_v37  ;;  %v1448_v42 = vpop.permute.xlu0 %1447 }
 0x2eb   :  { %1390 = vst.msk [vmem:[#allocation2 + $0x98] sm:$0xff] %vm1285_vm5, %v1385_v55  ;;  %1453 = vrot.lane.b32.xlu1 %v6474_v23, %s4928_s26  ;;  %s4949_s26 = smov 104  }
 0x2ec   :  { %1654 = vrot.lane.b32.xlu0 %v6464_v58, %s4938_s16  ;;  %s4957_s16 = smov 44  }
 0x2ed   :  { %v1350_v45 = vpop.permute.xlu1 %1349 }
 0x2ee   :  { %v6625_v61 = vpop.permute.xlu0 %1493 }
 0x2ef   :  { %1499 = vrot.lane.b32.xlu1 %v6474_v23, %s4924_s23 }
 0x2f0   :  { %1631 = vrot.lane.b32.xlu0 %v6464_v58, %s4932_s30 }
 0x2f1   :  { %v1348_v44 = vpop.permute.xlu1 %1347 }
 0x2f2   :  { %v6632_v46 = vsel %vm1363_vm10, %v1348_v44, %v1350_v45  ;;  %v6634_v8 = vpop.permute.xlu0 %1537 }
 0x2f3   :  { %1543 = vrot.lane.b32.xlu1 %v6474_v23, %s4929_s27 }
 0x2f5   :  { %v1400_v39 = vpop.permute.xlu1 %1399 }
 0x2f6   :  { %v6643_v41 = vpop.permute.xlu0 %1583  ;;  %v1414_v30 = vsel %vm1411_vm12, %v1400_v39, %v1402_v54 }
 0x2f7   :  { %1589 = vrot.lane.b32.xlu1 %v6474_v23, %s4931_s29  ;;  %s4951_s29 = smov 48  }
 0x2f9   :  { %v1398_v27 = vpop.permute.xlu1 %1397 }
 0x2fa   :  { %v6648_v15 = vsel %vm1411_vm12, %v1398_v27, %v1400_v39  ;;  %v6650_v58 = vpop.permute.xlu0 %1629  ;;  %v1690_v39 = vld [vmem:[#allocation2 + $0x58] sm:$0xff] }
 0x2fb   :  { %1635 = vrot.lane.b32.xlu1 %v6474_v23, %s4932_s30 }
 0x2fd   :  { %v1425_v28 = vpop.permute.xlu1 %1424 }
 0x2fe   :  { %v6656_v62 = vsel %vm1430_vm13, %v1414_v30, %v1425_v28  ;;  %1436 = vst.msk [vmem:[#allocation2 + $0xd8] sm:$0xff] %vm1285_vm5, %v1425_v28  ;;  %v1304_v63 = vpop.permute.xlu0 %1303 }
 0x2ff   :  { %v6660_v59 = vsel %vm1315_vm8, %v1302_v38, %v1304_v63  ;;  %v1318_v24 = vsel %vm1315_vm8, %v1304_v63, %v6579_v7  ;;  %1623 = vrot.lane.b32.xlu1 %v6436_v47, %s4932_s30  ;;  %s4952_s30 = smov 12  }
 0x301   :  { %v1396_v23 = vpop.permute.xlu1 %1395 }
 0x302   :  { %v6667_v57 = vsel %vm1411_vm12, %v1396_v23, %v1398_v27  ;;  %v1352_v11 = vpop.permute.xlu0 %1351 }
 0x303   :  { %v6670_v26 = vsel %vm1363_vm10, %v1350_v45, %v1352_v11  ;;  %v1366_v56 = vsel %vm1363_vm10, %v1352_v11, %v6591_v9 }
 0x305   :  { %v1446_v22 = vpop.permute.xlu1 %1445 }
 0x306   :  { %v1333_v38 = vpop.permute.xlu0 %1332  ;;  %v1460_v9 = vsel %vm1457_vm14, %v1446_v22, %v1448_v42 }
 0x307   :  { %v1338_v54 = vsel %vm7913_vm7, %v6560_v60, %v1333_v38  ;;  %vm1658_vm7 = vcmask 867328  }
 0x308   :  { %1346 = vst.msk [vmem:[#allocation2 + $0x78] sm:$0xff] %vm1285_vm5, %v1338_v54 }
 0x309   :  { %v1444_v47 = vpop.permute.xlu1 %1443 }
 0x30a   :  { %v6678_v7 = vsel %vm1457_vm14, %v1444_v47, %v1446_v22  ;;  %v6680_v37 = vpop.permute.xlu0 %1311 }
 0x30b   :  { %v1321_v55 = vsel %vm1315_vm8, %v6680_v37, %v6560_v60 }
 0x30c   :  { %v4550_v63 = vpack.c.bf16 %v1321_v55, %v1318_v24  ;;  %v1698_v55 = vld [vmem:[#allocation2 + $0x98] sm:$0xff] }
 0x30d   :  { %v1471_v45 = vpop.permute.xlu1 %1470 }
 0x30e   :  { %v6687_v44 = vsel %vm1476_vm15, %v1460_v9, %v1471_v45  ;;  %1482 = vst.msk [vmem:[#allocation2 + $0x118] sm:$0xff] %vm1285_vm5, %v1471_v45  ;;  %v6690_v43 = vpop.permute.xlu0 %1307 }
 0x30f   :  { %v1694_v27 = vld [vmem:[#allocation2 + $0x78] sm:$0xff] }
 0x310   :  { %v4548_v30 = vpack.c.bf16 %v1694_v27, %v1690_v39 }
 0x311   :  { %v1442_v28 = vpop.permute.xlu1 %1441 }
 0x312   :  { %v6693_v23 = vsel %vm1457_vm14, %v1442_v28, %v1444_v47  ;;  %v1381_v60 = vpop.permute.xlu0 %1380  ;;  %4549 = vmatprep.subr.bf16.mxu0 %v4548_v30 }
 0x313   :  { %v1386_v42 = vsel %vm1384_vm9, %v6566_v40, %v1381_v60  ;;  %4551 = vmatpush1.bf16.msra.mxu0 %v4550_v63  ;;  %vm1639_vm9 = vcmask 801792  }
 0x314   :  { %1394 = vst.msk [vmem:[#allocation2 + $0xb8] sm:$0xff] %vm1285_vm5, %v1386_v42 }
 0x315   :  { %v1492_v11 = vpop.permute.xlu1 %1491 }
 0x316   :  { %v6698_v22 = vpop.permute.xlu0 %1359  ;;  %v1505_v39 = vsel %vm7945_vm6, %v1492_v11, %v6625_v61 }
 0x317   :  { %v1369_v38 = vsel %vm1363_vm10, %v6698_v22, %v6566_v40 }
 0x318   :  { %v4554_v30 = vpack.c.bf16 %v1369_v38, %v1366_v56 }
 0x319   :  { %v1490_v54 = vpop.permute.xlu1 %1489 }
 0x31a   :  { %v6704_v24 = vsel %vm7945_vm6, %v1490_v54, %v1492_v11  ;;  %v6706_v47 = vpop.permute.xlu0 %1355 }
 0x31b   :  { %v1702_v9 = vld [vmem:[#allocation2 + $0xb8] sm:$0xff] }
 0x31c   :  { %v4552_v45 = vpack.c.bf16 %v1702_v9, %v1698_v55 }
 0x31d   :  { %v1516_v27 = vpop.permute.xlu1 %1515 }
 0x31e   :  { %v6711_v28 = vsel %vm7927_vm4, %v1505_v39, %v1516_v27  ;;  %1526 = vst.msk [vmem:[#allocation2 + $0x158] sm:$0xff] %vm1285_vm5, %v1516_v27  ;;  %v6714_v40 = vpop.permute.xlu0 %1405  ;;  %4553 = vmatprep.subr.bf16.mxu0 %v4552_v45 }
 0x31f   :  { %4555 = vmatpush1.bf16.msra.mxu0 %v4554_v30 }
 0x321   :  { %v1488_v63 = vpop.permute.xlu1 %1487 }
 0x322   :  { %v6717_v60 = vsel %vm7945_vm6, %v1488_v63, %v1490_v54  ;;  %v6719_v42 = vpop.permute.xlu0 %1426  ;;  %v1706_v54 = vld [vmem:[#allocation2 + $0xd8] sm:$0xff] }
 0x323   :  { %1440 = vst.msk [vmem:[#allocation2 + $0xf8] sm:$0xff] %vm1285_vm5, %v6719_v42 }
 0x325   :  { %v1536_v61 = vpop.permute.xlu1 %1535 }
 0x326   :  { %v1404_v56 = vpop.permute.xlu0 %1403  ;;  %v1550_v27 = vsel %vm7932_vm0, %v1536_v61, %v6634_v8 }
 0x327   :  { %v6725_v11 = vsel %vm1411_vm12, %v1404_v56, %v6714_v40 }
 0x329   :  { %v1534_v38 = vpop.permute.xlu1 %1533 }
 0x32a   :  { %v6728_v55 = vsel %vm7932_vm0, %v1534_v38, %v1536_v61  ;;  %v6730_v9 = vpop.permute.xlu0 %1451  ;;  %v1710_v45 = vld [vmem:[#allocation2 + $0xf8] sm:$0xff] }
 0x32b   :  { %v4556_v39 = vpack.c.bf16 %v1710_v45, %v1706_v54 }
 0x32d   :  { %4557 = vmatprep.subr.bf16.mxu0 %v4556_v39  ;;  %v1561_v30 = vpop.permute.xlu1 %1560 }
 0x32e   :  { %v6735_v63 = vsel %vm7931_vm1, %v1550_v27, %v1561_v30  ;;  %1572 = vst.msk [vmem:[#allocation2 + $0x198] sm:$0xff] %vm1285_vm5, %v1561_v30  ;;  %v6738_v56 = vpop.permute.xlu0 %1472 }
 0x32f   :  { %1486 = vst.msk [vmem:[#allocation2 + $0x138] sm:$0xff] %vm1285_vm5, %v6738_v56 }
 0x331   :  { %v1532_v36 = vpop.permute.xlu1 %1531 }
 0x332   :  { %v6743_v5 = vsel %vm7932_vm0, %v1532_v36, %v1534_v38  ;;  %v1450_v54 = vpop.permute.xlu0 %1449 }
 0x333   :  { %v6747_v8 = vsel %vm1457_vm14, %v1450_v54, %v6730_v9 }
 0x335   :  { %v1582_v61 = vpop.permute.xlu1 %1581 }
 0x336   :  { %v6749_v45 = vpop.permute.xlu0 %1497  ;;  %v1596_v36 = vsel %vm1593_vm2, %v1582_v61, %v6643_v41 }
 0x339   :  { %v1580_v39 = vpop.permute.xlu1 %1579 }
 0x33a   :  { %v6752_v27 = vsel %vm1593_vm2, %v1580_v39, %v1582_v61  ;;  %v6754_v30 = vpop.permute.xlu0 %1517 }
 0x33b   :  { %1530 = vst.msk [vmem:[#allocation2 + $0x178] sm:$0xff] %vm1285_vm5, %v6754_v30 }
 0x33d   :  { %v1607_v38 = vpop.permute.xlu1 %1606 }
 0x33e   :  { %v6761_v54 = vsel %vm1612_vm3, %v1596_v36, %v1607_v38  ;;  %1618 = vst.msk [vmem:[#allocation2 + $0x1d8] sm:$0xff] %vm1285_vm5, %v1607_v38  ;;  %v1496_v4 = vpop.permute.xlu0 %1495 }
 0x33f   :  { %v6766_v53 = vsel %vm7945_vm6, %v1496_v4, %v6749_v45 }
 0x341   :  { %v1578_v52 = vpop.permute.xlu1 %1577 }
 0x342   :  { %v6769_v21 = vsel %vm1593_vm2, %v1578_v52, %v1580_v39  ;;  %v6771_v20 = vpop.permute.xlu0 %1541 }
 0x345   :  { %v1628_v35 = vpop.permute.xlu1 %1627 }
 0x346   :  { %v6773_v34 = vpop.permute.xlu0 %1562  ;;  %v1642_v39 = vsel %vm1639_vm9, %v1628_v35, %v6650_v58 }
 0x347   :  { %1576 = vst.msk [vmem:[#allocation2 + $0x1b8] sm:$0xff] %vm1285_vm5, %v6773_v34 }
 0x349   :  { %v6777_v41 = vpop.permute.xlu1 %1625 }
 0x34a   :  { %v6781_v61 = vsel %vm1639_vm9, %v6777_v41, %v1628_v35  ;;  %v1540_v4 = vpop.permute.xlu0 %1539 }
 0x34b   :  { %v6785_v52 = vsel %vm7932_vm0, %v1540_v4, %v6771_v20 }
 0x34d   :  { %v1653_v36 = vpop.permute.xlu1 %1652 }
 0x34e   :  { %v6790_v38 = vsel %vm1658_vm7, %v1642_v39, %v1653_v36  ;;  %1664 = vst.msk [vmem:[#allocation2 + $0x218] sm:$0xff] %vm1285_vm5, %v1653_v36  ;;  %v6793_v3 = vpop.permute.xlu0 %1587 }
 0x351   :  { %v1310_v2 = vpop.permute.xlu1 %1309 }
 0x352   :  { %v1319_v51 = vsel %vm1315_vm8, %v6690_v43, %v1310_v2  ;;  %v1320_v4 = vsel %vm1315_vm8, %v1310_v2, %v6680_v37  ;;  %v6799_v50 = vpop.permute.xlu0 %1608 }
 0x353   :  { %1622 = vst.msk [vmem:[#allocation2 + $0x1f8] sm:$0xff] %vm1285_vm5, %v6799_v50  ;;  %v4512_v35 = vpack.c.bf16 %v1320_v4, %v6660_v59  ;;  %v4514_v58 = vpack.c.bf16 %v1319_v51, %v6613_v12 }
 0x355   :  { %v1358_v39 = vpop.permute.xlu1 %1357  ;;  %4513 = vmatprep.subr.bf16.mxu1 %v4512_v35 }
 0x356   :  { %v1367_v36 = vsel %vm1363_vm10, %v6706_v47, %v1358_v39  ;;  %v1368_v43 = vsel %vm1363_vm10, %v1358_v39, %v6698_v22  ;;  %v1586_v19 = vpop.permute.xlu0 %1585  ;;  %4515 = vmatpush1.bf16.msra.mxu1 %v4514_v58  ;;  %v1718_v22 = vld [vmem:[#allocation2 + $0x138] sm:$0xff] }
 0x357   :  { %v6811_v2 = vsel %vm1593_vm2, %v1586_v19, %v6793_v3  ;;  %v4516_v37 = vpack.c.bf16 %v1368_v43, %v6670_v26  ;;  %v4518_v59 = vpack.c.bf16 %v1367_v36, %v6632_v46  ;;  %v4522_v46 = vpack.c.bf16 %v6725_v11, %v6667_v57  ;;  %v1714_v58 = vld [vmem:[#allocation2 + $0x118] sm:$0xff] }
 0x359   :  { %v1408_v4 = vpop.permute.xlu1 %1407  ;;  %4517 = vmatprep.subr.bf16.mxu1 %v4516_v37 }
 0x35a   :  { %v1416_v51 = vsel %vm1411_vm12, %v6714_v40, %v1408_v4  ;;  %v1417_v12 = vsel %vm1411_vm12, %v1408_v4, %v6571_v29  ;;  %v6819_v47 = vpop.permute.xlu0 %1633  ;;  %4519 = vmatpush1.bf16.msra.mxu1 %v4518_v59  ;;  %v4560_v40 = vpack.c.bf16 %v1718_v22, %v1714_v58 }
 0x35b   :  { %v1432_v19 = vsel %vm1430_vm13, %v1417_v12, %v6719_v42  ;;  %v4520_v35 = vpack.c.bf16 %v1416_v51, %v6648_v15  ;;  %v1726_v15 = vld [vmem:[#allocation2 + $0x178] sm:$0xff]  ;;  %v4526_v42 = vpack.c.bf16 %v6747_v8, %v6693_v23  ;;  %v4530_v8 = vpack.c.bf16 %v6766_v53, %v6717_v60 }
 0x35c   :  { %v4558_v26 = vpack.c.bf16 %v1432_v19, %v6656_v62  ;;  %v1734_v51 = vld [vmem:[#allocation2 + $0x1b8] sm:$0xff] }
 0x35d   :  { %v1454_v39 = vpop.permute.xlu1 %1453  ;;  %4521 = vmatprep.subr.bf16.mxu1 %v4520_v35  ;;  %v1730_v12 = vld [vmem:[#allocation2 + $0x198] sm:$0xff] }
 0x35e   :  { %v1462_v29 = vsel %vm1457_vm14, %v6730_v9, %v1454_v39  ;;  %v1463_v36 = vsel %vm1457_vm14, %v1454_v39, %v6577_v31  ;;  %v6831_v43 = vpop.permute.xlu0 %1654  ;;  %4523 = vmatpush1.bf16.msra.mxu1 %v4522_v46  ;;  %4559 = vmatpush1.bf16.msra.mxu0 %v4558_v26  ;;  %v1722_v31 = vld [vmem:[#allocation2 + $0x158] sm:$0xff]  ;;  %v4568_v22 = vpack.c.bf16 %v1734_v51, %v1730_v12 }
 0x35f   :  { %v1478_v57 = vsel %vm1476_vm15, %v1463_v36, %v6738_v56  ;;  %1668 = vst.msk [vmem:[#allocation2 + $0x238] sm:$0xff] %vm1285_vm5, %v6831_v43  ;;  %4561 = vmatprep.subr.bf16.mxu0 %v4560_v40  ;;  %v4524_v62 = vpack.c.bf16 %v1462_v29, %v6678_v7  ;;  %v4564_v37 = vpack.c.bf16 %v1726_v15, %v1722_v31  ;;  %v1742_v35 = vld [vmem:[#allocation2 + $0x1f8] sm:$0xff]  ;;  %v1675_v15 = vld [vmem:[%s7903_s3 + $0x30] sm:$0xff]  ;;  %vm8102_vm5 = vcmask 56320  }
 0x360   :  { %v4562_v11 = vpack.c.bf16 %v1478_v57, %v6687_v44  ;;  %v1738_v46 = vld [vmem:[#allocation2 + $0x1d8] sm:$0xff]  ;;  %v1678_v57 = vld [vmem:[%s7903_s3 + $0x48] sm:$0xf]  ;;  %vm8104_vm10 = vmmov %vm8102_vm5 }
 0x361   :  { %v1500_v9 = vpop.permute.xlu1 %1499  ;;  %4525 = vmatprep.subr.bf16.mxu1 %v4524_v62  ;;  %v1746_v39 = vld [vmem:[#allocation2 + $0x218] sm:$0xff]  ;;  %v1677_v62 = vld [vmem:[%s7903_s3 + $0x40] sm:$0xf]  ;;  %vm8105_vm14 = vmmov %vm8102_vm5 }
 0x362   :  { %v1507_v59 = vsel %vm7945_vm6, %v6749_v45, %v1500_v9  ;;  %v1508_v56 = vsel %vm7945_vm6, %v1500_v9, %v6585_v6  ;;  %v1632_v4 = vpop.permute.xlu0 %1631  ;;  %4527 = vmatpush1.bf16.msra.mxu1 %v4526_v42  ;;  %4563 = vmatpush1.bf16.msra.mxu0 %v4562_v11  ;;  %v1672_v36 = vld [vmem:[%s7903_s3 + $0x18] sm:$0xff]  ;;  %vm8106_vm15 = vmmov %vm8102_vm5 }
 0x363   :  { %v1522_v7 = vsel %vm7927_vm4, %v1508_v56, %v6754_v30  ;;  %v1643_v44 = vsel %vm1639_vm9, %v1632_v4, %v6819_v47  ;;  %4565 = vmatprep.subr.bf16.mxu0 %v4564_v37  ;;  %v4528_v23 = vpack.c.bf16 %v1507_v59, %v6704_v24 }
 0x364   :  { %v4566_v45 = vpack.c.bf16 %v1522_v7, %v6711_v28  ;;  %v4534_v28 = vpack.c.bf16 %v6785_v52, %v6743_v5 }
 0x365   :  { %v1544_v6 = vpop.permute.xlu1 %1543  ;;  %4529 = vmatprep.subr.bf16.mxu1 %v4528_v23 }
 0x366   :  { %v1552_v19 = vsel %vm7932_vm0, %v6771_v20, %v1544_v6  ;;  %v1553_v30 = vsel %vm7932_vm0, %v1544_v6, %v6593_v13  ;;  %4531 = vmatpush1.bf16.msra.mxu1 %v4530_v8  ;;  %4567 = vmatpush1.bf16.msra.mxu0 %v4566_v45  ;;  %v4572_v20 = vpack.c.bf16 %v1742_v35, %v1738_v46  ;;  %v2226_v46 = vld [vmem:[%s7904_s4 + $0x20] sm:$0xf] }
 0x367   :  { %v1568_v24 = vsel %vm7931_vm1, %v1553_v30, %v6773_v34  ;;  %4569 = vmatprep.subr.bf16.mxu0 %v4568_v22  ;;  %v4532_v53 = vpack.c.bf16 %v1552_v19, %v6728_v55  ;;  %v1750_v34 = vld [vmem:[#allocation2 + $0x238] sm:$0xff] }
 0x368   :  { %v4570_v60 = vpack.c.bf16 %v1568_v24, %v6735_v63  ;;  %v4538_v63 = vpack.c.bf16 %v6811_v2, %v6769_v21  ;;  %v2222_v24 = vld [vmem:[%s7904_s4] sm:$0xff] }
 0x369   :  { %v1590_v26 = vpop.permute.xlu1 %1589  ;;  %4533 = vmatprep.subr.bf16.mxu1 %v4532_v53  ;;  %v2223_v53 = vld [vmem:[%s7904_s4 + $0x8] sm:$0xff] }
 0x36a   :  { %v1598_v13 = vsel %vm1593_vm2, %v6793_v3, %v1590_v26  ;;  %v1599_v58 = vsel %vm1593_vm2, %v1590_v26, %v6600_v25  ;;  %4535 = vmatpush1.bf16.msra.mxu1 %v4534_v28  ;;  %4571 = vmatpush1.bf16.msra.mxu0 %v4570_v60  ;;  %v4576_v3 = vpack.c.bf16 %v1750_v34, %v1746_v39  ;;  %v2224_v28 = vld [vmem:[%s7904_s4 + $0x10] sm:$0xff]  ;;  %v2225_v60 = vld [vmem:[%s7904_s4 + $0x18] sm:$0xff]  ;;  %v2292_v26 = vld [vmem:[%s7905_s5] sm:$0xff]  ;;  %vm2333_vm2 = vcmask 1043456   ;;  %s4956_s4 = smov 8  }
 0x36b   :  { %v1614_v55 = vsel %vm1612_vm3, %v1599_v58, %v6799_v50  ;;  %4573 = vmatprep.subr.bf16.mxu0 %v4572_v20  ;;  %v4536_v5 = vpack.c.bf16 %v1598_v13, %v6752_v27  ;;  %v2293_v20 = vld [vmem:[%s7905_s5 + $0x8] sm:$0xff]  ;;  %v4939_v13 = vmov 0.0|0.0   ;;  %vm7944_vm3 = vcmask 581920  }
 0x36c   :  { %v4574_v52 = vpack.c.bf16 %v1614_v55, %v6761_v54  ;;  %v4581_v58 = vpack.c.bf16 %v2293_v20, %v2292_v26  ;;  %v2303_v26 = vld [vmem:[%s7905_s5 + $0x58] sm:$0xff] }
 0x36d   :  { %v1636_v40 = vpop.permute.xlu1 %1635  ;;  %4537 = vmatprep.subr.bf16.mxu1 %v4536_v5  ;;  %v2294_v5 = vld [vmem:[%s7905_s5 + $0x10] sm:$0xff] }
 0x36e   :  { %v1644_v25 = vsel %vm1639_vm9, %v6819_v47, %v1636_v40  ;;  %v1645_v29 = vsel %vm1639_vm9, %v1636_v40, %v6606_v14  ;;  %4539 = vmatpush1.bf16.msra.mxu1 %v4538_v63  ;;  %4575 = vmatpush1.bf16.msra.mxu0 %v4574_v52  ;;  %v1669_v14 = vld [vmem:[%s7903_s3] sm:$0xff]  ;;  %v2295_v63 = vld [vmem:[%s7905_s5 + $0x18] sm:$0xff] }
 0x36f   :  { %v1660_v50 = vsel %vm1658_vm7, %v1645_v29, %v6831_v43  ;;  %4577 = vmatprep.subr.bf16.mxu0 %v4576_v3  ;;  %v4540_v21 = vpack.c.bf16 %v1644_v25, %v6781_v61  ;;  %v1671_v61 = vld [vmem:[%s7903_s3 + $0x10] sm:$0xff]  ;;  %v1676_v43 = vld [vmem:[%s7903_s3 + $0x38] sm:$0xff]  ;;  %v4584_v39 = vpack.c.bf16 %v2295_v63, %v2294_v5  ;;  %v2296_v3 = vld [vmem:[%s7905_s5 + $0x20] sm:$0xff] }
 0x370   :  { %v4578_v27 = vpack.c.bf16 %v1660_v50, %v6790_v38  ;;  %v1673_v38 = vld [vmem:[%s7903_s3 + $0x20] sm:$0xff]  ;;  %v2297_v25 = vld [vmem:[%s7905_s5 + $0x28] sm:$0xff]  ;;  %vm8103_vm7 = vmmov %vm8102_vm5 }
 0x371   :  { %v1624_v54 = vpop.permute.xlu1 %1623  ;;  %4541 = vmatprep.subr.bf16.mxu1 %v4540_v21 }
 0x372   :  { %v1640_v2 = vsel %vm1639_vm9, %v1624_v54, %v6777_v41  ;;  %4579 = vmatpush1.bf16.msra.mxu0 %v4578_v27  ;;  %v1674_v41 = vld [vmem:[%s7903_s3 + $0x28] sm:$0xff]  ;;  %v4587_v27 = vpack.c.bf16 %v2297_v25, %v2296_v3  ;;  %v2306_v3 = vld [vmem:[%s7905_s5 + $0x70] sm:$0xff]  ;;  %v2307_v25 = vld [vmem:[%s7905_s5 + $0x78] sm:$0xff]  ;;  %s4963_s3 = smov 40   ;;  %vm7933_vm9 = vcmask 877120  }
 0x373   :  { %v4542_v47 = vpack.c.bf16 %v1643_v44, %v1640_v2  ;;  %4616 = vmatprep.subr.bf16.mxu0 %v4939_v13 }
 0x375   :  { %4543 = vmatpush1.bf16.msra.mxu1 %v4542_v47  ;;  %1927 = vmatmul.mubr.f32.vlgmr.msra.gmra.mrb[10].mxu0 %v1669_v14 }
 0x376   :  { %4026 = vmatprep.mubr.msk.f32.mxu0 %vm7917_vm11, %v1672_v36  ;;  %4580 = vmatprep.subr.bf16.mxu1 %v4939_v13 }
 0x377   :  { %4618 = vmatpush1.bf16.msra.mxu0 %v4581_v58 }
 0x378   :  { %1832 = vmatmul.mubr.f32.vlgmr.msra.gmra.mrb[16].mxu1 %v1669_v14  ;;  %4619 = vmatprep.subr.bf16.mxu0 %v4939_v13 }
 0x379   :  { %1933 = vmatmul.mubr.f32.gmra.mrb[12].mxu0 %v1671_v61  ;;  %4021 = vmatprep.mubr.msk.f32.mxu1 %vm7917_vm11, %v1672_v36 }
 0x37a   :  { %4027 = vmatprep.mubr.msk.f32.mxu0 %vm7917_vm11, %v1674_v41  ;;  %4582 = vmatpush1.bf16.msra.mxu1 %v4581_v58 }
 0x37b   :  { %4583 = vmatprep.subr.bf16.mxu1 %v4939_v13  ;;  %4621 = vmatpush1.bf16.msra.mxu0 %v4584_v39 }
 0x37c   :  { %1838 = vmatmul.mubr.f32.gmra.mrb[18].mxu1 %v1671_v61  ;;  %4622 = vmatprep.subr.bf16.mxu0 %v4939_v13  ;;  %v2298_v61 = vld [vmem:[%s7905_s5 + $0x30] sm:$0xff] }
 0x37d   :  { %1939 = vmatmul.mubr.f32.gmra.mrb[14].mxu0 %v1673_v38  ;;  %4022 = vmatprep.mubr.msk.f32.mxu1 %vm7917_vm11, %v1674_v41  ;;  %v2299_v41 = vld [vmem:[%s7905_s5 + $0x38] sm:$0xff] }
 0x37e   :  { %4028 = vmatprep.mubr.msk.f32.mxu0 %vm7917_vm11, %v1676_v43  ;;  %4585 = vmatpush1.bf16.msra.mxu1 %v4584_v39  ;;  %v2305_v39 = vld [vmem:[%s7905_s5 + $0x68] sm:$0xff] }
 0x37f   :  { %4586 = vmatprep.subr.bf16.mxu1 %v4939_v13  ;;  %4624 = vmatpush1.bf16.msra.mxu0 %v4587_v27 }
 0x380   :  { %1844 = vmatmul.mubr.f32.gmra.mrb[20].mxu1 %v1673_v38  ;;  %4625 = vmatprep.subr.bf16.mxu0 %v4939_v13 }
 0x381   :  { %4023 = vmatprep.mubr.msk.f32.mxu1 %vm7917_vm11, %v1676_v43  ;;  %1945 = vmatmul.mubr.f32.gmra.mrb[16].mxu0 %v1675_v15  ;;  %v4590_v43 = vpack.c.bf16 %v2299_v41, %v2298_v61 }
 0x382   :  { %4029 = vmatprep.mubr.msk.f32.mxu0 %vm7917_vm11, %v1678_v57  ;;  %4588 = vmatpush1.bf16.msra.mxu1 %v4587_v27  ;;  %v4602_v27 = vpack.c.bf16 %v2307_v25, %v2306_v3 }
 0x383   :  { %4589 = vmatprep.subr.bf16.mxu1 %v4939_v13  ;;  %4627 = vmatpush1.bf16.msra.mxu0 %v4590_v43 }
 0x384   :  { %1850 = vmatmul.mubr.f32.gmra.mrb[22].mxu1 %v1675_v15  ;;  %4628 = vmatprep.subr.bf16.mxu0 %v4939_v13 }
 0x385   :  { %1951 = vmatmul.mubr.f32.gmra.mrb[18].mxu0 %v1677_v62  ;;  %4024 = vmatprep.mubr.msk.f32.mxu1 %vm7917_vm11, %v1678_v57  ;;  %vm2526_vm11 = vcmask 1041216  }
 0x386   :  { %4591 = vmatpush1.bf16.msra.mxu1 %v4590_v43 }
 0x387   :  { %4592 = vmatprep.subr.bf16.mxu1 %v4939_v13 }
 0x388   :  { %1856 = vmatmul.mubr.f32.gmra.mrb[24].mxu1 %v1677_v62 }
 0x448   :  { %v6918_v42 = vpop.f32.mrb[10].mxu0 }
 0x449   :  { %1981 = vrot.lane.b32.xlu1 %v6918_v42, %s4925_s24  ;;  %v6922_v11 = vpop.f32.mrb[11].mxu0 }
 0x44b   :  { %v6924_v31 = vpop.f32.mrb[16].mxu1 }
 0x44c   :  { %1977 = vrot.lane.b32.xlu0 %v6924_v31, %s4925_s24  ;;  %v6928_v9 = vpop.f32.mrb[17].mxu1  ;;  %v6930_v37 = vpop.f32.mrb[12].mxu0 }
 0x44d   :  { %2052 = vrot.lane.b32.xlu1 %v6924_v31, %s4930_s28  ;;  %v6934_v59 = vpop.f32.mrb[13].mxu0 }
 0x44f   :  { %v6936_v56 = vpop.f32.mrb[18].mxu1 }
 0x450   :  { %1983 = vrot.lane.b32.xlu0 %v6922_v11, %s4925_s24  ;;  %v6940_v4 = vpop.f32.mrb[19].mxu1  ;;  %v6942_v51 = vpop.f32.mrb[14].mxu0 }
 0x451   :  { %1979 = vrot.lane.b32.xlu1 %v6928_v9, %s4925_s24  ;;  %v6946_v7 = vpop.f32.mrb[15].mxu0 }
 0x453   :  { %v6948_v44 = vpop.f32.mrb[20].mxu1 }
 0x454   :  { %1989 = vrot.lane.b32.xlu0 %v6930_v37, %s4925_s24  ;;  %v6952_v23 = vpop.f32.mrb[21].mxu1  ;;  %v6954_v8 = vpop.f32.mrb[16].mxu0 }
 0x455   :  { %1985 = vrot.lane.b32.xlu1 %v6936_v56, %s4925_s24  ;;  %v6958_v45 = vpop.f32.mrb[17].mxu0 }
 0x457   :  { %v6960_v12 = vpop.f32.mrb[22].mxu1 }
 0x458   :  { %2054 = vrot.lane.b32.xlu0 %v6936_v56, %s4930_s28  ;;  %v6964_v6 = vpop.f32.mrb[23].mxu1  ;;  %v6966_v22 = vpop.f32.mrb[18].mxu0 }
 0x459   :  { %1991 = vrot.lane.b32.xlu1 %v6934_v59, %s4925_s24  ;;  %v6970_v19 = vpop.f32.mrb[19].mxu0 }
 0x45b   :  { %v6972_v30 = vpop.f32.mrb[24].mxu1 }
 0x45c   :  { %1987 = vrot.lane.b32.xlu0 %v6940_v4, %s4925_s24  ;;  %v6976_v35 = vpop.f32.mrb[25].mxu1 }
 0x45d   :  { %1997 = vrot.lane.b32.xlu1 %v6942_v51, %s4925_s24 }
 0x460   :  { %1993 = vrot.lane.b32.xlu0 %v6948_v44, %s4925_s24 }
 0x461   :  { %2056 = vrot.lane.b32.xlu1 %v6948_v44, %s4930_s28 }
 0x464   :  { %1999 = vrot.lane.b32.xlu0 %v6946_v7, %s4925_s24 }
 0x465   :  { %1995 = vrot.lane.b32.xlu1 %v6952_v23, %s4925_s24 }
 0x468   :  { %2005 = vrot.lane.b32.xlu0 %v6954_v8, %s4925_s24 }
 0x469   :  { %2001 = vrot.lane.b32.xlu1 %v6960_v12, %s4925_s24 }
 0x46c   :  { %2058 = vrot.lane.b32.xlu0 %v6960_v12, %s4930_s28 }
 0x46d   :  { %2007 = vrot.lane.b32.xlu1 %v6958_v45, %s4925_s24 }
 0x470   :  { %2003 = vrot.lane.b32.xlu0 %v6964_v6, %s4925_s24 }
 0x471   :  { %2013 = vrot.lane.b32.xlu1 %v6966_v22, %s4925_s24 }
 0x474   :  { %2015 = vrot.lane.b32.xlu0 %v6970_v19, %s4925_s24 }
 0x475   :  { %2060 = vrot.lane.b32.xlu1 %v6972_v30, %s4930_s28  ;;  %s4948_s28 = smov 32  }
 0x478   :  { %2009 = vrot.lane.b32.xlu0 %v6972_v30, %s4925_s24 }
 0x479   :  { %2011 = vrot.lane.b32.xlu1 %v6976_v35, %s4925_s24  ;;  %s4950_s24 = smov 68  }
 0x47c   :  { %2229 = vperm.xlu0 %4889, %v2222_v24  }
 0x47d   :  { %2234 = vperm.xlu1 %4890, %v2223_v53  }
 0x480   :  { %2239 = vperm.xlu0 %4889, %v2224_v28  }
 0x481   :  { %2244 = vperm.xlu1 %4890, %v2225_v60  }
 0x485   :  { %2249 = vperm.xlu1 %4890, %v2226_v46   ;;  %v2302_v46 = vld [vmem:[%s7905_s5 + $0x50] sm:$0xff] }
 0x486   :  { %v4596_v58 = vpack.c.bf16 %v2303_v26, %v2302_v46 }
 0x4bb   :  { %v1982_v34 = vpop.permute.xlu1 %1981 }
 0x4be   :  { %v1978_v55 = vpop.permute.xlu0 %1977 }
 0x4bf   :  { %v2053_v52 = vpop.permute.xlu1 %2052 }
 0x4c2   :  { %v1984_v40 = vpop.permute.xlu0 %1983 }
 0x4c3   :  { %v2019_v29 = vsel %vm1315_vm8, %v1982_v34, %v1984_v40  ;;  %v2067_v50 = vsel %vm8102_vm5, %v1984_v40, %v2053_v52  ;;  %v1980_v21 = vpop.permute.xlu1 %1979  ;;  %v2304_v52 = vld [vmem:[%s7905_s5 + $0x60] sm:$0xff]  ;;  %vm2457_vm5 = vcmask 1041248  }
 0x4c4   :  { %v7050_v54 = vmax.f32 %v6918_v42, %v2019_v29  ;;  %v7053_v2 = vmax.f32 %v6922_v11, %v2067_v50  ;;  %v2017_v14 = vsel %vm1315_vm8, %v1978_v55, %v1980_v21  ;;  %v2018_v47 = vsel %vm1315_vm8, %v1980_v21, %v1982_v34  ;;  %v2300_v42 = vld [vmem:[%s7905_s5 + $0x40] sm:$0xff]  ;;  %v2301_v11 = vld [vmem:[%s7905_s5 + $0x48] sm:$0xff] }
 0x4c5   :  { %v7070_v15 = vmax.f32 %v6924_v31, %v2017_v14  ;;  %v7073_v57 = vmax.f32 %v6928_v9, %v2018_v47  ;;  %v4593_v9 = vpack.c.bf16 %v2301_v11, %v2300_v42 }
 0x4c6   :  { %v1990_v36 = vpop.permute.xlu0 %1989  ;;  %2116 = vrot.lane.b32.xlu1 %v7050_v54, %s4927_s25  ;;  %2118 = vrot.lane.b32.xlu0 %v7053_v2, %s4927_s25 }
 0x4c7   :  { %v1986_v38 = vpop.permute.xlu1 %1985  ;;  %4594 = vmatpush1.bf16.msra.mxu1 %v4593_v9  ;;  %4630 = vmatpush1.bf16.msra.mxu0 %v4593_v9 }
 0x4c8   :  { %4595 = vmatprep.subr.bf16.mxu1 %v4939_v13  ;;  %4631 = vmatprep.subr.bf16.mxu0 %v4939_v13 }
 0x4ca   :  { %v2055_v62 = vpop.permute.xlu0 %2054  ;;  %2114 = vrot.lane.b32.xlu0 %v7073_v57, %s4927_s25  ;;  %2182 = vrot.lane.b32.xlu1 %v7070_v15, %s4934_s12 }
 0x4cb   :  { %v1992_v31 = vpop.permute.xlu1 %1991  ;;  %4597 = vmatpush1.bf16.msra.mxu1 %v4596_v58  ;;  %4633 = vmatpush1.bf16.msra.mxu0 %v4596_v58  ;;  %v2312_v58 = vld [vmem:[%s7905_s5 + $0xa0] sm:$0xff] }
 0x4cc   :  { %v2022_v24 = vsel %vm1315_vm8, %v1990_v36, %v1992_v31  ;;  %v2068_v53 = vsel %vm8103_vm7, %v1992_v31, %v2055_v62  ;;  %4598 = vmatprep.subr.bf16.mxu1 %v4939_v13  ;;  %4634 = vmatprep.subr.bf16.mxu0 %v4939_v13  ;;  %v2310_v31 = vld [vmem:[%s7905_s5 + $0x90] sm:$0xff]  ;;  %vm2458_vm7 = vcmask 124930  }
 0x4cd   :  { %v7090_v28 = vmax.f32 %v6930_v37, %v2022_v24  ;;  %v7093_v60 = vmax.f32 %v6934_v59, %v2068_v53 }
 0x4ce   :  { %v1988_v20 = vpop.permute.xlu0 %1987 }
 0x4cf   :  { %v2020_v37 = vsel %vm1315_vm8, %v1986_v38, %v1988_v20  ;;  %v2021_v59 = vsel %vm1315_vm8, %v1988_v20, %v1990_v36  ;;  %2126 = vrot.lane.b32.xlu1 %v7093_v60, %s4927_s25  ;;  %2124 = vrot.lane.b32.xlu0 %v7090_v28, %s4927_s25  ;;  %v1998_v34 = vpop.permute.xlu1 %1997 }
 0x4d0   :  { %v7110_v55 = vmax.f32 %v6936_v56, %v2020_v37  ;;  %v7113_v5 = vmax.f32 %v6940_v4, %v2021_v59  ;;  %v4599_v4 = vpack.c.bf16 %v2305_v39, %v2304_v52  ;;  %v2313_v37 = vld [vmem:[%s7905_s5 + $0xa8] sm:$0xff]  ;;  %v2314_v39 = vld [vmem:[%s7905_s5 + $0xb0] sm:$0xff] }
 0x4d1   :  { %v4611_v59 = vpack.c.bf16 %v2313_v37, %v2312_v58 }
 0x4d2   :  { %v1994_v63 = vpop.permute.xlu0 %1993  ;;  %4600 = vmatpush1.bf16.msra.mxu1 %v4599_v4  ;;  %4636 = vmatpush1.bf16.msra.mxu0 %v4599_v4 }
 0x4d3   :  { %2122 = vrot.lane.b32.xlu1 %v7113_v5, %s4927_s25  ;;  %2184 = vrot.lane.b32.xlu0 %v7110_v55, %s4934_s12  ;;  %v2057_v56 = vpop.permute.xlu1 %2056 }
 0x4d4   :  { %4601 = vmatprep.subr.bf16.mxu1 %v4939_v13  ;;  %4637 = vmatprep.subr.bf16.mxu0 %v4939_v13 }
 0x4d6   :  { %v2000_v40 = vpop.permute.xlu0 %1999  ;;  %4603 = vmatpush1.bf16.msra.mxu1 %v4602_v27  ;;  %4639 = vmatpush1.bf16.msra.mxu0 %v4602_v27 }
 0x4d7   :  { %v2025_v29 = vsel %vm1315_vm8, %v1998_v34, %v2000_v40  ;;  %v2069_v50 = vsel %vm8104_vm10, %v2000_v40, %v2057_v56  ;;  %v1996_v21 = vpop.permute.xlu1 %1995  ;;  %4604 = vmatprep.subr.bf16.mxu1 %v4939_v13  ;;  %4640 = vmatprep.subr.bf16.mxu0 %v4939_v13  ;;  %v2315_v56 = vld [vmem:[%s7905_s5 + $0xb8] sm:$0xff]  ;;  %vm7461_vm10 = vmor %vm2458_vm7, %vm2457_vm5  ;;  %vm7929_vm7 = vcmask 549120  }
 0x4d8   :  { %v7138_v14 = vmax.f32 %v6942_v51, %v2025_v29  ;;  %v7141_v47 = vmax.f32 %v6946_v7, %v2069_v50  ;;  %v2023_v36 = vsel %vm1315_vm8, %v1994_v63, %v1996_v21  ;;  %v2024_v61 = vsel %vm1315_vm8, %v1996_v21, %v1998_v34  ;;  %v2308_v51 = vld [vmem:[%s7905_s5 + $0x80] sm:$0xff]  ;;  %v2309_v7 = vld [vmem:[%s7905_s5 + $0x88] sm:$0xff] }
 0x4d9   :  { %v4605_v43 = vpack.c.bf16 %v2309_v7, %v2308_v51  ;;  %v7158_v62 = vmax.f32 %v6948_v44, %v2023_v36  ;;  %v7161_v42 = vmax.f32 %v6952_v23, %v2024_v61  ;;  %v2311_v44 = vld [vmem:[%s7905_s5 + $0x98] sm:$0xff]  ;;  %v4614_v40 = vpack.c.bf16 %v2315_v56, %v2314_v39 }
 0x4da   :  { %v2006_v41 = vpop.permute.xlu0 %2005  ;;  %2132 = vrot.lane.b32.xlu1 %v7138_v14, %s4927_s25  ;;  %2134 = vrot.lane.b32.xlu0 %v7141_v47, %s4927_s25  ;;  %v4608_v23 = vpack.c.bf16 %v2311_v44, %v2310_v31 }
 0x4db   :  { %v2002_v38 = vpop.permute.xlu1 %2001  ;;  %4606 = vmatpush1.bf16.msra.mxu1 %v4605_v43  ;;  %4642 = vmatpush1.bf16.msra.mxu0 %v4605_v43 }
 0x4dc   :  { %4607 = vmatprep.subr.bf16.mxu1 %v4939_v13  ;;  %4643 = vmatprep.subr.bf16.mxu0 %v4939_v13 }
 0x4de   :  { %v2059_v11 = vpop.permute.xlu0 %2058  ;;  %2130 = vrot.lane.b32.xlu0 %v7161_v42, %s4927_s25  ;;  %2186 = vrot.lane.b32.xlu1 %v7158_v62, %s4934_s12 }
 0x4df   :  { %v2008_v9 = vpop.permute.xlu1 %2007  ;;  %4609 = vmatpush1.bf16.msra.mxu1 %v4608_v23  ;;  %4645 = vmatpush1.bf16.msra.mxu0 %v4608_v23 }
 0x4e0   :  { %v2028_v24 = vsel %vm1315_vm8, %v2006_v41, %v2008_v9  ;;  %v2070_v53 = vsel %vm8105_vm14, %v2008_v9, %v2059_v11  ;;  %4610 = vmatprep.subr.bf16.mxu1 %v4939_v13  ;;  %4646 = vmatprep.subr.bf16.mxu0 %v4939_v13  ;;  %v2776_v11 = vld [vmem:[%s7905_s5 + $0xc0] sm:$0xf]  ;;  %vm7920_vm14 = vcmask 417920  }
 0x4e1   :  { %v7178_v46 = vmax.f32 %v6954_v8, %v2028_v24  ;;  %v7181_v26 = vmax.f32 %v6958_v45, %v2070_v53 }
 0x4e2   :  { %v2004_v20 = vpop.permute.xlu0 %2003 }
 0x4e3   :  { %v2026_v8 = vsel %vm1315_vm8, %v2002_v38, %v2004_v20  ;;  %2142 = vrot.lane.b32.xlu1 %v7181_v26, %s4927_s25  ;;  %2140 = vrot.lane.b32.xlu0 %v7178_v46, %s4927_s25  ;;  %v2014_v45 = vpop.permute.xlu1 %2013  ;;  %v2027_v63 = vsel %vm1315_vm8, %v2004_v20, %v2006_v41 }
 0x4e4   :  { %v7197_v34 = vmax.f32 %v6960_v12, %v2026_v8  ;;  %4612 = vmatpush1.bf16.msra.mxu1 %v4611_v59  ;;  %4648 = vmatpush1.bf16.msra.mxu0 %v4611_v59  ;;  %v7215_v25 = vmax.f32 %v6964_v6, %v2027_v63 }
 0x4e5   :  { %4613 = vmatprep.subr.bf16.mxu1 %v4939_v13  ;;  %4649 = vmatprep.subr.bf16.mxu0 %v4939_v13 }
 0x4e6   :  { %v2016_v52 = vpop.permute.xlu0 %2015 }
 0x4e7   :  { %v2031_v12 = vsel %vm1315_vm8, %v2014_v45, %v2016_v52  ;;  %2188 = vrot.lane.b32.xlu0 %v7197_v34, %s4934_s12  ;;  %v2061_v4 = vpop.permute.xlu1 %2060 }
 0x4e8   :  { %v7212_v3 = vmax.f32 %v6966_v22, %v2031_v12  ;;  %4615 = vmatpush1.bf16.msra.mxu1 %v4614_v40  ;;  %4651 = vmatpush1.bf16.msra.mxu0 %v4614_v40  ;;  %v2071_v29 = vsel %vm8106_vm15, %v2016_v52, %v2061_v4  ;;  %v2316_v22 = vld [vmem:[%s7905_s5 + $0xc0] sm:$0xf]  ;;  %s4940_s5 = smov 60   ;;  %vm7919_vm15 = vcmask 713120  }
 0x4e9   :  { %2385 = vmatprep.subr.mxu1 %v8101_v10  ;;  %2894 = vmatprep.subr.mxu0 %v8101_v10  ;;  %v7229_v27 = vmax.f32 %v6970_v19, %v2071_v29 }
 0x4ea   :  { %2148 = vrot.lane.b32.xlu1 %v7212_v3, %s4927_s25  ;;  %v2010_v50 = vpop.permute.xlu0 %2009 }
 0x4eb   :  { %2138 = vrot.lane.b32.xlu0 %v7215_v25, %s4927_s25  ;;  %v2012_v21 = vpop.permute.xlu1 %2011 }
 0x4ec   :  { %v2029_v6 = vsel %vm1315_vm8, %v2010_v50, %v2012_v21  ;;  %4030 = vmatpush1.msk.msra.mxu1 %vm2333_vm2, %v2316_v22  ;;  %v2030_v61 = vsel %vm1315_vm8, %v2012_v21, %v2014_v45  ;;  %4054 = vmatpush1.msk.msra.mxu0 %vm2333_vm2, %v2776_v11  ;;  %vm2317_vm8 = vcmask 556032   ;;  %vm7918_vm2 = vcmask 1008320  }
 0x4ed   :  { %v7232_v36 = vmax.f32 %v6972_v30, %v2029_v6  ;;  %v7241_v41 = vmax.f32 %v6976_v35, %v2030_v61 }
 0x4ef   :  { %2150 = vrot.lane.b32.xlu0 %v7229_v27, %s4927_s25  ;;  %2190 = vrot.lane.b32.xlu1 %v7232_v36, %s4934_s12  ;;  %s7915_s12 = smov 4  }
 0x4f3   :  { %2146 = vrot.lane.b32.xlu0 %v7241_v41, %s4927_s25  ;;  %2112 = vrot.lane.b32.xlu1 %v7070_v15, %s4927_s25 }
 0x4f7   :  { %2120 = vrot.lane.b32.xlu1 %v7110_v55, %s4927_s25 }
 0x4fb   :  { %v7251_v30 = vpop.permute.xlu0 %2229 }
 0x4fc   :  { %v7249_v19 = vpop.permute.xlu1 %2234 }
 0x4ff   :  { %v7255_v7 = vpop.permute.xlu0 %2239 }
 0x500   :  { %v7253_v51 = vpop.permute.xlu1 %2244 }
 0x504   :  { %v7257_v38 = vpop.permute.xlu1 %2249 }
 0x538   :  { %v2119_v35 = vpop.permute.xlu0 %2118  ;;  %v2117_v43 = vpop.permute.xlu1 %2116 }
 0x539   :  { %v2154_v31 = vsel %vm1411_vm12, %v2117_v43, %v2119_v35 }
 0x53c   :  { %v7263_v44 = vpop.permute.xlu0 %2114  ;;  %v2183_v9 = vpop.permute.xlu1 %2182 }
 0x53d   :  { %v2153_v23 = vsel %vm1411_vm12, %v7263_v44, %v2117_v43  ;;  %v2197_v24 = vsel %vm1430_vm13, %v2154_v31, %v2183_v9  ;;  %v2205_v53 = vmax.f32 %v7053_v2, %v2183_v9 }
 0x53e   :  { %v2203_v20 = vmax.f32 %v7073_v57, %v2153_v23  ;;  %v2204_v58 = vmax.f32 %v7050_v54, %v2197_v24 }
 0x53f   :  { %v2255_v37 = vadd.f32 %v7251_v30, %v2205_v53 }
 0x540   :  { %v2253_v8 = vadd.f32 %v7251_v30, %v2203_v20  ;;  %v2254_v39 = vadd.f32 %v7251_v30, %v2204_v58 }
 0x541   :  { %v2275_v45 = vmax.f32 %v2255_v37, 0.0  ;;  %v2125_v59 = vpop.permute.xlu0 %2124  ;;  %v2127_v63 = vpop.permute.xlu1 %2126 }
 0x542   :  { %v2273_v52 = vmax.f32 %v2253_v8, 0.0  ;;  %v2157_v54 = vsel %vm1411_vm12, %v2125_v59, %v2127_v63  ;;  %v2274_v56 = vmax.f32 %v2254_v39, 0.0 }
 0x543   :  { %2791 = vrot.lane.b32.xlu1 %v2275_v45, %s4940_s5 }
 0x544   :  { %2787 = vrot.lane.b32.xlu0 %v2273_v52, %s4940_s5  ;;  %4031 = vmatprep.mubr.msk.f32.mxu1 %vm2317_vm8, %v2273_v52 }
 0x545   :  { %v2185_v2 = vpop.permute.xlu0 %2184  ;;  %v7279_v57 = vpop.permute.xlu1 %2122 }
 0x546   :  { %v2198_v12 = vsel %vm1430_vm13, %v2157_v54, %v2185_v2  ;;  %v2209_v4 = vmax.f32 %v7093_v60, %v2185_v2  ;;  %v2156_v40 = vsel %vm1411_vm12, %v7279_v57, %v2125_v59 }
 0x547   :  { %v2208_v29 = vmax.f32 %v7090_v28, %v2198_v12  ;;  %v2207_v50 = vmax.f32 %v7113_v5, %v2156_v40  ;;  %2128 = vrot.lane.b32.xlu1 %v7158_v62, %s4927_s25 }
 0x548   :  { %v2259_v21 = vadd.f32 %v7249_v19, %v2209_v4  ;;  %2789 = vrot.lane.b32.xlu0 %v2274_v56, %s4940_s5 }
 0x549   :  { %v7292_v22 = vadd.f32 %v7249_v19, %v2207_v50  ;;  %v2258_v60 = vadd.f32 %v7249_v19, %v2208_v29 }
 0x54a   :  { %v2279_v6 = vmax.f32 %v2259_v21, 0.0 }
 0x54b   :  { %v2277_v61 = vmax.f32 %v7292_v22, 0.0  ;;  %v2278_v5 = vmax.f32 %v2258_v60, 0.0 }
 0x54c   :  { %v2135_v35 = vpop.permute.xlu0 %2134  ;;  %2797 = vrot.lane.b32.xlu1 %v2279_v6, %s4940_s5  ;;  %v2133_v28 = vpop.permute.xlu1 %2132 }
 0x54d   :  { %2793 = vrot.lane.b32.xlu0 %v2277_v61, %s4940_s5  ;;  %v2160_v43 = vsel %vm1411_vm12, %v2133_v28, %v2135_v35 }
 0x550   :  { %v7301_v11 = vpop.permute.xlu0 %2130  ;;  %2136 = vrot.lane.b32.xlu1 %v7197_v34, %s4927_s25  ;;  %v2187_v31 = vpop.permute.xlu1 %2186 }
 0x551   :  { %v2159_v9 = vsel %vm1411_vm12, %v7301_v11, %v2133_v28  ;;  %v2199_v23 = vsel %vm1430_vm13, %v2160_v43, %v2187_v31  ;;  %v2213_v24 = vmax.f32 %v7141_v47, %v2187_v31  ;;  %2795 = vrot.lane.b32.xlu0 %v2278_v5, %s4940_s5 }
 0x552   :  { %v2211_v53 = vmax.f32 %v7161_v42, %v2159_v9  ;;  %v2212_v20 = vmax.f32 %v7138_v14, %v2199_v23 }
 0x553   :  { %v2263_v58 = vadd.f32 %v7255_v7, %v2213_v24 }
 0x554   :  { %v2261_v37 = vadd.f32 %v7255_v7, %v2211_v53  ;;  %v2262_v63 = vadd.f32 %v7255_v7, %v2212_v20 }
 0x555   :  { %v2283_v8 = vmax.f32 %v2263_v58, 0.0  ;;  %v2141_v45 = vpop.permute.xlu0 %2140  ;;  %v2143_v52 = vpop.permute.xlu1 %2142 }
 0x556   :  { %v2281_v59 = vmax.f32 %v2261_v37, 0.0  ;;  %v2282_v39 = vmax.f32 %v2262_v63, 0.0  ;;  %v2163_v14 = vsel %vm1411_vm12, %v2141_v45, %v2143_v52 }
 0x557   :  { %2803 = vrot.lane.b32.xlu1 %v2283_v8, %s4940_s5 }
 0x558   :  { %2799 = vrot.lane.b32.xlu0 %v2281_v59, %s4940_s5 }
 0x559   :  { %v2189_v47 = vpop.permute.xlu0 %2188 }
 0x55a   :  { %v2217_v42 = vmax.f32 %v7181_v26, %v2189_v47  ;;  %v2200_v54 = vsel %vm1430_vm13, %v2163_v14, %v2189_v47 }
 0x55b   :  { %v2216_v40 = vmax.f32 %v7178_v46, %v2200_v54 }
 0x55c   :  { %2801 = vrot.lane.b32.xlu0 %v2282_v39, %s4940_s5  ;;  %v2149_v2 = vpop.permute.xlu1 %2148  ;;  %v2267_v12 = vadd.f32 %v7253_v51, %v2217_v42 }
 0x55d   :  { %v7321_v56 = vpop.permute.xlu0 %2138  ;;  %v2266_v35 = vadd.f32 %v7253_v51, %v2216_v40 }
 0x55e   :  { %v2162_v4 = vsel %vm1411_vm12, %v7321_v56, %v2141_v45  ;;  %v2287_v6 = vmax.f32 %v2267_v12, 0.0 }
 0x55f   :  { %v2215_v29 = vmax.f32 %v7215_v25, %v2162_v4  ;;  %v2286_v53 = vmax.f32 %v2266_v35, 0.0 }
 0x560   :  { %2144 = vrot.lane.b32.xlu0 %v7232_v36, %s4927_s25  ;;  %s4942_s25 = smov 72  }
 0x561   :  { %v2265_v26 = vadd.f32 %v7253_v51, %v2215_v29  ;;  %v2151_v50 = vpop.permute.xlu0 %2150  ;;  %v2191_v21 = vpop.permute.xlu1 %2190 }
 0x562   :  { %v2166_v60 = vsel %vm1411_vm12, %v2149_v2, %v2151_v50  ;;  %v2221_v43 = vmax.f32 %v7229_v27, %v2191_v21 }
 0x563   :  { %v2285_v28 = vmax.f32 %v2265_v26, 0.0  ;;  %v2201_v5 = vsel %vm1430_vm13, %v2166_v60, %v2191_v21  ;;  %vm2817_vm13 = vcmask 490496  }
 0x564   :  { %v2220_v46 = vmax.f32 %v7212_v3, %v2201_v5  ;;  %2809 = vrot.lane.b32.xlu0 %v2287_v6, %s4940_s5  ;;  %v2271_v27 = vadd.f32 %v7257_v38, %v2221_v43 }
 0x565   :  { %v7337_v25 = vpop.permute.xlu0 %2146  ;;  %2805 = vrot.lane.b32.xlu1 %v2285_v28, %s4940_s5  ;;  %v2113_v31 = vpop.permute.xlu1 %2112 }
 0x566   :  { %v2270_v9 = vadd.f32 %v7257_v38, %v2220_v46  ;;  %v2165_v23 = vsel %vm1411_vm12, %v7337_v25, %v2149_v2  ;;  %v2152_v24 = vsel %vm1411_vm12, %v2113_v31, %v7263_v44  ;;  %v2291_v44 = vmax.f32 %v2271_v27, 0.0 }
 0x567   :  { %v2219_v3 = vmax.f32 %v7241_v41, %v2165_v23  ;;  %v2202_v20 = vmax.f32 %v7070_v15, %v2152_v24 }
 0x568   :  { %v2290_v58 = vmax.f32 %v2270_v9, 0.0 }
 0x569   :  { %v2269_v37 = vadd.f32 %v7257_v38, %v2219_v3  ;;  %v2252_v8 = vadd.f32 %v7251_v30, %v2202_v20  ;;  %2807 = vrot.lane.b32.xlu1 %v2286_v53, %s4940_s5  ;;  %v2121_v45 = vpop.permute.xlu1 %2120 }
 0x56a   :  { %v2155_v63 = vsel %vm1411_vm12, %v2121_v45, %v7279_v57  ;;  %2813 = vrot.lane.b32.xlu0 %v2290_v58, %s4940_s5  ;;  %v2433_v58 = vlaneseq }
 0x56b   :  { %v2289_v52 = vmax.f32 %v2269_v37, 0.0  ;;  %v2272_v47 = vmax.f32 %v2252_v8, 0.0  ;;  %v2206_v41 = vmax.f32 %v7110_v55, %v2155_v63 }
 0x56c   :  { %v2434_v8 = vshrl.u32 %v2433_v58, 7 }
 0x56d   :  { %2815 = vrot.lane.b32.xlu1 %v2291_v44, %s4940_s5  ;;  %2402 = vmatmul.mubr.f32.vlgmr.msra.gmra.mrb[26].mxu1 %v2272_v47  ;;  %v2256_v15 = vadd.f32 %v7249_v19, %v2206_v41 }
 0x56e   :  { %2811 = vrot.lane.b32.xlu0 %v2289_v52, %s4940_s5  ;;  %4032 = vmatprep.mubr.msk.f32.mxu1 %vm2317_vm8, %v2277_v61 }
 0x56f   :  { %v2276_v30 = vmax.f32 %v2256_v15, 0.0 }
 0x571   :  { %2407 = vmatmul.mubr.f32.gmra.mrb[28].mxu1 %v2276_v30 }
 0x572   :  { %4033 = vmatprep.mubr.msk.f32.mxu1 %vm2317_vm8, %v2281_v59 }
 0x5b5   :  { %v2792_v57 = vpop.permute.xlu1 %2791 }
 0x5b6   :  { %v2788_v39 = vpop.permute.xlu0 %2787 }
 0x5b9   :  { %v2129_v42 = vpop.permute.xlu1 %2128 }
 0x5ba   :  { %v2158_v55 = vsel %vm1411_vm12, %v2129_v42, %v7301_v11  ;;  %v2790_v14 = vpop.permute.xlu0 %2789 }
 0x5bb   :  { %v2210_v19 = vmax.f32 %v7158_v62, %v2158_v55  ;;  %v2818_v54 = vsel %vm2817_vm13, %v2788_v39, %v2790_v14  ;;  %v2819_v22 = vsel %vm2817_vm13, %v2790_v14, %v2792_v57 }
 0x5bc   :  { %4055 = vmatprep.mubr.msk.f32.mxu0 %vm2317_vm8, %v2819_v22 }
 0x5bd   :  { %2911 = vmatmul.mubr.f32.vlgmr.msra.gmra.mrb[20].mxu0 %v2818_v54  ;;  %v2260_v61 = vadd.f32 %v7255_v7, %v2210_v19 }
 0x5be   :  { %v2798_v59 = vpop.permute.xlu1 %2797 }
 0x5bf   :  { %v2794_v2 = vpop.permute.xlu0 %2793  ;;  %v2280_v12 = vmax.f32 %v2260_v61, 0.0 }
 0x5c1   :  { %2412 = vmatmul.mubr.f32.gmra.mrb[30].mxu1 %v2280_v12 }
 0x5c2   :  { %4034 = vmatprep.mubr.msk.f32.mxu1 %vm2317_vm8, %v2285_v28  ;;  %v2137_v4 = vpop.permute.xlu1 %2136 }
 0x5c3   :  { %v2161_v11 = vsel %vm1411_vm12, %v2137_v4, %v7321_v56  ;;  %v2796_v62 = vpop.permute.xlu0 %2795 }
 0x5c4   :  { %v2214_v40 = vmax.f32 %v7197_v34, %v2161_v11  ;;  %v2821_v29 = vsel %vm2817_vm13, %v2796_v62, %v2798_v59  ;;  %v2820_v26 = vsel %vm2817_vm13, %v2794_v2, %v2796_v62 }
 0x5c5   :  { %4056 = vmatprep.mubr.msk.f32.mxu0 %vm2317_vm8, %v2821_v29 }
 0x5c6   :  { %2916 = vmatmul.mubr.f32.gmra.mrb[22].mxu0 %v2820_v26  ;;  %v2264_v7 = vadd.f32 %v7253_v51, %v2214_v40 }
 0x5c8   :  { %v2284_v50 = vmax.f32 %v2264_v7, 0.0 }
 0x5c9   :  { %v2804_v6 = vpop.permute.xlu1 %2803 }
 0x5ca   :  { %v2800_v21 = vpop.permute.xlu0 %2799  ;;  %2417 = vmatmul.mubr.f32.gmra.mrb[32].mxu1 %v2284_v50 }
 0x5cb   :  { %4035 = vmatprep.mubr.msk.f32.mxu1 %vm2317_vm8, %v2289_v52 }
 0x5ce   :  { %v2802_v60 = vpop.permute.xlu0 %2801 }
 0x5cf   :  { %v2823_v56 = vsel %vm2817_vm13, %v2802_v60, %v2804_v6  ;;  %v2822_v34 = vsel %vm2817_vm13, %v2800_v21, %v2802_v60 }
 0x5d0   :  { %4057 = vmatprep.mubr.msk.f32.mxu0 %vm2317_vm8, %v2823_v56 }
 0x5d1   :  { %2921 = vmatmul.mubr.f32.gmra.mrb[24].mxu0 %v2822_v34 }
 0x5d2   :  { %v2145_v35 = vpop.permute.xlu0 %2144 }
 0x5d3   :  { %v2164_v28 = vsel %vm1411_vm12, %v2145_v35, %v7337_v25  ;;  %vm2427_vm12 = vcmask 286720  }
 0x5d4   :  { %v2218_v51 = vmax.f32 %v7232_v36, %v2164_v28 }
 0x5d6   :  { %v2268_v5 = vadd.f32 %v7257_v38, %v2218_v51  ;;  %v2810_v46 = vpop.permute.xlu0 %2809  ;;  %v4941_v38 = vmov 1983009808  }
 0x5d7   :  { %v2806_v43 = vpop.permute.xlu1 %2805  ;;  %v2431_v20 = vunpack.c.l.s4 %v4941_v38 }
 0x5d8   :  { %v2288_v31 = vmax.f32 %v2268_v5, 0.0 }
 0x5d9   :  { %v2432_v37 = vunpack.c.0.s8 %v2431_v20 }
 0x5da   :  { %2422 = vmatmul.mubr.f32.gmra.mrb[34].mxu1 %v2288_v31 }
 0x5db   :  { %v2808_v9 = vpop.permute.xlu1 %2807  ;;  %v7391_v45 = vsub.s32 %v2432_v37, %v2434_v8 }
 0x5dc   :  { %v2825_v23 = vsel %vm2817_vm13, %v2808_v9, %v2810_v46  ;;  %v2814_v24 = vpop.permute.xlu0 %2813  ;;  %v2824_v53 = vsel %vm2817_vm13, %v2806_v43, %v2808_v9 }
 0x5dd   :  { %4058 = vmatprep.mubr.msk.f32.mxu0 %vm2317_vm8, %v2825_v23 }
 0x5de   :  { %2926 = vmatmul.mubr.f32.gmra.mrb[26].mxu0 %v2824_v53 }
 0x5df   :  { %v2816_v27 = vpop.permute.xlu1 %2815 }
 0x5e0   :  { %v2827_v25 = vsel %vm2817_vm13, %v2814_v24, %v2816_v27  ;;  %v2812_v3 = vpop.permute.xlu0 %2811 }
 0x5e1   :  { %4059 = vmatprep.mubr.msk.f32.mxu0 %vm2317_vm8, %v2827_v25  ;;  %v2826_v36 = vsel %vm2817_vm13, %v2812_v3, %v2814_v24  ;;  %vm2495_vm8 = vcmask 1041376   ;;  %vm2496_vm13 = vcmask 256002  }
 0x5e2   :  { %2931 = vmatmul.mubr.f32.gmra.mrb[28].mxu0 %v2826_v36  ;;  %vm7479_vm5 = vmor %vm2496_vm13, %vm2495_vm8  ;;  %vm7924_vm13 = vcmask 385120  }
 0x640   :  { %v2403_v63 = vpop.f32.mrb[26].mxu1 }
 0x641   :  { %2428 = vst.msk [vmem:[#allocation3] sm:$0x1] %vm2427_vm12, %v2403_v63  ;;  %v2436_v44 = vrot.slane %v2403_v63, %v7391_v45  ;;  %v2405_v52 = vpop.f32.mrb[27].mxu1  ;;  %v2461_v15 = vcombine.high %v2403_v63, %v2403_v63 }
 0x643   :  { %v4036_v47 = vrot.slane %v2436_v44, 9  ;;  %v2444_v41 = vcombine.high %v2436_v44, %v2436_v44  ;;  %v2468_v39 = vrot.slane %v2461_v15, %v7391_v45 }
 0x644   :  { %v2408_v30 = vpop.f32.mrb[28].mxu1 }
 0x645   :  { %2445 = vrot.lane.b32.xlu0 %v2444_v41, %s4942_s25  ;;  %2439 = vrot.lane.b32.xlu1 %v4036_v47, %s4943_s1  ;;  %v2410_v57 = vpop.f32.mrb[29].mxu1  ;;  %v4037_v42 = vrot.slane %v2444_v41, 9  ;;  %v2481_v55 = vcombine.high %v2468_v39, %v2468_v39  ;;  %v4038_v14 = vrot.slane %v2468_v39, 9  ;;  %v2506_v19 = vrot.slane %v2408_v30, %v7391_v45 }
 0x646   :  { %v2537_v59 = vcombine.high %v2408_v30, %v2408_v30 }
 0x647   :  { %v4039_v54 = vrot.slane %v2481_v55, 9  ;;  %v4040_v22 = vrot.slane %v2506_v19, 9  ;;  %v2519_v61 = vcombine.high %v2506_v19, %v2506_v19 }
 0x648   :  { %v2544_v2 = vrot.slane %v2537_v59, %v7391_v45 }
 0x649   :  { %2469 = vrot.lane.b32.xlu0 %v2468_v39, %s4944_s21  ;;  %2452 = vrot.lane.b32.xlu1 %v4037_v42, %s4936_s14  ;;  %v4041_v12 = vrot.slane %v2519_v61, 9 }
 0x64a   :  { %v2557_v4 = vcombine.high %v2544_v2, %v2544_v2  ;;  %v4042_v11 = vrot.slane %v2544_v2, 9 }
 0x64c   :  { %v4043_v62 = vrot.slane %v2557_v4, 9 }
 0x64d   :  { %2482 = vrot.lane.b32.xlu0 %v2481_v55, %s4945_s2  ;;  %2476 = vrot.lane.b32.xlu1 %v4038_v14, %s4946_s22 }
 0x651   :  { %2489 = vrot.lane.b32.xlu1 %v4039_v54, %s4947_s6  ;;  %2507 = vrot.lane.b32.xlu0 %v2506_v19, %s4948_s28 }
 0x655   :  { %2520 = vrot.lane.b32.xlu0 %v2519_v61, %s4949_s26  ;;  %2514 = vrot.lane.b32.xlu1 %v4040_v22, %s4950_s24 }
 0x659   :  { %2545 = vrot.lane.b32.xlu0 %v2544_v2, %s4951_s29  ;;  %2532 = vrot.lane.b32.xlu1 %v4041_v12, %s4952_s30 }
 0x65d   :  { %2558 = vrot.lane.b32.xlu0 %v2557_v4, %s4923_s0  ;;  %2552 = vrot.lane.b32.xlu1 %v4042_v11, %s4953_s11 }
 0x661   :  { %2569 = vrot.lane.b32.xlu1 %v4043_v62, %s4954_s13 }
 0x690   :  { %v7413_v40 = vpop.f32.mrb[20].mxu0 }
 0x691   :  { %2936 = vst.msk [vmem:[#allocation3 + $0x1] sm:$0x1] %vm2427_vm12, %v7413_v40  ;;  %v2914_v29 = vpop.f32.mrb[21].mxu0  ;;  %v2944_v52 = vrot.slane %v7413_v40, %v7391_v45  ;;  %v2964_v55 = vcombine.high %v7413_v40, %v7413_v40 }
 0x693   :  { %v4060_v42 = vrot.slane %v2944_v52, 9  ;;  %v2971_v22 = vrot.slane %v2964_v55, %v7391_v45  ;;  %v2951_v12 = vcombine.high %v2944_v52, %v2944_v52 }
 0x694   :  { %v2413_v26 = vpop.f32.mrb[30].mxu1 }
 0x695   :  { %v2581_v7 = vrot.slane %v2413_v26, %v7391_v45  ;;  %v2415_v50 = vpop.f32.mrb[31].mxu1  ;;  %v2611_v60 = vcombine.high %v2413_v26, %v2413_v26  ;;  %v4062_v40 = vrot.slane %v2971_v22, 9 }
 0x697   :  { %v4044_v21 = vrot.slane %v2581_v7, 9  ;;  %v2598_v6 = vcombine.high %v2581_v7, %v2581_v7  ;;  %2582 = vrot.lane.b32.xlu0 %v2581_v7, %s4955_s15  ;;  %v2618_v35 = vrot.slane %v2611_v60, %v7391_v45  ;;  %v4061_v7 = vrot.slane %v2951_v12, 9 }
 0x699   :  { %2589 = vrot.lane.b32.xlu1 %v4044_v21, %s4929_s27  ;;  %v7420_v56 = vpop.f32.mrb[22].mxu0  ;;  %v4045_v28 = vrot.slane %v2598_v6, 9  ;;  %v4046_v43 = vrot.slane %v2618_v35, 9  ;;  %v2636_v46 = vcombine.high %v2618_v35, %v2618_v35 }
 0x69a   :  { %v2919_v34 = vpop.f32.mrb[23].mxu0  ;;  %v3002_v62 = vrot.slane %v7420_v56, %v7391_v45  ;;  %v3026_v21 = vcombine.high %v7420_v56, %v7420_v56 }
 0x69b   :  { %2599 = vrot.lane.b32.xlu0 %v2598_v6, %s4956_s4  ;;  %v4047_v9 = vrot.slane %v2636_v46, 9 }
 0x69c   :  { %v3013_v50 = vcombine.high %v3002_v62, %v3002_v62 }
 0x69d   :  { %2606 = vrot.lane.b32.xlu1 %v4045_v28, %s4957_s16  ;;  %v2418_v51 = vpop.f32.mrb[32].mxu1  ;;  %v2982_v28 = vcombine.high %v2971_v22, %v2971_v22 }
 0x69e   :  { %v2420_v5 = vpop.f32.mrb[33].mxu1  ;;  %v2656_v31 = vrot.slane %v2418_v51, %v7391_v45  ;;  %v2687_v24 = vcombine.high %v2418_v51, %v2418_v51  ;;  %v4064_v51 = vrot.slane %v3002_v62, 9  ;;  %v4065_v52 = vrot.slane %v3013_v50, 9 }
 0x69f   :  { %2619 = vrot.lane.b32.xlu0 %v2618_v35, %s4958_s17  ;;  %v3033_v5 = vrot.slane %v3026_v21, %v7391_v45 }
 0x6a0   :  { %v4048_v27 = vrot.slane %v2656_v31, 9  ;;  %v2694_v25 = vrot.slane %v2687_v24, %v7391_v45  ;;  %v2674_v3 = vcombine.high %v2656_v31, %v2656_v31 }
 0x6a1   :  { %2626 = vrot.lane.b32.xlu1 %v4046_v43, %s4959_s18 }
 0x6a2   :  { %v4049_v58 = vrot.slane %v2674_v3, 9  ;;  %v4050_v44 = vrot.slane %v2694_v25, 9  ;;  %v7451_v39 = vcombine.high %v2694_v25, %v2694_v25 }
 0x6a3   :  { %2637 = vrot.lane.b32.xlu0 %v2636_v46, %s7914_s19  ;;  %s4964_s19 = smov 76  }
 0x6a4   :  { %v7429_v23 = vpop.f32.mrb[24].mxu0 }
 0x6a5   :  { %2644 = vrot.lane.b32.xlu1 %v4047_v9, %s4940_s5  ;;  %v2924_v53 = vpop.f32.mrb[25].mxu0 }
 0x6a6   :  { %v3044_v53 = vcombine.high %v3033_v5, %v3033_v5 }
 0x6a7   :  { %2657 = vrot.lane.b32.xlu0 %v2656_v31, %s4961_s20 }
 0x6a9   :  { %2669 = vrot.lane.b32.xlu1 %v4048_v27, %s7915_s12  ;;  %s7916_s12 = smov 20  }
 0x6ab   :  { %2695 = vrot.lane.b32.xlu0 %v2694_v25, %s4924_s23 }
 0x6ad   :  { %2675 = vrot.lane.b32.xlu1 %v2674_v3, %s4963_s3  ;;  %v2423_v36 = vpop.f32.mrb[34].mxu1  ;;  %v4063_v3 = vrot.slane %v2982_v28, 9 }
 0x6ae   :  { %2724 = vst.msk [vmem:[#allocation3 + $0x12] sm:$0x1] %vm2427_vm12, %v2423_v36  ;;  %v2732_v38 = vrot.slane %v2423_v36, %v7391_v45  ;;  %v2425_v20 = vpop.f32.mrb[35].mxu1 }
 0x6b0   :  { %v4052_v37 = vrot.slane %v2732_v38, 9  ;;  %v2739_v47 = vcombine.high %v2732_v38, %v2732_v38  ;;  %v4066_v38 = vrot.slane %v3033_v5, 9 }
 0x6b1   :  { %2682 = vrot.lane.b32.xlu1 %v4049_v58, %s4964_s19  ;;  %v7440_v8 = vpop.f32.mrb[26].mxu0 }
 0x6b2   :  { %2735 = vrot.lane.b32.xlu0 %v4052_v37, %s4943_s1  ;;  %v2929_v63 = vpop.f32.mrb[27].mxu0  ;;  %v4053_v14 = vrot.slane %v2739_v47, 9 }
 0x6b3   :  { %v3064_v63 = vrot.slane %v7429_v23, %v7391_v45 }
 0x6b5   :  { %2706 = vrot.lane.b32.xlu1 %v4050_v44, %s7916_s12  ;;  %v7446_v41 = vpop.f32.mrb[28].mxu0  ;;  %s4966_s12 = smov 56   ;;  %v4067_v44 = vrot.slane %v3044_v53, 9 }
 0x6b6   :  { %3181 = vst.msk [vmem:[#allocation3 + $0x13] sm:$0x1] %vm2427_vm12, %v7446_v41  ;;  %2740 = vrot.lane.b32.xlu0 %v2739_v47, %s4942_s25  ;;  %v2934_v15 = vpop.f32.mrb[29].mxu0  ;;  %vm7921_vm12 = vcmask 1014784   ;;  %v3077_v47 = vcombine.high %v3064_v63, %v3064_v63 }
 0x6b7   :  { %v2446_v30 = vpop.permute.xlu0 %2445  ;;  %v2440_v57 = vpop.permute.xlu1 %2439  ;;  %v3088_v15 = vcombine.high %v7429_v23, %v7429_v23  ;;  %v3150_v23 = vcombine.high %v7440_v8, %v7440_v8 }
 0x6b8   :  { %2443 = vst.msk [vmem:[#allocation3] sm:$0x1] %vm7944_vm3, %v2440_v57  ;;  %v4069_v57 = vrot.slane %v3077_v47, 9 }
 0x6b9   :  { %2449 = vst.msk [vmem:[#allocation3] sm:$0x1] %vm7933_vm9, %v2446_v30  ;;  %2712 = vrot.lane.b32.xlu1 %v7451_v39, %s4966_s12  ;;  %v3095_v30 = vrot.slane %v3088_v15, %v7391_v45  ;;  %vm7938_vm9 = vcmask 778720  }
 0x6ba   :  { %2947 = vrot.lane.b32.xlu0 %v4060_v42, %s4943_s1  ;;  %v4068_v42 = vrot.slane %v3064_v63, 9 }
 0x6bb   :  { %v2470_v19 = vpop.permute.xlu0 %2469  ;;  %v2453_v54 = vpop.permute.xlu1 %2452  ;;  %v3108_v55 = vcombine.high %v3095_v30, %v3095_v30 }
 0x6bc   :  { %v2454_v59 = vrot.slane %v2453_v54, 6 }
 0x6bd   :  { %2746 = vrot.lane.b32.xlu1 %v4053_v14, %s4936_s14  ;;  %v3126_v14 = vrot.slane %v7440_v8, %v7391_v45  ;;  %v3189_v8 = vrot.slane %v7446_v41, %v7391_v45 }
 0x6be   :  { %v2455_v2 = vsel %vm7931_vm1, %v2454_v59, %v2453_v54  ;;  %2972 = vrot.lane.b32.xlu0 %v2971_v22, %s4944_s21  ;;  %v4070_v54 = vrot.slane %v3095_v30, 9  ;;  %v3157_v22 = vrot.slane %v3150_v23, %v7391_v45 }
 0x6bf   :  { %2460 = vst.msk [vmem:[#allocation3] sm:$0x5] %vm7461_vm10, %v2455_v2  ;;  %v2483_v4 = vpop.permute.xlu0 %2482  ;;  %v2477_v11 = vpop.permute.xlu1 %2476  ;;  %v3139_v59 = vcombine.high %v3126_v14, %v3126_v14  ;;  %v4072_v2 = vrot.slane %v3126_v14, 9 }
 0x6c0   :  { %2473 = vst.msk [vmem:[#allocation3 + $0x2] sm:$0x1] %vm7920_vm14, %v2470_v19  ;;  %vm7923_vm14 = vcmask 850944   ;;  %v4071_v19 = vrot.slane %v3108_v55, 9 }
 0x6c1   :  { %2480 = vst.msk [vmem:[#allocation3 + $0x2] sm:$0x1] %vm7919_vm15, %v2477_v11  ;;  %2952 = vrot.lane.b32.xlu1 %v2951_v12, %s4942_s25  ;;  %vm7922_vm15 = vcmask 844320   ;;  %v4073_v12 = vrot.slane %v3139_v59, 9  ;;  %v4076_v11 = vrot.slane %v3189_v8, 9 }
 0x6c2   :  { %2486 = vst.msk [vmem:[#allocation3 + $0x2] sm:$0x1] %vm7918_vm2, %v2483_v4  ;;  %2978 = vrot.lane.b32.xlu0 %v4062_v40, %s4946_s22  ;;  %vm2527_vm2 = vcmask 92162   ;;  %v4074_v4 = vrot.slane %v3157_v22, 9  ;;  %v3196_v40 = vcombine.high %v3189_v8, %v3189_v8 }
 0x6c3   :  { %v2508_v29 = vpop.permute.xlu0 %2507  ;;  %v2490_v26 = vpop.permute.xlu1 %2489  ;;  %vm7490_vm8 = vmor %vm2527_vm2, %vm2526_vm11  ;;  %vm7926_vm11 = vcmask 975520   ;;  %vm2563_vm2 = vcmask 1041344  }
 0x6c4   :  { %v2491_v60 = vrot.slane %v2490_v26, 6  ;;  %v4077_v41 = vrot.slane %v3196_v40, 9 }
 0x6c5   :  { %2958 = vrot.lane.b32.xlu1 %v4061_v7, %s4936_s14 }
 0x6c6   :  { %v2493_v34 = vsel %vm7921_vm12, %v2491_v60, %v2490_v26  ;;  %3014 = vrot.lane.b32.xlu0 %v3013_v50, %s4949_s26  ;;  %vm7928_vm12 = vcmask 680320  }
 0x6c7   :  { %2498 = vst.msk [vmem:[#allocation3 + $0x2] sm:$0x5] %vm7479_vm5, %v2493_v34  ;;  %v2521_v56 = vpop.permute.xlu0 %2520  ;;  %v2515_v35 = vpop.permute.xlu1 %2514 }
 0x6c8   :  { %v2522_v43 = vrot.slane %v2521_v56, 6  ;;  %2511 = vst.msk [vmem:[#allocation3 + $0x4] sm:$0x1] %vm7929_vm7, %v2508_v29  ;;  %v4051_v29 = vrot.slane %v7451_v39, 9  ;;  %vm7936_vm7 = vcmask 942720  }
 0x6c9   :  { %2518 = vst.msk [vmem:[#allocation3 + $0x4] sm:$0x1] %vm7922_vm15, %v2515_v35  ;;  %2983 = vrot.lane.b32.xlu1 %v2982_v28, %s4945_s2  ;;  %vm2564_vm15 = vcmask 223234  }
 0x6ca   :  { %v2524_v31 = vsel %vm7923_vm14, %v2522_v43, %v2521_v56  ;;  %3009 = vrot.lane.b32.xlu0 %v4064_v51, %s4950_s24  ;;  %vm7505_vm14 = vmor %vm2564_vm15, %vm2563_vm2  ;;  %vm7930_vm15 = vcmask 811520   ;;  %vm2594_vm2 = vcmask 1041184  }
 0x6cb   :  { %v2546_v9 = vpop.permute.xlu0 %2545  ;;  %2529 = vst.msk [vmem:[#allocation3 + $0x4] sm:$0x5] %vm7490_vm8, %v2524_v31  ;;  %v2533_v24 = vpop.permute.xlu1 %2532 }
 0x6cc   :  { %2536 = vst.msk [vmem:[#allocation3 + $0x6] sm:$0x1] %vm7924_vm13, %v2533_v24  ;;  %vm7925_vm13 = vcmask 516320  }
 0x6cd   :  { %3003 = vrot.lane.b32.xlu1 %v3002_v62, %s4948_s28  ;;  %2549 = vst.msk [vmem:[#allocation3 + $0x6] sm:$0x1] %vm7928_vm12, %v2546_v9  ;;  %v3170_v62 = vcombine.high %v3157_v22, %v3157_v22  ;;  %vm7934_vm12 = vcmask 647520  }
 0x6ce   :  { %3045 = vrot.lane.b32.xlu0 %v3044_v53, %s4923_s0  ;;  %s8115_s0 = smov 24  }
 0x6cf   :  { %v2559_v27 = vpop.permute.xlu0 %2558  ;;  %v2553_v25 = vpop.permute.xlu1 %2552  ;;  %v4075_v26 = vrot.slane %v3170_v62, 9 }
 0x6d0   :  { %v2560_v36 = vrot.slane %v2559_v27, 6  ;;  %2556 = vst.msk [vmem:[#allocation3 + $0x6] sm:$0x1] %vm7926_vm11, %v2553_v25 }
 0x6d1   :  { %2989 = vrot.lane.b32.xlu1 %v4063_v3, %s4947_s6 }
 0x6d2   :  { %v2561_v58 = vsel %vm7927_vm4, %v2560_v36, %v2559_v27  ;;  %3040 = vrot.lane.b32.xlu0 %v4066_v38, %s4953_s11  ;;  %vm7935_vm4 = vcmask 352320  }
 0x6d3   :  { %2566 = vst.msk [vmem:[#allocation3 + $0x6] sm:$0x5] %vm7505_vm14, %v2561_v58  ;;  %v2570_v37 = vpop.permute.xlu1 %2569 }
 0x6d4   :  { %2573 = vst.msk [vmem:[#allocation3 + $0x8] sm:$0x1] %vm7925_vm13, %v2570_v37  ;;  %vm2595_vm13 = vcmask 59394  }
 0x6d5   :  { %3034 = vrot.lane.b32.xlu1 %v3033_v5, %s4951_s29  ;;  %vm7550_vm11 = vmor %vm2595_vm13, %vm2594_vm2  ;;  %vm2633_vm13 = vcmask 190466   ;;  %vm7937_vm2 = vcmask 949248  }
 0x6d6   :  { %3053 = vrot.lane.b32.xlu0 %v4067_v44, %s4954_s13 }
 0x6d9   :  { %3022 = vrot.lane.b32.xlu1 %v4065_v52, %s4952_s30 }
 0x6da   :  { %3078 = vrot.lane.b32.xlu0 %v3077_v47, %s4956_s4 }
 0x6dd   :  { %3065 = vrot.lane.b32.xlu1 %v3064_v63, %s4955_s15 }
 0x6de   :  { %3084 = vrot.lane.b32.xlu0 %v4069_v57, %s4957_s16 }
 0x6e1   :  { %3071 = vrot.lane.b32.xlu1 %v4068_v42, %s4929_s27  ;;  %s8116_s27 = smov 4  }
 0x6e2   :  { %3127 = vrot.lane.b32.xlu0 %v3126_v14, %s4961_s20 }
 0x6e5   :  { %3096 = vrot.lane.b32.xlu1 %v3095_v30, %s4958_s17 }
 0x6e6   :  { %3115 = vrot.lane.b32.xlu0 %v4071_v19, %s4940_s5  ;;  %s8117_s5 = smov 20  }
 0x6e9   :  { %3102 = vrot.lane.b32.xlu1 %v4070_v54, %s4959_s18 }
 0x6ea   :  { %3158 = vrot.lane.b32.xlu0 %v3157_v22, %s4924_s23  ;;  %s4967_s23 = smov 92  }
 0x6ed   :  { %3109 = vrot.lane.b32.xlu1 %v3108_v55, %s8115_s0 }
 0x6ee   :  { %3140 = vrot.lane.b32.xlu0 %v3139_v59, %s4963_s3 }
 0x6f1   :  { %3135 = vrot.lane.b32.xlu1 %v4072_v2, %s8116_s27 }
 0x6f2   :  { %3146 = vrot.lane.b32.xlu0 %v4073_v12, %s4964_s19 }
 0x6f5   :  { %3166 = vrot.lane.b32.xlu1 %v4074_v4, %s8117_s5 }
 0x6f6   :  { %3192 = vrot.lane.b32.xlu0 %v4076_v11, %s4943_s1 }
 0x6f9   :  { %3171 = vrot.lane.b32.xlu1 %v3170_v62, %s4966_s12 }
 0x6fa   :  { %3197 = vrot.lane.b32.xlu0 %v3196_v40, %s4942_s25 }
 0x6fd   :  { %2719 = vrot.lane.b32.xlu1 %v4051_v29, %s4967_s23 }
 0x6fe   :  { %3203 = vrot.lane.b32.xlu0 %v4077_v41, %s4936_s14 }
 0x702   :  { %3177 = vrot.lane.b32.xlu0 %v4075_v26, %s4967_s23 }
 0x709   :  { %v2583_v7 = vpop.permute.xlu0 %2582 }
 0x70a   :  { %2586 = vst.msk [vmem:[#allocation3 + $0x8] sm:$0x1] %vm7930_vm15, %v2583_v7  ;;  %vm2632_vm15 = vcmask 1041312  }
 0x70b   :  { %v2590_v50 = vpop.permute.xlu1 %2589  ;;  %vm7560_vm1 = vmor %vm2633_vm13, %vm2632_vm15  ;;  %vm7940_vm13 = vcmask 319520  }
 0x70c   :  { %v2591_v21 = vrot.slane %v2590_v50, 6 }
 0x70d   :  { %v2600_v39 = vpop.permute.xlu0 %2599 }
 0x70e   :  { %v2592_v34 = vsel %vm7932_vm0, %v2591_v21, %v2590_v50  ;;  %vm7939_vm0 = vcmask 483520  }
 0x70f   :  { %2597 = vst.msk [vmem:[#allocation3 + $0x8] sm:$0x5] %vm7550_vm11, %v2592_v34  ;;  %v2607_v56 = vpop.permute.xlu1 %2606 }
 0x710   :  { %2603 = vst.msk [vmem:[#allocation3 + $0xa] sm:$0x1] %vm7935_vm4, %v2600_v39  ;;  %vm2664_vm4 = vcmask 26626  }
 0x711   :  { %2610 = vst.msk [vmem:[#allocation3 + $0xa] sm:$0x1] %vm7934_vm12, %v2607_v56  ;;  %v2620_v35 = vpop.permute.xlu0 %2619  ;;  %vm2663_vm12 = vcmask 1041152  }
 0x712   :  { %2623 = vst.msk [vmem:[#allocation3 + $0xa] sm:$0x1] %vm7936_vm7, %v2620_v35  ;;  %vm2660_vm7 = vcmask 785408   ;;  %vm7569_vm15 = vmor %vm2664_vm4, %vm2663_vm12  ;;  %vm7941_vm4 = vcmask 909920  }
 0x713   :  { %v2627_v28 = vpop.permute.xlu1 %2626 }
 0x714   :  { %v2628_v51 = vrot.slane %v2627_v28, 6 }
 0x715   :  { %v2638_v43 = vpop.permute.xlu0 %2637 }
 0x716   :  { %v2630_v31 = vsel %vm7937_vm2, %v2628_v51, %v2627_v28  ;;  %vm2678_vm2 = vcmask 614720  }
 0x717   :  { %2635 = vst.msk [vmem:[#allocation3 + $0xa] sm:$0x5] %vm7560_vm1, %v2630_v31  ;;  %v2645_v9 = vpop.permute.xlu1 %2644 }
 0x718   :  { %2641 = vst.msk [vmem:[#allocation3 + $0xc] sm:$0x1] %vm7939_vm0, %v2638_v43  ;;  %vm2701_vm0 = vcmask 157698  }
 0x719   :  { %2648 = vst.msk [vmem:[#allocation3 + $0xc] sm:$0x1] %vm7938_vm9, %v2645_v9  ;;  %v2658_v24 = vpop.permute.xlu0 %2657  ;;  %vm2700_vm9 = vcmask 1041280  }
 0x71a   :  { %v2659_v53 = vrot.slane %v2658_v24, 6  ;;  %vm7578_vm12 = vmor %vm2701_vm0, %vm2700_vm9  ;;  %vm8126_vm0 = vcmask 877120   ;;  %vm7943_vm9 = vcmask 745920  }
 0x71b   :  { %v2670_v25 = vpop.permute.xlu1 %2669 }
 0x71c   :  { %v2661_v3 = vsel %vm2660_vm7, %v2659_v53, %v2658_v24 }
 0x71d   :  { %2666 = vst.msk [vmem:[#allocation3 + $0xc] sm:$0x5] %vm7569_vm15, %v2661_v3  ;;  %v2696_v36 = vpop.permute.xlu0 %2695 }
 0x71e   :  { %2673 = vst.msk [vmem:[#allocation3 + $0xe] sm:$0x1] %vm7940_vm13, %v2670_v25  ;;  %v2697_v58 = vrot.slane %v2696_v36, 6  ;;  %vm7942_vm13 = vcmask 450720  }
 0x71f   :  { %v2676_v38 = vpop.permute.xlu1 %2675 }
 0x720   :  { %2679 = vst.msk [vmem:[#allocation3 + $0xe] sm:$0x1] %vm2678_vm2, %v2676_v38  ;;  %v2698_v44 = vsel %vm7945_vm6, %v2697_v58, %v2696_v36  ;;  %vm8139_vm6 = vcmask 982016  }
 0x723   :  { %v2683_v63 = vpop.permute.xlu1 %2682 }
 0x724   :  { %2686 = vst.msk [vmem:[#allocation3 + $0xe] sm:$0x1] %vm7941_vm4, %v2683_v63  ;;  %v2736_v52 = vpop.permute.xlu0 %2735  ;;  %vm8127_vm4 = vcmask 883712  }
 0x725   :  { %2738 = vst.msk [vmem:[#allocation3 + $0x12] sm:$0x1] %vm7944_vm3, %v2736_v52 }
 0x726   :  { %2703 = vst.msk [vmem:[#allocation3 + $0xe] sm:$0x5] %vm7578_vm12, %v2698_v44 }
 0x727   :  { %v2707_v47 = vpop.permute.xlu1 %2706 }
 0x728   :  { %2710 = vst.msk [vmem:[#allocation3 + $0x10] sm:$0x1] %vm7942_vm13, %v2707_v47  ;;  %v2741_v15 = vpop.permute.xlu0 %2740  ;;  %vm8128_vm13 = vmmov %vm8126_vm0 }
 0x729   :  { %2743 = vst.msk [vmem:[#allocation3 + $0x12] sm:$0x1] %vm8126_vm0, %v2741_v15  ;;  %vm8129_vm0 = vmmov %vm8127_vm4 }
 0x72b   :  { %v2713_v30 = vpop.permute.xlu1 %2712 }
 0x72c   :  { %2716 = vst.msk [vmem:[#allocation3 + $0x10] sm:$0x1] %vm7943_vm9, %v2713_v30  ;;  %v2948_v57 = vpop.permute.xlu0 %2947  ;;  %vm8130_vm9 = vcmask 417920  }
 0x72d   :  { %2950 = vst.msk [vmem:[#allocation3 + $0x1] sm:$0x1] %vm7944_vm3, %v2948_v57  ;;  %vm8132_vm3 = vcmask 1008320  }
 0x72f   :  { %v2747_v42 = vpop.permute.xlu1 %2746 }
 0x730   :  { %v2748_v55 = vrot.slane %v2747_v42, 6  ;;  %v2973_v14 = vpop.permute.xlu0 %2972 }
 0x732   :  { %v2749_v23 = vsel %vm8127_vm4, %v2748_v55, %v2747_v42  ;;  %vm8131_vm4 = vcmask 713120  }
 0x733   :  { %2751 = vst.msk [vmem:[#allocation3 + $0x12] sm:$0x5] %vm7461_vm10, %v2749_v23  ;;  %v2953_v19 = vpop.permute.xlu1 %2952 }
 0x734   :  { %2955 = vst.msk [vmem:[#allocation3 + $0x1] sm:$0x1] %vm8128_vm13, %v2953_v19  ;;  %v2979_v54 = vpop.permute.xlu0 %2978  ;;  %vm8133_vm13 = vcmask 1014784   ;;  %v4652_v19 = vpack.c.bf16 %v5113_v17, %v5108_v16 }
 0x737   :  { %v2959_v22 = vpop.permute.xlu1 %2958 }
 0x738   :  { %v2960_v59 = vrot.slane %v2959_v22, 6  ;;  %v3015_v2 = vpop.permute.xlu0 %3014 }
 0x739   :  { %v3016_v26 = vrot.slane %v3015_v2, 6 }
 0x73a   :  { %v2961_v8 = vsel %vm8129_vm0, %v2960_v59, %v2959_v22  ;;  %vm8134_vm0 = vcmask 549120   ;;  %v4684_v22 = vpack.c.bf16 %v5273_v49, %v5268_v48  ;;  %v4686_v59 = vpack.c.bf16 %v5193_v33, %v5188_v32 }
 0x73b   :  { %2963 = vst.msk [vmem:[#allocation3 + $0x1] sm:$0x5] %vm7461_vm10, %v2961_v8  ;;  %v2984_v12 = vpop.permute.xlu1 %2983 }
 0x73c   :  { %2975 = vst.msk [vmem:[#allocation3 + $0x3] sm:$0x1] %vm8130_vm9, %v2973_v14  ;;  %v3010_v4 = vpop.permute.xlu0 %3009  ;;  %vm8135_vm9 = vcmask 850944  }
 0x73d   :  { %2981 = vst.msk [vmem:[#allocation3 + $0x3] sm:$0x1] %vm8131_vm4, %v2979_v54  ;;  %v3017_v39 = vsel %vm8135_vm9, %v3016_v26, %v3015_v2  ;;  %vm8136_vm4 = vcmask 844320   ;;  %vm8142_vm9 = vcmask 811520   ;;  %v4654_v54 = vpack.c.bf16 %v5033_v1, %v5028_v0 }
 0x73e   :  { %2986 = vst.msk [vmem:[#allocation3 + $0x3] sm:$0x1] %vm8132_vm3, %v2984_v12  ;;  %vm8137_vm3 = vcmask 385120  }
 0x73f   :  { %v3004_v11 = vpop.permute.xlu1 %3003 }
 0x740   :  { %v3046_v62 = vpop.permute.xlu0 %3045 }
 0x741   :  { %v3047_v34 = vrot.slane %v3046_v62, 6 }
 0x743   :  { %v2990_v40 = vpop.permute.xlu1 %2989  ;;  %v3048_v6 = vsel %vm8139_vm6, %v3047_v34, %v3046_v62  ;;  %vm8144_vm6 = vcmask 352320  }
 0x744   :  { %v2991_v29 = vrot.slane %v2990_v40, 6  ;;  %v3041_v41 = vpop.permute.xlu0 %3040 }
 0x746   :  { %v2992_v7 = vsel %vm8133_vm13, %v2991_v29, %v2990_v40  ;;  %vm8138_vm13 = vcmask 680320  }
 0x747   :  { %2994 = vst.msk [vmem:[#allocation3 + $0x3] sm:$0x5] %vm7479_vm5, %v2992_v7  ;;  %v3035_v50 = vpop.permute.xlu1 %3034  ;;  %vm8140_vm5 = vcmask 975520  }
 0x748   :  { %3006 = vst.msk [vmem:[#allocation3 + $0x5] sm:$0x1] %vm8134_vm0, %v3004_v11  ;;  %v3054_v21 = vpop.permute.xlu0 %3053  ;;  %vm8141_vm0 = vcmask 516320  }
 0x749   :  { %3012 = vst.msk [vmem:[#allocation3 + $0x5] sm:$0x1] %vm8136_vm4, %v3010_v4  ;;  %vm8145_vm4 = vcmask 647520  }
 0x74a   :  { %3019 = vst.msk [vmem:[#allocation3 + $0x5] sm:$0x5] %vm7490_vm8, %v3017_v39  ;;  %vm8143_vm8 = vcmask 818176  }
 0x74b   :  { %v3023_v56 = vpop.permute.xlu1 %3022 }
 0x74c   :  { %3025 = vst.msk [vmem:[#allocation3 + $0x7] sm:$0x1] %vm8137_vm3, %v3023_v56  ;;  %v3079_v35 = vpop.permute.xlu0 %3078  ;;  %vm8147_vm3 = vcmask 949248  }
 0x74d   :  { %3037 = vst.msk [vmem:[#allocation3 + $0x7] sm:$0x1] %vm8138_vm13, %v3035_v50  ;;  %vm8148_vm13 = vcmask 483520  }
 0x74e   :  { %3043 = vst.msk [vmem:[#allocation3 + $0x7] sm:$0x1] %vm8140_vm5, %v3041_v41  ;;  %vm8150_vm5 = vcmask 319520  }
 0x74f   :  { %3050 = vst.msk [vmem:[#allocation3 + $0x7] sm:$0x5] %vm7505_vm14, %v3048_v6  ;;  %v3066_v28 = vpop.permute.xlu1 %3065  ;;  %vm8146_vm14 = vcmask 942720  }
 0x750   :  { %3056 = vst.msk [vmem:[#allocation3 + $0x9] sm:$0x1] %vm8141_vm0, %v3054_v21  ;;  %v3085_v51 = vpop.permute.xlu0 %3084  ;;  %vm8151_vm0 = vcmask 916480  }
 0x751   :  { %3068 = vst.msk [vmem:[#allocation3 + $0x9] sm:$0x1] %vm8142_vm9, %v3066_v28  ;;  %vm8154_vm9 = vcmask 581920  }
 0x753   :  { %v3072_v46 = vpop.permute.xlu1 %3071 }
 0x754   :  { %v3073_v43 = vrot.slane %v3072_v46, 6  ;;  %v3128_v31 = vpop.permute.xlu0 %3127 }
 0x755   :  { %v3129_v36 = vrot.slane %v3128_v31, 6 }
 0x756   :  { %v3074_v9 = vsel %vm8143_vm8, %v3073_v43, %v3072_v46  ;;  %vm8156_vm8 = vcmask 877120  }
 0x757   :  { %3076 = vst.msk [vmem:[#allocation3 + $0x9] sm:$0x5] %vm7550_vm11, %v3074_v9  ;;  %v3097_v24 = vpop.permute.xlu1 %3096  ;;  %v3130_v63 = vsel %vm2660_vm7, %v3129_v36, %v3128_v31  ;;  %vm8149_vm11 = vcmask 778720   ;;  %vm8153_vm7 = vcmask 450720  }
 0x758   :  { %3081 = vst.msk [vmem:[#allocation3 + $0xb] sm:$0x1] %vm8144_vm6, %v3079_v35  ;;  %v3116_v53 = vpop.permute.xlu0 %3115  ;;  %vm8157_vm6 = vcmask 883712  }
 0x759   :  { %3087 = vst.msk [vmem:[#allocation3 + $0xb] sm:$0x1] %vm8145_vm4, %v3085_v51 }
 0x75a   :  { %3099 = vst.msk [vmem:[#allocation3 + $0xb] sm:$0x1] %vm8146_vm14, %v3097_v24 }
 0x75b   :  { %v3103_v20 = vpop.permute.xlu1 %3102 }
 0x75c   :  { %v3104_v25 = vrot.slane %v3103_v20, 6  ;;  %v3159_v3 = vpop.permute.xlu0 %3158 }
 0x75d   :  { %v3160_v44 = vrot.slane %v3159_v3, 6 }
 0x75e   :  { %v3105_v38 = vsel %vm8147_vm3, %v3104_v25, %v3103_v20 }
 0x75f   :  { %3107 = vst.msk [vmem:[#allocation3 + $0xb] sm:$0x5] %vm7560_vm1, %v3105_v38  ;;  %v3110_v58 = vpop.permute.xlu1 %3109  ;;  %v3161_v5 = vsel %vm8151_vm0, %v3160_v44, %v3159_v3  ;;  %vm8152_vm1 = vcmask 909920  }
 0x760   :  { %3112 = vst.msk [vmem:[#allocation3 + $0xd] sm:$0x1] %vm8148_vm13, %v3110_v58  ;;  %v3141_v60 = vpop.permute.xlu0 %3140 }
 0x761   :  { %3118 = vst.msk [vmem:[#allocation3 + $0xd] sm:$0x1] %vm8149_vm11, %v3116_v53 }
 0x762   :  { %3132 = vst.msk [vmem:[#allocation3 + $0xd] sm:$0x5] %vm7569_vm15, %v3130_v63  ;;  %vm8155_vm15 = vcmask 745920  }
 0x763   :  { %v3136_v52 = vpop.permute.xlu1 %3135 }
 0x764   :  { %3138 = vst.msk [vmem:[#allocation3 + $0xf] sm:$0x1] %vm8150_vm5, %v3136_v52  ;;  %v3147_v47 = vpop.permute.xlu0 %3146 }
 0x765   :  { %3143 = vst.msk [vmem:[#allocation3 + $0xf] sm:$0x1] %vm2678_vm2, %v3141_v60  ;;  %vm2722_vm2 = vcmask 1041120  }
 0x766   :  { %3149 = vst.msk [vmem:[#allocation3 + $0xf] sm:$0x1] %vm8152_vm1, %v3147_v47 }
 0x767   :  { %3163 = vst.msk [vmem:[#allocation3 + $0xf] sm:$0x5] %vm7578_vm12, %v3161_v5  ;;  %v3167_v15 = vpop.permute.xlu1 %3166 }
 0x768   :  { %3169 = vst.msk [vmem:[#allocation3 + $0x11] sm:$0x1] %vm8153_vm7, %v3167_v15  ;;  %v3193_v30 = vpop.permute.xlu0 %3192 }
 0x769   :  { %3195 = vst.msk [vmem:[#allocation3 + $0x13] sm:$0x1] %vm8154_vm9, %v3193_v30 }
 0x76b   :  { %v3172_v27 = vpop.permute.xlu1 %3171 }
 0x76c   :  { %3174 = vst.msk [vmem:[#allocation3 + $0x11] sm:$0x1] %vm8155_vm15, %v3172_v27  ;;  %v3198_v57 = vpop.permute.xlu0 %3197 }
 0x76d   :  { %3200 = vst.msk [vmem:[#allocation3 + $0x13] sm:$0x1] %vm8156_vm8, %v3198_v57 }
 0x76f   :  { %v2720_v42 = vpop.permute.xlu1 %2719 }
 0x770   :  { %2723 = vst.msk [vmem:[#allocation3 + $0x10] sm:$0x1] %vm2722_vm2, %v2720_v42  ;;  %v3204_v55 = vpop.permute.xlu0 %3203 }
 0x771   :  { %v3205_v14 = vrot.slane %v3204_v55, 6 }
 0x773   :  { %v3206_v37 = vsel %vm8157_vm6, %v3205_v14, %v3204_v55 }
 0x774   :  { %3208 = vst.msk [vmem:[#allocation3 + $0x13] sm:$0x5] %vm7461_vm10, %v3206_v37  ;;  %v3178_v23 = vpop.permute.xlu0 %3177 }
 0x775   :  { %3180 = vst.msk [vmem:[#allocation3 + $0x11] sm:$0x1] %vm2722_vm2, %v3178_v23 }
 0x776   :  { %4916 = dma.done.wait [#allocation5], 20736 }
 0x777   :  { %4917 = vsyncadd [#allocation5], 4294946560  ;;  %v8158_v2 = vld [vmem:[#allocation25_spill] sm:$0xff]  ;;  %v8159_v8 = vld [vmem:[#allocation52_spill] sm:$0xff]  ;;  %4653 = vmatprep.subr.bf16.mxu1 %v4652_v19  ;;  %4685 = vmatprep.subr.bf16.mxu0 %v4684_v22  ;;  %vm4968_vm10 = vmmov 0   ;;  %vm8291_vm12 = vcmask 130048  }
 0x778   :  { %v4656_v61 = vpack.c.bf16 %v8158_v2, %v5118_v18  ;;  %v8160_v12 = vld [vmem:[#allocation53_spill] sm:$0xff]  ;;  %4655 = vmatpush3.bf16.msra.mxu1 %v4654_v54  ;;  %4687 = vmatpush3.bf16.msra.mxu0 %v4686_v59  ;;  %v8161_v16 = vld [vmem:[#allocation11_spill] sm:$0xff]  ;;  %v8162_v0 = vld [vmem:[#allocation12_spill] sm:$0xff]  ;;  %s4969_s28 = smov [#allocation6]  }
 0x779   :  { %v4688_v4 = vpack.c.bf16 %v8160_v12, %v8159_v8  ;;  %v4658_v1 = vpack.c.bf16 %v8162_v0, %v8161_v16  ;;  %v8163_v17 = vld [vmem:[#allocation38_spill] sm:$0xff]  ;;  %v8164_v48 = vld [vmem:[#allocation39_spill] sm:$0xff]  ;;  %v8169_v29 = vld [vmem:[#allocation13_spill] sm:$0xff]  ;;  %s3971_s26 = sshll.u32 %s4969_s28, 4  ;;  %s3972_s26 = int_to_ptr.vmem [resolvable:$true] %s3971_s26 }
 0x77a   :  { %v4690_v49 = vpack.c.bf16 %v8164_v48, %v8163_v17  ;;  %4657 = vmatprep.subr.bf16.mxu1 %v4656_v61  ;;  %v8165_v32 = vld [vmem:[#allocation26_spill] sm:$0xff]  ;;  %v8166_v33 = vld [vmem:[#allocation27_spill] sm:$0xff]  ;;  %v8171_v7 = vld [vmem:[#allocation40_spill] sm:$0xff]  ;;  %s4894_s24 = scalar_lea.vmem %s3972_s26, 32  ;;  %p4899_p1 = scmp.lt.s32.totalorder %s3972_s26, %s3972_s26 }
 0x77b   :  { %4689 = vmatprep.subr.bf16.mxu0 %v4688_v4  ;;  %v4660_v11 = vpack.c.bf16 %v8166_v33, %v8165_v32  ;;  %v8167_v62 = vld [vmem:[#allocation54_spill] sm:$0xff]  ;;  %v8168_v18 = vld [vmem:[#allocation55_spill] sm:$0xff]  ;;  %v8172_v50 = vld [vmem:[#allocation41_spill] sm:$0xff]  ;;  %p4895_p0 = scmp.ne.s32.totalorder %s3972_s26, %s4894_s24  ;;  %p4900_p2 = scmp.lt.s32.totalorder %s4894_s24, %s4894_s24 }
 0x77c   :  { %v4692_v40 = vpack.c.bf16 %v8168_v18, %v8167_v62  ;;  %4659 = vmatpush3.bf16.msra.mxu1 %v4658_v1  ;;  %4691 = vmatpush3.bf16.msra.mxu0 %v4690_v49  ;;  %v8170_v41 = vld [vmem:[#allocation14_spill] sm:$0xff]  ;;  %v4694_v21 = vpack.c.bf16 %v8172_v50, %v8171_v7  ;;  %v3212_v39 = vld [vmem:[#allocation3] sm:$0xff]  ;;  %v8174_v56 = vld [vmem:[#allocation29_spill] sm:$0xff] }
 0x77d   :  { %v4662_v26 = vpack.c.bf16 %v8170_v41, %v8169_v29  ;;  %4661 = vmatprep.subr.bf16.mxu1 %v4660_v11  ;;  %v8173_v34 = vld [vmem:[#allocation28_spill] sm:$0xff]  ;;  %v8176_v28 = vld [vmem:[#allocation57_spill] sm:$0xff]  ;;  %v3394_v46 = vrot.slane %v3212_v39, %v7391_v45  ;;  %v3387_v43 = vcombine.high %v3212_v39, %v3212_v39  ;;  %v8177_v31 = vld [vmem:[#allocation15_spill] sm:$0xff]  ;;  %p4901_p3 = por %p4900_p2, %p4899_p1 }
 0x77e   :  { %4693 = vmatprep.subr.bf16.mxu0 %v4692_v40  ;;  %v4664_v35 = vpack.c.bf16 %v8174_v56, %v8173_v34  ;;  %v8175_v6 = vld [vmem:[#allocation56_spill] sm:$0xff]  ;;  %v8179_v53 = vld [vmem:[#allocation42_spill] sm:$0xff]  ;;  %v8180_v20 = vld [vmem:[#allocation43_spill] sm:$0xff] }
 0x77f   :  { %v4696_v51 = vpack.c.bf16 %v8176_v28, %v8175_v6  ;;  %v8178_v9 = vld [vmem:[#allocation16_spill] sm:$0xff]  ;;  %v4698_v25 = vpack.c.bf16 %v8180_v20, %v8179_v53  ;;  %v3402_v3 = vcombine.high %v3394_v46, %v3394_v46  ;;  %v3401_v36 = vrot.slane %v3387_v43, %v7391_v45  ;;  %v8181_v38 = vld [vmem:[#allocation30_spill] sm:$0xff]  ;;  %v8182_v58 = vld [vmem:[#allocation31_spill] sm:$0xff]  ;;  %p4902_p4 = pnand %p4901_p3, %p4895_p0 }
 0x780   :  { %v4666_v24 = vpack.c.bf16 %v8178_v9, %v8177_v31  ;;  %4663 = vmatpush3.bf16.msra.mxu1 %v4662_v26  ;;  %4695 = vmatpush3.bf16.msra.mxu0 %v4694_v21  ;;  %v4668_v60 = vpack.c.bf16 %v8182_v58, %v8181_v38  ;;  %v8183_v63 = vld [vmem:[#allocation58_spill] sm:$0xff]  ;;  %v8184_v44 = vld [vmem:[#allocation59_spill] sm:$0xff]  ;;  %v8185_v5 = vld [vmem:[#allocation17_spill] sm:$0xff] }
 0x781   :  { %4665 = vmatprep.subr.bf16.mxu1 %v4664_v35  ;;  %4697 = vmatprep.subr.bf16.mxu0 %v4696_v51  ;;  %v4700_v52 = vpack.c.bf16 %v8184_v44, %v8183_v63  ;;  %v3403_v47 = vcombine.high %v3401_v36, %v3401_v36  ;;  %v8186_v15 = vld [vmem:[#allocation18_spill] sm:$0xff]  ;;  %v8187_v27 = vld [vmem:[#allocation44_spill] sm:$0xff]  ;;  %v8188_v57 = vld [vmem:[#allocation45_spill] sm:$0xff] }
 0x782   :  { %3513 = vmatprep.mubr.f32.mxu1 %v3402_v3  ;;  %v4670_v30 = vpack.c.bf16 %v8186_v15, %v8185_v5  ;;  %v4702_v42 = vpack.c.bf16 %v8188_v57, %v8187_v27  ;;  %v8189_v55 = vld [vmem:[#allocation32_spill] sm:$0xff]  ;;  %v8190_v14 = vld [vmem:[#allocation33_spill] sm:$0xff]  ;;  %v8193_v22 = vld [vmem:[#allocation19_spill] sm:$0xff] }
 0x783   :  { %v4672_v37 = vpack.c.bf16 %v8190_v14, %v8189_v55  ;;  %v8191_v23 = vld [vmem:[#allocation60_spill] sm:$0xff]  ;;  %v8192_v19 = vld [vmem:[#allocation61_spill] sm:$0xff]  ;;  %3583 = vmatprep.mubr.f32.mxu0 %v3403_v47  ;;  %v8195_v61 = vld [vmem:[#allocation46_spill] sm:$0xff] }
 0x784   :  { %4667 = vmatpush3.bf16.msra.mxu1 %v4666_v24  ;;  %4699 = vmatpush3.bf16.msra.mxu0 %v4698_v25  ;;  %v4704_v54 = vpack.c.bf16 %v8192_v19, %v8191_v23  ;;  %v8194_v59 = vld [vmem:[#allocation20_spill] sm:$0xff]  ;;  %v8196_v8 = vld [vmem:[#allocation47_spill] sm:$0xff]  ;;  %v8197_v4 = vld [vmem:[#allocation34_spill] sm:$0xff] }
 0x785   :  { %4669 = vmatprep.subr.bf16.mxu1 %v4668_v60  ;;  %4701 = vmatprep.subr.bf16.mxu0 %v4700_v52  ;;  %v4674_v2 = vpack.c.bf16 %v8194_v59, %v8193_v22  ;;  %v4706_v12 = vpack.c.bf16 %v8196_v8, %v8195_v61  ;;  %v8198_v16 = vld [vmem:[#allocation35_spill] sm:$0xff]  ;;  %v8199_v1 = vld [vmem:[#allocation62_spill] sm:$0xff]  ;;  %v3213_v49 = vld [vmem:[#allocation3 + $0x8] sm:$0xff] }
 0x786   :  { %v4676_v0 = vpack.c.bf16 %v8198_v16, %v8197_v4  ;;  %v8200_v17 = vld [vmem:[#allocation63_spill] sm:$0xff]  ;;  %v8201_v32 = vld [vmem:[#allocation21_spill] sm:$0xff]  ;;  %v8202_v33 = vld [vmem:[#allocation22_spill] sm:$0xff]  ;;  %v3404_v39 = vcombine.high %v3213_v49, %v3213_v49  ;;  %v7715_v25 = vrot.slane %v3213_v49, %v7391_v45 }
 0x787   :  { %v4708_v48 = vpack.c.bf16 %v8200_v17, %v8199_v1  ;;  %v4678_v11 = vpack.c.bf16 %v8202_v33, %v8201_v32  ;;  %v8203_v62 = vld [vmem:[#allocation48_spill] sm:$0xff]  ;;  %v8204_v18 = vld [vmem:[#allocation49_spill] sm:$0xff]  ;;  %v8209_v34 = vld [vmem:[#allocation23_spill] sm:$0xff] }
 0x788   :  { %4671 = vmatpush3.bf16.msra.mxu1 %v4670_v30  ;;  %4703 = vmatpush3.bf16.msra.mxu0 %v4702_v42  ;;  %v4710_v40 = vpack.c.bf16 %v8204_v18, %v8203_v62  ;;  %v8205_v29 = vld [vmem:[#allocation36_spill] sm:$0xff]  ;;  %v8206_v41 = vld [vmem:[#allocation37_spill] sm:$0xff]  ;;  %v8211_v6 = vld [vmem:[#allocation50_spill] sm:$0xff]  ;;  %v7718_v3 = vrot.slane %v3404_v39, %v7391_v45  ;;  %v3419_v42 = vcombine.high %v7715_v25, %v7715_v25 }
 0x789   :  { %4673 = vmatprep.subr.bf16.mxu1 %v4672_v37  ;;  %4705 = vmatprep.subr.bf16.mxu0 %v4704_v54  ;;  %v4680_v26 = vpack.c.bf16 %v8206_v41, %v8205_v29  ;;  %v8207_v7 = vld [vmem:[#allocation64_spill] sm:$0xff]  ;;  %v8208_v50 = vld [vmem:[#allocation65_spill] sm:$0xff]  ;;  %v8212_v28 = vld [vmem:[#allocation51_spill] sm:$0xff] }
 0x78a   :  { %v4712_v21 = vpack.c.bf16 %v8208_v50, %v8207_v7  ;;  %v8210_v56 = vld [vmem:[#allocation24_spill] sm:$0xff]  ;;  %v4714_v51 = vpack.c.bf16 %v8212_v28, %v8211_v6  ;;  %v8213_v43 = vld [vmem:[#allocation82_spill] sm:$0xff]  ;;  %v8214_v31 = vld [vmem:[#allocation83_spill] sm:$0xff]  ;;  %v3420_v55 = vcombine.high %v7718_v3, %v7718_v3 }
 0x78b   :  { %v4682_v35 = vpack.c.bf16 %v8210_v56, %v8209_v34  ;;  %v4716_v9 = vpack.c.bf16 %v8214_v31, %v8213_v43  ;;  %v8215_v24 = vld [vmem:[#allocation114_spill] sm:$0xff]  ;;  %v8216_v53 = vld [vmem:[#allocation115_spill] sm:$0xff]  ;;  %v8221_v47 = vld [vmem:[#allocation84_spill] sm:$0xff] }
 0x78c   :  { %4675 = vmatpush3.bf16.msra.mxu1 %v4674_v2  ;;  %4707 = vmatpush3.bf16.msra.mxu0 %v4706_v12  ;;  %v4748_v20 = vpack.c.bf16 %v8216_v53, %v8215_v24  ;;  %v8217_v38 = vld [vmem:[#allocation66_spill] sm:$0xff]  ;;  %v8218_v58 = vld [vmem:[#allocation67_spill] sm:$0xff]  ;;  %v8222_v5 = vld [vmem:[#allocation85_spill] sm:$0xff] }
 0x78d   :  { %4677 = vmatprep.subr.bf16.mxu1 %v4676_v0  ;;  %4709 = vmatprep.subr.bf16.mxu0 %v4708_v48  ;;  %v4718_v60 = vpack.c.bf16 %v8218_v58, %v8217_v38  ;;  %v8219_v63 = vld [vmem:[#allocation98_spill] sm:$0xff]  ;;  %v8220_v44 = vld [vmem:[#allocation99_spill] sm:$0xff]  ;;  %v4720_v15 = vpack.c.bf16 %v8222_v5, %v8221_v47  ;;  %v8223_v30 = vld [vmem:[#allocation116_spill] sm:$0xff] }
 0x78e   :  { %v4750_v52 = vpack.c.bf16 %v8220_v44, %v8219_v63  ;;  %v8224_v27 = vld [vmem:[#allocation117_spill] sm:$0xff]  ;;  %v8225_v14 = vld [vmem:[#allocation68_spill] sm:$0xff]  ;;  %v8229_v59 = vld [vmem:[#allocation86_spill] sm:$0xff] }
 0x78f   :  { %v4752_v57 = vpack.c.bf16 %v8224_v27, %v8223_v30  ;;  %v8226_v37 = vld [vmem:[#allocation69_spill] sm:$0xff]  ;;  %v8227_v19 = vld [vmem:[#allocation100_spill] sm:$0xff]  ;;  %v8230_v2 = vld [vmem:[#allocation87_spill] sm:$0xff] }
 0x790   :  { %4679 = vmatpush3.bf16.msra.mxu1 %v4678_v11  ;;  %4711 = vmatpush3.bf16.msra.mxu0 %v4710_v40  ;;  %v4722_v23 = vpack.c.bf16 %v8226_v37, %v8225_v14  ;;  %v8228_v54 = vld [vmem:[#allocation101_spill] sm:$0xff]  ;;  %v4724_v61 = vpack.c.bf16 %v8230_v2, %v8229_v59  ;;  %v8231_v8 = vld [vmem:[#allocation118_spill] sm:$0xff]  ;;  %v8232_v12 = vld [vmem:[#allocation119_spill] sm:$0xff] }
 0x791   :  { %4681 = vmatprep.subr.bf16.mxu1 %v4680_v26  ;;  %4713 = vmatprep.subr.bf16.mxu0 %v4712_v21  ;;  %v4754_v22 = vpack.c.bf16 %v8228_v54, %v8227_v19  ;;  %v4756_v4 = vpack.c.bf16 %v8232_v12, %v8231_v8  ;;  %v8235_v0 = vld [vmem:[#allocation102_spill] sm:$0xff]  ;;  %v8236_v1 = vld [vmem:[#allocation103_spill] sm:$0xff]  ;;  %v8237_v48 = vld [vmem:[#allocation88_spill] sm:$0xff] }
 0x792   :  { %v4758_v17 = vpack.c.bf16 %v8236_v1, %v8235_v0  ;;  %v8238_v49 = vld [vmem:[#allocation89_spill] sm:$0xff]  ;;  %v8239_v33 = vld [vmem:[#allocation120_spill] sm:$0xff]  ;;  %v8245_v50 = vld [vmem:[#allocation90_spill] sm:$0xff] }
 0x793   :  { %v4728_v32 = vpack.c.bf16 %v8238_v49, %v8237_v48  ;;  %v8240_v11 = vld [vmem:[#allocation121_spill] sm:$0xff]  ;;  %v8241_v18 = vld [vmem:[#allocation72_spill] sm:$0xff]  ;;  %v8246_v21 = vld [vmem:[#allocation91_spill] sm:$0xff] }
 0x794   :  { %4683 = vmatpush3.bf16.msra.mxu1 %v4682_v35  ;;  %4715 = vmatpush3.bf16.msra.mxu0 %v4714_v51  ;;  %v4760_v62 = vpack.c.bf16 %v8240_v11, %v8239_v33  ;;  %v8242_v40 = vld [vmem:[#allocation73_spill] sm:$0xff]  ;;  %v8243_v41 = vld [vmem:[#allocation104_spill] sm:$0xff]  ;;  %v4732_v39 = vpack.c.bf16 %v8246_v21, %v8245_v50  ;;  %v8247_v34 = vld [vmem:[#allocation122_spill] sm:$0xff] }
 0x795   :  { %4717 = vmatprep.subr.bf16.mxu1 %v4716_v9  ;;  %4749 = vmatprep.subr.bf16.mxu0 %v4748_v20  ;;  %v4730_v29 = vpack.c.bf16 %v8242_v40, %v8241_v18  ;;  %v8244_v26 = vld [vmem:[#allocation105_spill] sm:$0xff]  ;;  %v8248_v56 = vld [vmem:[#allocation123_spill] sm:$0xff]  ;;  %v8249_v6 = vld [vmem:[#allocation74_spill] sm:$0xff] }
 0x796   :  { %v4762_v7 = vpack.c.bf16 %v8244_v26, %v8243_v41  ;;  %v4764_v35 = vpack.c.bf16 %v8248_v56, %v8247_v34  ;;  %v8250_v28 = vld [vmem:[#allocation75_spill] sm:$0xff]  ;;  %v8251_v43 = vld [vmem:[#allocation106_spill] sm:$0xff]  ;;  %v8253_v24 = vld [vmem:[#allocation92_spill] sm:$0xff] }
 0x797   :  { %3514 = vmatmul.mubr.f32.vlgmr.msra.gmra.mrb[36].mxu1 %v3394_v46  ;;  %3584 = vmatmul.mubr.f32.vlgmr.msra.gmra.mrb[30].mxu0 %v3401_v36  ;;  %v8233_v46 = vld [vmem:[#allocation70_spill] sm:$0xff]  ;;  %v8234_v36 = vld [vmem:[#allocation71_spill] sm:$0xff]  ;;  %v4734_v51 = vpack.c.bf16 %v8250_v28, %v8249_v6  ;;  %v8254_v53 = vld [vmem:[#allocation93_spill] sm:$0xff] }
 0x798   :  { %4719 = vmatpush3.bf16.msra.mxu1 %v4718_v60  ;;  %4751 = vmatpush3.bf16.msra.mxu0 %v4750_v52  ;;  %v4726_v16 = vpack.c.bf16 %v8234_v36, %v8233_v46  ;;  %v8252_v31 = vld [vmem:[#allocation107_spill] sm:$0xff]  ;;  %v4736_v20 = vpack.c.bf16 %v8254_v53, %v8253_v24  ;;  %v8255_v38 = vld [vmem:[#allocation124_spill] sm:$0xff]  ;;  %v8256_v58 = vld [vmem:[#allocation125_spill] sm:$0xff] }
 0x799   :  { %4721 = vmatprep.subr.bf16.mxu1 %v4720_v15  ;;  %4753 = vmatprep.subr.bf16.mxu0 %v4752_v57  ;;  %v4766_v9 = vpack.c.bf16 %v8252_v31, %v8251_v43  ;;  %v4768_v60 = vpack.c.bf16 %v8256_v58, %v8255_v38  ;;  %v8257_v63 = vld [vmem:[#allocation76_spill] sm:$0xff]  ;;  %v8258_v44 = vld [vmem:[#allocation77_spill] sm:$0xff]  ;;  %v8261_v30 = vld [vmem:[#allocation94_spill] sm:$0xff] }
 0x79a   :  { %3653 = vmatprep.mubr.f32.mxu1 %v3419_v42  ;;  %3723 = vmatprep.mubr.f32.mxu0 %v3420_v55  ;;  %v4738_v52 = vpack.c.bf16 %v8258_v44, %v8257_v63  ;;  %v8259_v47 = vld [vmem:[#allocation108_spill] sm:$0xff]  ;;  %v8260_v5 = vld [vmem:[#allocation109_spill] sm:$0xff]  ;;  %v8262_v27 = vld [vmem:[#allocation95_spill] sm:$0xff] }
 0x79b   :  { %v4770_v15 = vpack.c.bf16 %v8260_v5, %v8259_v47  ;;  %v4740_v57 = vpack.c.bf16 %v8262_v27, %v8261_v30  ;;  %v8263_v42 = vld [vmem:[#allocation126_spill] sm:$0xff]  ;;  %v8264_v55 = vld [vmem:[#allocation127_spill] sm:$0xff]  ;;  %v8269_v2 = vld [vmem:[#allocation96_spill] sm:$0xff] }
 0x79c   :  { %4723 = vmatpush3.bf16.msra.mxu1 %v4722_v23  ;;  %4755 = vmatpush3.bf16.msra.mxu0 %v4754_v22  ;;  %v4772_v14 = vpack.c.bf16 %v8264_v55, %v8263_v42  ;;  %v8265_v37 = vld [vmem:[#allocation78_spill] sm:$0xff]  ;;  %v8266_v23 = vld [vmem:[#allocation79_spill] sm:$0xff]  ;;  %v8271_v12 = vld [vmem:[#allocation128_spill] sm:$0xff] }
 0x79d   :  { %4725 = vmatprep.subr.bf16.mxu1 %v4724_v61  ;;  %4757 = vmatprep.subr.bf16.mxu0 %v4756_v4  ;;  %v4742_v19 = vpack.c.bf16 %v8266_v23, %v8265_v37  ;;  %v8267_v54 = vld [vmem:[#allocation110_spill] sm:$0xff]  ;;  %v8268_v22 = vld [vmem:[#allocation111_spill] sm:$0xff]  ;;  %v8270_v61 = vld [vmem:[#allocation97_spill] sm:$0xff] }
 0x79e   :  { %v4774_v59 = vpack.c.bf16 %v8268_v22, %v8267_v54  ;;  %v4744_v8 = vpack.c.bf16 %v8270_v61, %v8269_v2  ;;  %v8272_v4 = vld [vmem:[#allocation129_spill] sm:$0xff]  ;;  %v3214_v36 = vld [vmem:[#allocation3 + $0x10] sm:$0x3f]  ;;  %v8278_v11 = vld [vmem:[#allocation147_spill] sm:$0xff] }
 0x79f   :  { %v4776_v46 = vpack.c.bf16 %v8272_v4, %v8271_v12  ;;  %v8274_v0 = vld [vmem:[#allocation81_spill] sm:$0xff]  ;;  %v8277_v33 = vld [vmem:[#allocation146_spill] sm:$0xff]  ;;  %v8280_v40 = vld [vmem:[#allocation131_spill] sm:$0xff]  ;;  %v3421_v26 = vcombine.high %v3214_v36, %v3214_v36 }
 0x7a0   :  { %4727 = vmatpush3.bf16.msra.mxu1 %v4726_v16  ;;  %4759 = vmatpush3.bf16.msra.mxu0 %v4758_v17  ;;  %v8273_v16 = vld [vmem:[#allocation80_spill] sm:$0xff]  ;;  %v8276_v48 = vld [vmem:[#allocation113_spill] sm:$0xff]  ;;  %v8279_v18 = vld [vmem:[#allocation130_spill] sm:$0xff] }
 0x7a1   :  { %4729 = vmatprep.subr.bf16.mxu1 %v4728_v32  ;;  %4761 = vmatprep.subr.bf16.mxu0 %v4760_v62  ;;  %v4746_v1 = vpack.c.bf16 %v8274_v0, %v8273_v16  ;;  %v8275_v17 = vld [vmem:[#allocation112_spill] sm:$0xff]  ;;  %v3428_v32 = vrot.slane %v3214_v36, %v7391_v45  ;;  %v4780_v62 = vpack.c.bf16 %v8278_v11, %v8277_v33  ;;  %v8282_v50 = vld [vmem:[#allocation149_spill] sm:$0xff]  ;;  %v8284_v34 = vld [vmem:[#allocation163_spill] sm:$0xff] }
 0x7a2   :  { %v4778_v49 = vpack.c.bf16 %v8276_v48, %v8275_v17  ;;  %v8286_v6 = vld [vmem:[#allocation133_spill] sm:$0xff]  ;;  %v8287_v43 = vld [vmem:[#allocation150_spill] sm:$0xff]  ;;  %v8288_v31 = vld [vmem:[#allocation151_spill] sm:$0xff] }
 0x7a3   :  { %v3436_v41 = vcombine.high %v3428_v32, %v3428_v32  ;;  %v8292_v53 = vld [vmem:[#allocation152_spill] sm:$0xff]  ;;  %v8295_v58 = vld [vmem:[#allocation137_spill] sm:$0xff]  ;;  %v8296_v63 = vld [vmem:[#allocation154_spill] sm:$0xff] }
 0x7a4   :  { %4731 = vmatpush3.bf16.msra.mxu1 %v4730_v29  ;;  %4763 = vmatpush3.bf16.msra.mxu0 %v4762_v7  ;;  %v4782_v29 = vpack.c.bf16 %v8280_v40, %v8279_v18  ;;  %v8281_v7 = vld [vmem:[#allocation148_spill] sm:$0xff]  ;;  %v8297_v44 = vld [vmem:[#allocation155_spill] sm:$0xff]  ;;  %v8298_v47 = vld [vmem:[#allocation138_spill] sm:$0xff] }
 0x7a5   :  { %4733 = vmatprep.subr.bf16.mxu1 %v4732_v39  ;;  %4765 = vmatprep.subr.bf16.mxu0 %v4764_v35  ;;  %v4784_v21 = vpack.c.bf16 %v8282_v50, %v8281_v7  ;;  %v8283_v39 = vld [vmem:[#allocation162_spill] sm:$0xff]  ;;  %v8285_v35 = vld [vmem:[#allocation132_spill] sm:$0xff]  ;;  %v8299_v5 = vld [vmem:[#allocation139_spill] sm:$0xff] }
 0x7a6   :  { %v4813_v56 = vpack.c.bf16 %v8284_v34, %v8283_v39  ;;  %v4786_v28 = vpack.c.bf16 %v8286_v6, %v8285_v35  ;;  %v8294_v38 = vld [vmem:[#allocation136_spill] sm:$0xff]  ;;  %v8301_v27 = vld [vmem:[#allocation157_spill] sm:$0xff]  ;;  %v8305_v37 = vld [vmem:[#allocation159_spill] sm:$0xff] }
 0x7a7   :  { %v8300_v30 = vld [vmem:[#allocation156_spill] sm:$0xff]  ;;  %v8303_v55 = vld [vmem:[#allocation141_spill] sm:$0xff]  ;;  %v8307_v54 = vld [vmem:[#allocation143_spill] sm:$0xff] }
 0x7a8   :  { %4735 = vmatpush3.bf16.msra.mxu1 %v4734_v51  ;;  %4767 = vmatpush3.bf16.msra.mxu0 %v4766_v9  ;;  %v3435_v51 = vrot.slane %v3421_v26, %v7391_v45  ;;  %v4788_v9 = vpack.c.bf16 %v8288_v31, %v8287_v43  ;;  %v8302_v42 = vld [vmem:[#allocation140_spill] sm:$0xff]  ;;  %v8309_v2 = vld [vmem:[#allocation161_spill] sm:$0xff]  ;;  %v3872_v16 = vld [vmem:[%s7908_s8 + $0x10] sm:$0xff] }
 0x7a9   :  { %4737 = vmatprep.subr.bf16.mxu1 %v4736_v20  ;;  %4769 = vmatprep.subr.bf16.mxu0 %v4768_v60  ;;  %v8293_v20 = vld [vmem:[#allocation153_spill] sm:$0xff]  ;;  %v4794_v60 = vpack.c.bf16 %v8295_v58, %v8294_v38  ;;  %v3874_v48 = vld [vmem:[%s7908_s8 + $0x20] sm:$0xff]  ;;  %v3876_v33 = vld [vmem:[%s7908_s8 + $0x30] sm:$0xff] }
 0x7aa   :  { %v4792_v45 = vpack.c.bf16 %v8293_v20, %v8292_v53  ;;  %v8311_v12 = vld [vmem:[#allocation145_spill] sm:$0xff]  ;;  %v3877_v11 = vld [vmem:[%s7908_s8 + $0x38] sm:$0xff]  ;;  %v3878_v18 = vld [vmem:[%s7908_s8 + $0x40] sm:$0xff] }
 0x7ab   :  { %v3871_v36 = vld [vmem:[%s7908_s8 + $0x8] sm:$0xff]  ;;  %v3881_v26 = vld [vmem:[%s7908_s8 + $0x58] sm:$0xff]  ;;  %v3882_v50 = vld [vmem:[%s7908_s8 + $0x60] sm:$0xff] }
 0x7ac   :  { %4739 = vmatpush3.bf16.msra.mxu1 %v4738_v52  ;;  %4771 = vmatpush3.bf16.msra.mxu0 %v4770_v15  ;;  %v4796_v52 = vpack.c.bf16 %v8297_v44, %v8296_v63  ;;  %v4798_v15 = vpack.c.bf16 %v8299_v5, %v8298_v47  ;;  %v3879_v40 = vld [vmem:[%s7908_s8 + $0x48] sm:$0xff]  ;;  %v3884_v34 = vld [vmem:[%s7908_s8 + $0x70] sm:$0xff] }
 0x7ad   :  { %4741 = vmatprep.subr.bf16.mxu1 %v4740_v57  ;;  %4773 = vmatprep.subr.bf16.mxu0 %v4772_v14  ;;  %v4800_v57 = vpack.c.bf16 %v8301_v27, %v8300_v30  ;;  %v8304_v14 = vld [vmem:[#allocation158_spill] sm:$0xff] }
 0x7ae   :  { %v4804_v23 = vpack.c.bf16 %v8305_v37, %v8304_v14 }
 0x7b0   :  { %4743 = vmatpush3.bf16.msra.mxu1 %v4742_v19  ;;  %4775 = vmatpush3.bf16.msra.mxu0 %v4774_v59  ;;  %v8306_v19 = vld [vmem:[#allocation142_spill] sm:$0xff]  ;;  %v8308_v59 = vld [vmem:[#allocation160_spill] sm:$0xff] }
 0x7b1   :  { %4745 = vmatprep.subr.bf16.mxu1 %v4744_v8  ;;  %4777 = vmatprep.subr.bf16.mxu0 %v4776_v46  ;;  %v4806_v22 = vpack.c.bf16 %v8307_v54, %v8306_v19  ;;  %v4808_v61 = vpack.c.bf16 %v8309_v2, %v8308_v59  ;;  %v8310_v8 = vld [vmem:[#allocation144_spill] sm:$0xff] }
 0x7b2   :  { %v4810_v4 = vpack.c.bf16 %v8311_v12, %v8310_v8  ;;  %v3870_v46 = vld [vmem:[%s7908_s8] sm:$0xff] }
 0x7b3   :  { %v4816_v0 = vpack.c.bf16 %v3871_v36, %v3870_v46 }
 0x7b4   :  { %4747 = vmatpush3.bf16.msra.mxu1 %v4746_v1  ;;  %4779 = vmatpush3.bf16.msra.mxu0 %v4778_v49  ;;  %v3873_v1 = vld [vmem:[%s7908_s8 + $0x18] sm:$0xff]  ;;  %v3875_v49 = vld [vmem:[%s7908_s8 + $0x28] sm:$0xff] }
 0x7b5   :  { %4781 = vmatprep.subr.bf16.mxu1 %v4780_v62  ;;  %4812 = vmatprep.subr.bf16.mxu0 %v4939_v13  ;;  %v4819_v17 = vpack.c.bf16 %v3873_v1, %v3872_v16  ;;  %v4825_v62 = vpack.c.bf16 %v3877_v11, %v3876_v33 }
 0x7b7   :  { %3654 = vmatmul.mubr.f32.vlgmr.msra.gmra.mrb[38].mxu1 %v7715_v25  ;;  %3724 = vmatmul.mubr.f32.vlgmr.msra.gmra.mrb[32].mxu0 %v7718_v3  ;;  %v8289_v25 = vld [vmem:[#allocation134_spill] sm:$0xff]  ;;  %v8290_v3 = vld [vmem:[#allocation135_spill] sm:$0xff] }
 0x7b8   :  { %4783 = vmatpush3.bf16.msra.mxu1 %v4782_v29  ;;  %3793 = vmatprep.mubr.f32.mxu1 %v3436_v41  ;;  %v4790_v24 = vpack.c.bf16 %v8290_v3, %v8289_v25  ;;  %v4828_v29 = vpack.c.bf16 %v3879_v40, %v3878_v18  ;;  %v3880_v41 = vld [vmem:[%s7908_s8 + $0x50] sm:$0xff] }
 0x7b9   :  { %4785 = vmatprep.subr.bf16.mxu1 %v4784_v21  ;;  %4814 = vmatpush3.bf16.msra.mxu0 %v4813_v56  ;;  %v4831_v7 = vpack.c.bf16 %v3881_v26, %v3880_v41  ;;  %v3883_v21 = vld [vmem:[%s7908_s8 + $0x68] sm:$0xff]  ;;  %v3885_v56 = vld [vmem:[%s7908_s8 + $0x78] sm:$0xff] }
 0x7ba   :  { %4316 = vmatprep.mubr.msk.f32.mxu0 %vm4968_vm10, %v8101_v10  ;;  %4815 = vmatprep.subr.bf16.mxu0 %v4939_v13  ;;  %v4834_v39 = vpack.c.bf16 %v3883_v21, %v3882_v50  ;;  %v4837_v35 = vpack.c.bf16 %v3885_v56, %v3884_v34 }
 0x7bc   :  { %4787 = vmatpush3.bf16.msra.mxu1 %v4786_v28  ;;  %4317 = vmatmul.mubr.msk.f32.vlgmr.msra.gmra.mrb[34].mxu0 %vm8291_vm12, %v3435_v51  ;;  %v4078_v51 = vld [vmem:[%s7907_s7] ss:$0 sm:$0xff] }
 0x7bd   :  { %4789 = vmatprep.subr.bf16.mxu1 %v4788_v9  ;;  %4351 = vmatprep.mubr.msk.f32.mxu0 %vm4968_vm10, %v8101_v10  ;;  %v4802_v10 = vpack.c.bf16 %v8303_v55, %v8302_v42  ;;  %v4080_v42 = vld [vmem:[%s7909_s9] ss:$0 sm:$0xff] }
 0x7be   :  { %4817 = vmatpush3.bf16.msra.mxu0 %v4816_v0 }
 0x7bf   :  { %4818 = vmatprep.subr.bf16.mxu0 %v4939_v13 }
 0x7c0   :  { %4791 = vmatpush3.bf16.msra.mxu1 %v4790_v24 }
 0x7c1   :  { %4793 = vmatprep.subr.bf16.mxu1 %v4792_v45 }
 0x7c2   :  { %4820 = vmatpush3.bf16.msra.mxu0 %v4819_v17 }
 0x7c3   :  { %4821 = vmatprep.subr.bf16.mxu0 %v4939_v13 }
 0x7c4   :  { %4795 = vmatpush3.bf16.msra.mxu1 %v4794_v60 }
 0x7c5   :  { %4797 = vmatprep.subr.bf16.mxu1 %v4796_v52 }
 0x7c8   :  { %4799 = vmatpush3.bf16.msra.mxu1 %v4798_v15 }
 0x7c9   :  { %4801 = vmatprep.subr.bf16.mxu1 %v4800_v57 }
 0x7cc   :  { %4803 = vmatpush3.bf16.msra.mxu1 %v4802_v10 }
 0x7cd   :  { %4805 = vmatprep.subr.bf16.mxu1 %v4804_v23 }
 0x7d0   :  { %4807 = vmatpush3.bf16.msra.mxu1 %v4806_v22 }
 0x7d1   :  { %4809 = vmatprep.subr.bf16.mxu1 %v4808_v61 }
 0x7d4   :  { %4811 = vmatpush3.bf16.msra.mxu1 %v4810_v4 }
 0x7d7   :  { %3794 = vmatmul.mubr.f32.vlgmr.msra.gmra.mrb[40].mxu1 %v3428_v32  ;;  %v4822_v32 = vpack.c.bf16 %v3875_v49, %v3874_v48 }
 0x7d9   :  { %4823 = vmatpush3.bf16.msra.mxu0 %v4822_v32 }
 0x7da   :  { %4824 = vmatprep.subr.bf16.mxu0 %v4939_v13 }
 0x7dd   :  { %4826 = vmatpush3.bf16.msra.mxu0 %v4825_v62 }
 0x7de   :  { %4827 = vmatprep.subr.bf16.mxu0 %v4939_v13 }
 0x7e1   :  { %4829 = vmatpush3.bf16.msra.mxu0 %v4828_v29 }
 0x7e2   :  { %4830 = vmatprep.subr.bf16.mxu0 %v4939_v13 }
 0x7e5   :  { %4832 = vmatpush3.bf16.msra.mxu0 %v4831_v7 }
 0x7e6   :  { %4833 = vmatprep.subr.bf16.mxu0 %v4939_v13 }
 0x7e9   :  { %4835 = vmatpush3.bf16.msra.mxu0 %v4834_v39 }
 0x7ea   :  { %4836 = vmatprep.subr.bf16.mxu0 %v4939_v13 }
 0x7ed   :  { %4838 = vmatpush3.bf16.msra.mxu0 %v4837_v35 }
 0x86a   :  { %v4126_v6 = vpop.f32.mrb[36].mxu1  ;;  %v4161_v28 = vpop.f32.mrb[30].mxu0 }
 0x86b   :  { %v4127_v43 = vpop.f32.mrb[37].mxu1  ;;  %v4162_v31 = vpop.f32.mrb[31].mxu0 }
 0x86c   :  { %v4128_v9 = vadd.f32 %v4127_v43, %v4126_v6  ;;  %v4163_v13 = vadd.f32 %v4162_v31, %v4161_v28 }
 0x86e   :  { %v3516_v25 = vadd.f32 %v4128_v9, %v4078_v51 }
 0x870   :  { %v3586_v3 = vadd.f32 %v4163_v13, %v3516_v25 }
 0x88a   :  { %v4196_v24 = vpop.f32.mrb[38].mxu1  ;;  %v4231_v53 = vpop.f32.mrb[32].mxu0 }
 0x88b   :  { %v4197_v20 = vpop.f32.mrb[39].mxu1  ;;  %v4232_v45 = vpop.f32.mrb[33].mxu0 }
 0x88c   :  { %v4198_v38 = vadd.f32 %v4197_v20, %v4196_v24  ;;  %v4233_v58 = vadd.f32 %v4232_v45, %v4231_v53 }
 0x88e   :  { %v3656_v60 = vadd.f32 %v4198_v38, %v3586_v3 }
 0x88f   :  { %v3865_v63 = vpop.f32.mrb[34].mxu0 }
 0x890   :  { %v3726_v44 = vadd.f32 %v4233_v58, %v3656_v60  ;;  %v4318_v52 = vpop.f32.mrb[35].mxu0 }
 0x8aa   :  { %v4266_v47 = vpop.f32.mrb[40].mxu1 }
 0x8ab   :  { %v4267_v5 = vpop.f32.mrb[41].mxu1 }
 0x8ac   :  { %v4268_v15 = vadd.f32 %v4267_v5, %v4266_v47 }
 0x8ae   :  { %v3796_v30 = vadd.f32 %v4268_v15, %v3726_v44 }
 0x8b0   :  { %v3866_v27 = vadd.f32 %v3865_v63, %v3796_v30 }
 0x8b2   :  { %v3869_v57 = vmax.f32 %v3866_v27, 0.0 }
 0x8b4   :  { %4352 = vmatmul.mubr.f32.vlgmr.msra.gmra.mrb[36].mxu0 %v3869_v57 }
 0x987   :  { %v3959_v55 = vpop.f32.mrb[36].mxu0 }
 0x988   :  { %v3960_v10 = vadd.f32 %v4080_v42, %v3959_v55  ;;  %v4353_v14 = vpop.f32.mrb[37].mxu0 }
 0x98a   :  { %v3963_v37 = vmax.f32 %v3960_v10, 0.0 }
 0x98c   :  { %3964 = vst [vmem:[#allocation6] sm:$0x3] %v3963_v37 }
 0x98d   :  { %4905 = shalt.err (!%p4902_p4)
}
 0x98e   :  { %s4906_s11 = scalar_lea.hbm %s7910_s10, 32 }
 0x98f   :  { %p4907_p5 = scmp.ne.s32.totalorder %s7910_s10, %s4906_s11  ;;  %p4910_p6 = scmp.lt.u32.totalorder %s4906_s11, %s7910_s10 }
 0x991   :  { %p4912_p7 = pnand %p4910_p6, %p4907_p5 }
 0x993   :  { %4915 = shalt.err (!%p4912_p7)
}
 0x994   :  { %3974 = dma.vmem_to_hbm [thread:$0]  %s3972_s26, 32, %s7910_s10, [#allocation7]  }
 0x995   :  { %4918 = dma.done.wait [#allocation7], 32  }
 0x996   :  { %4919 = vsyncadd [#allocation7], 4294967264 }
 0x997   :  { %3978 = vsyncpa [#allocation7], 1 }
 0x998   :  { %3979 = vsyncmov [#allocation5] }
 0x99b   :  { %s3980_s18 = vpop.sfrf %3979 }
 0x99c   :  { %p4081_p8 = scmp.ne.s32.totalorder %s3980_s18, 0 }
 0x99e   :  { %3984 = shalt.err (%p4081_p8)  }

</bundles_post_ra>
